<compile_context>
chip_gen: v6e
topology: v6e:2x2x1
jax: 0.10.0
libtpu: 0.0.40
codegen_flags: <defaults>
</compile_context>

<pallas_src>
import jax
import jax.numpy as jnp
from jax.experimental import pallas as pl
from jax.experimental.pallas import tpu as pltpu

GRID_SIZE = 5
SPLINE_ORDER = 3
N_BASIS = GRID_SIZE + SPLINE_ORDER          # spline coefficients per input feature
N_CHUNKS = 1 + N_BASIS                      # + SiLU "base" chunk
BN_EPS = 1e-5
GIN_EPS = 0.0                               # PyG GINConv default (train_eps=False)
LANE = 128
GRID_LO, GRID_HI = -1.0, 1.0

# Uniform knot vector (efficient-kan default grid_range=[-1,1]) as Python floats.
_H = (GRID_HI - GRID_LO) / GRID_SIZE
_KNOTS = [GRID_LO + (j - SPLINE_ORDER) * _H
          for j in range(GRID_SIZE + 2 * SPLINE_ORDER + 1)]


def _next_pow2(n):
    return 1 if n <= 1 else 1 << (n - 1).bit_length()


def _pack_geometry(in_f):
    """Packed layout of one KANLinear: f_pad lanes per chunk, `reps` chunks per
    128-lane group, `n_groups` groups (K_packed = n_groups * 128)."""
    assert 1 <= in_f <= LANE, "in_f > 128 needs multi-block chunks (not needed here)"
    f_pad = _next_pow2(in_f)
    reps = LANE // f_pad
    n_groups = -(-N_CHUNKS // reps)
    return f_pad, reps, n_groups


# ----------------------------------------------------------------------------
# In-kernel helpers
# ----------------------------------------------------------------------------
def _mxu(a, b):
    # bf16 MXU operands, f32 accumulation (exact for the 0/1 adjacency / pooling).
    return jnp.dot(a.astype(jnp.bfloat16), b.astype(jnp.bfloat16),
                   preferred_element_type=jnp.float32)


def _uniform_cubic_features(x, in_f):
    """Packed feature slab [SiLU(x), B^3_0(x), ..., B^3_7(x)] for one KANLinear.

    x: (rows, LANE) f32 with real features in lanes [0, in_f), zeros elsewhere.
    Returns (rows, n_groups*LANE) bf16; 128-lane group g holds chunks
    [g*reps, (g+1)*reps) at stride f_pad; lane l of a group holds feature
    l % f_pad.  Uses closed-form uniform cubic B-splines: cell index m, local
    coordinate t, and the 4 Horner blending polynomials (computed once, shared
    by all groups); basis placement is a per-lane compare/select chain against
    iota-derived lane constants.  Half-open-interval boundary semantics (x at
    the top extended knot -> zero basis mass) match the Cox-de Boor reference.
    """
    f_pad, reps, n_groups = _pack_geometry(in_f)

    # Lane-replicate x across all 128 lanes by roll-doubling.  Padding lanes of
    # x are zero and shifts are multiples of f_pad, so every f_pad-wide slot
    # ends up holding an exact copy of x[:, :f_pad] (direction-agnostic).
    xr = x
    shift = f_pad
    while shift < LANE:
        xr = xr + pltpu.roll(xr, shift, axis=1)      # XLU slot, cheap
        shift *= 2

    # SiLU chunk (EUP exp + approx reciprocal).
    silu = xr * pl.reciprocal(1.0 + jnp.exp(-xr), approx=True)

    # Closed-form uniform cubic B-spline blending weights (shared by all groups).
    u = (xr - _KNOTS[0]) * (1.0 / _H)
    m = jnp.floor(u)                 # cell index (as float), 0..10 when in range
    t = u - m                        # local coordinate in [0, 1)
    t2 = t * t
    t3 = t2 * t
    s = 1.0 - t
    wa = t3 * (1.0 / 6.0)                         # basis j == m
    wd = s * s * s * (1.0 / 6.0)                  # basis j == m - 3
    wc = 0.5 * t3 - t2 + (2.0 / 3.0)              # basis j == m - 2
    wb = 1.0 - wa - wc - wd                       # basis j == m - 1 (partition of unity)

    lane = jax.lax.broadcasted_iota(jnp.int32, (1, LANE), 1)
    slot = jax.lax.shift_right_logical(lane, f_pad.bit_length() - 1)   # lane // f_pad

    groups = []
    for g in range(n_groups):
        c = slot + g * reps                       # chunk index per lane
        j = (c - 1).astype(jnp.float32)           # basis index (valid when 1<=c<=8)
        is_silu = (c == 0).astype(jnp.float32)
        is_basis = ((c >= 1) & (c <= N_BASIS)).astype(jnp.float32)
        b = jnp.where(m == j, wa,
            jnp.where(m == j + 1.0, wb,
            jnp.where(m == j + 2.0, wc,
            jnp.where(m == j + 3.0, wd, 0.0))))
        grp = silu * is_silu + b * is_basis       # out-of-range x / unused slots -> 0
        groups.append(grp.astype(jnp.bfloat16))   # cast before concat: half the traffic
    return groups[0] if n_groups == 1 else jnp.concatenate(groups, axis=-1)


def _make_kagin_kernel(gnn_kan_in_dims, head_kan_in_dims, num_classes):
    """gnn_kan_in_dims: per GNN layer, list of in_f of each KANLinear.
    head_kan_in_dims: list of in_f of each head KANLinear."""
    def kernel(*refs):
        x_ref, adj_ref, pool_ref = refs[:3]
        w_refs = refs[3:-1]
        out_ref = refs[-1]

        x = x_ref[...]                            # (N, LANE) f32, zero-padded lanes
        adj = adj_ref[...]                        # (N, N) bf16, A + (1+eps)I folded in
        i = 0
        for layer_dims in gnn_kan_in_dims:
            x = _mxu(adj, x)                      # GINConv aggregation (self term folded)
            for in_f in layer_dims:               # KAN "MLP": one packed-K matmul each
                x = _mxu(_uniform_cubic_features(x, in_f), w_refs[i][...]); i += 1
            # Eval-mode BatchNorm1d folded to scale/shift FMA; Dropout = identity.
            x = x * w_refs[i][...] + w_refs[i + 1][...]; i += 2
        x = _mxu(pool_ref[...], x)                # global_add_pool (one-hot matmul)
        for in_f in head_kan_in_dims:             # head KAN
            x = _mxu(_uniform_cubic_features(x, in_f), w_refs[i][...]); i += 1
        # Lane-dense log_softmax: mask padded class lanes, write full 128 lanes.
        lane = jax.lax.broadcasted_iota(jnp.int32, x.shape, 1)
        logits = jnp.where(lane < num_classes, x, -1e30)
        mx = jnp.max(logits, axis=1, keepdims=True)
        sh = logits - mx
        out_ref[...] = sh - jnp.log(jnp.sum(jnp.exp(sh), axis=1, keepdims=True))
    return kernel


# ----------------------------------------------------------------------------
# Parameter construction (deterministic, synthetic) + packing for the kernel
# ----------------------------------------------------------------------------
def init_kan_linear_params(key, in_f, out_f):
    k1, k2, k3 = jax.random.split(key, 3)
    base_w = jax.random.uniform(k1, (out_f, in_f), jnp.float32, -1.0, 1.0)
    base_w = base_w / jnp.sqrt(float(in_f))
    spline_w = 0.1 * jax.random.uniform(k2, (out_f, in_f, N_BASIS),
                                        jnp.float32, -1.0, 1.0)
    scaler = jax.random.uniform(k3, (out_f, in_f), jnp.float32, 0.5, 1.5)
    return base_w, spline_w, scaler


def pack_kan_weight(base_w, spline_w, scaler, in_f, out_f):
    """Packed [base | scaled-spline] slab matching _uniform_cubic_features layout.
    Row g*128 + slot*f_pad + i pairs with chunk c = g*reps + slot, feature i.
    Shape (n_groups*128, 128) bf16."""
    f_pad, reps, n_groups = _pack_geometry(in_f)
    scaled = spline_w * scaler[:, :, None]                       # scaled_spline_weight
    chunks = [base_w.T] + [scaled[:, :, j].T for j in range(N_BASIS)]  # (in_f, out_f)
    w = jnp.zeros((n_groups * LANE, LANE), jnp.float32)
    for c, ch in enumerate(chunks):
        g, slot = divmod(c, reps)
        r0 = g * LANE + slot * f_pad
        w = w.at[r0:r0 + in_f, :out_f].set(ch)
    return w.astype(jnp.bfloat16)


def init_bn_params(key, dim):
    k1, k2, k3 = jax.random.split(key, 3)
    gamma = jax.random.uniform(k1, (dim,), jnp.float32, 0.5, 1.5)
    beta = 0.1 * jax.random.normal(k2, (dim,), jnp.float32)
    mean = 0.1 * jax.random.normal(k3, (dim,), jnp.float32)
    var = jnp.ones((dim,), jnp.float32)
    return gamma, beta, mean, var


def fold_bn(gamma, beta, mean, var, dim):
    scale = gamma * jax.lax.rsqrt(var + BN_EPS)
    shift = beta - mean * scale
    scale_p = jnp.zeros((1, LANE), jnp.float32).at[0, :dim].set(scale)
    shift_p = jnp.zeros((1, LANE), jnp.float32).at[0, :dim].set(shift)
    return scale_p, shift_p


def init_kagin(key, gnn_layers, num_features, hidden_dim, num_classes, hidden_layers):
    """Returns (flat packed weight list for the kernel, raw params for the reference)."""
    def kan_dims(in_f, out_f):
        return [in_f] + [hidden_dim] * (hidden_layers - 1) + [out_f]

    raw = {"gnn": [], "head": []}
    kernel_weights = []
    for layer in range(gnn_layers):
        dims = kan_dims(num_features if layer == 0 else hidden_dim, hidden_dim)
        kan_params = []
        for a, b in zip(dims[:-1], dims[1:]):
            key, sub = jax.random.split(key)
            p = init_kan_linear_params(sub, a, b)
            kan_params.append(p)
            kernel_weights.append(pack_kan_weight(*p, a, b))
        key, sub = jax.random.split(key)
        bn = init_bn_params(sub, hidden_dim)
        kernel_weights += list(fold_bn(*bn, hidden_dim))
        raw["gnn"].append({"kan": kan_params, "bn": bn})
    dims = kan_dims(hidden_dim, num_classes)
    for a, b in zip(dims[:-1], dims[1:]):
        key, sub = jax.random.split(key)
        p = init_kan_linear_params(sub, a, b)
        raw["head"].append(p)
        kernel_weights.append(pack_kan_weight(*p, a, b))
    return kernel_weights, raw


# ----------------------------------------------------------------------------
# Forward pass: ONE fused pallas_call, jit-wrapped
# ----------------------------------------------------------------------------
def make_kagin_forward(gnn_layers, num_features, hidden_dim, num_classes,
                       hidden_layers, num_graphs):
    gnn_in = [[num_features if l == 0 else hidden_dim] + [hidden_dim] * (hidden_layers - 1)
              for l in range(gnn_layers)]
    head_in = [hidden_dim] * hidden_layers
    kernel = _make_kagin_kernel(gnn_in, head_in, num_classes)

    @jax.jit
    def forward(x, adj_hat, pool_mat, weights):
        n_nodes, nf = x.shape
        x_p = jnp.zeros((n_nodes, LANE), jnp.float32).at[:, :nf].set(x)
        args = (x_p, adj_hat.astype(jnp.bfloat16), pool_mat.astype(jnp.bfloat16), *weights)
        out = pl.pallas_call(
            kernel,
            out_shape=jax.ShapeDtypeStruct((num_graphs, LANE), jnp.float32),
            in_specs=[pl.BlockSpec(memory_space=pltpu.MemorySpace.VMEM)] * len(args),
            out_specs=pl.BlockSpec(memory_space=pltpu.MemorySpace.VMEM),
        )(*args)
        return out[:, :num_classes]                 # lane-dense store, slice outside

    return forward


# ----------------------------------------------------------------------------
# Pure-JAX reference (faithful module structure; Cox-de Boor recursion,
# separate base/spline matmuls, eval-mode BN).  Matmuls mirror the kernel's
# bf16-operand / f32-accumulate numerics so the structural correctness of the
# kernel (packing, closed-form spline, folds) is validated with a tight bound.
# ----------------------------------------------------------------------------
def _bf16dot(a, b):
    return jnp.dot(a.astype(jnp.bfloat16), b.astype(jnp.bfloat16),
                   preferred_element_type=jnp.float32)


def _ref_bsplines(x):
    knots = jnp.asarray(_KNOTS, jnp.float32)
    xb = x[..., None]
    b = ((xb >= knots[:-1]) & (xb < knots[1:])).astype(jnp.float32)
    for k in range(1, SPLINE_ORDER + 1):
        b = ((xb - knots[:-(k + 1)]) / (knots[k:-1] - knots[:-(k + 1)]) * b[..., :-1]
             + (knots[k + 1:] - xb) / (knots[k + 1:] - knots[1:-k]) * b[..., 1:])
    return b                                        # (rows, in_f, N_BASIS)


def _ref_kan_linear(x, base_w, spline_w, scaler):
    silu = x * jax.nn.sigmoid(x)
    bases = _ref_bsplines(x)
    scaled = spline_w * scaler[:, :, None]
    y = _bf16dot(silu, base_w.T)
    y = y + _bf16dot(bases.reshape(x.shape[0], -1),
                     scaled.reshape(scaled.shape[0], -1).T)
    return y


def _ref_forward(x, adj_hat, pool, raw):
    h = x
    for layer in raw["gnn"]:
        h = _bf16dot(adj_hat, h)                    # (1+eps)x_i + sum_j x_j
        for (bw, sw, sc) in layer["kan"]:
            h = _ref_kan_linear(h, bw, sw, sc)
        gamma, beta, mean, var = layer["bn"]
        h = gamma * (h - mean) * jax.lax.rsqrt(var + BN_EPS) + beta
        # Dropout: identity in eval mode.
    h = _bf16dot(pool, h)
    for (bw, sw, sc) in raw["head"]:
        h = _ref_kan_linear(h, bw, sw, sc)
    return jax.nn.log_softmax(h, axis=1)


# ----------------------------------------------------------------------------
# Demo
# ----------------------------------------------------------------------------
if __name__ == "__main__":
    GNN_LAYERS = 2
    NUM_FEATURES = 8
    HIDDEN_DIM = 32
    NUM_CLASSES = 4
    HIDDEN_LAYERS = 2          # -> each KAN has 2 KANLinear layers
    N_NODES = 16
    N_GRAPHS = 2

    key = jax.random.PRNGKey(0)
    kp, kx = jax.random.split(key)
    kernel_weights, raw_params = init_kagin(kp, GNN_LAYERS, NUM_FEATURES,
                                            HIDDEN_DIM, NUM_CLASSES, HIDDEN_LAYERS)

    # Node features, two ring graphs of 8 nodes each, batch assignment.
    x = jax.random.normal(kx, (N_NODES, NUM_FEATURES), jnp.float32)
    src, dst = [], []
    for g in range(N_GRAPHS):
        base = g * 8
        for i in range(8):
            a, b = base + i, base + (i + 1) % 8
            src += [a, b]
            dst += [b, a]
    edge_index = jnp.array([src, dst], dtype=jnp.int32)     # (2, 32)
    batch = jnp.repeat(jnp.arange(N_GRAPHS, dtype=jnp.int32), 8)

    # Glue: sparse edge list -> dense adjacency (messages flow source -> target)
    # with the GIN self-term (1+eps)*I folded in; batch -> one-hot pooling matrix.
    adj = jnp.zeros((N_NODES, N_NODES), jnp.float32).at[
        edge_index[1], edge_index[0]].add(1.0)
    adj_hat = adj + (1.0 + GIN_EPS) * jnp.eye(N_NODES, dtype=jnp.float32)
    pool_mat = (batch[None, :] == jnp.arange(N_GRAPHS)[:, None]).astype(jnp.float32)

    forward = make_kagin_forward(GNN_LAYERS, NUM_FEATURES, HIDDEN_DIM,
                                 NUM_CLASSES, HIDDEN_LAYERS, N_GRAPHS)
    out = jax.block_until_ready(forward(x, adj_hat, pool_mat, kernel_weights))
    ref = _ref_forward(x, adj_hat, pool_mat, raw_params)

    assert out.shape == (N_GRAPHS, NUM_CLASSES)
    assert bool(jnp.all(jnp.isfinite(out)))
    # log_softmax rows must sum to 1 in prob space
    assert bool(jnp.allclose(jnp.sum(jnp.exp(out), axis=1), 1.0, atol=1e-4))
    # Structural correctness vs. the faithful Cox-de-Boor reference (same bf16
    # matmul numerics; remaining delta is approx-reciprocal + accumulation order).
    assert bool(jnp.allclose(out, ref, atol=2e-2, rtol=2e-2))
    print("KERNEL_OK")
</pallas_src>

<mosaic_0001>
module attributes {stable_mosaic.version = 11 : i64} {
  func.func @kernel(%arg0: memref<16x128xf32, #tpu.memory_space<vmem>>, %arg1: memref<16x16xbf16, #tpu.memory_space<vmem>>, %arg2: memref<2x16xbf16, #tpu.memory_space<vmem>>, %arg3: memref<128x128xbf16, #tpu.memory_space<vmem>>, %arg4: memref<384x128xbf16, #tpu.memory_space<vmem>>, %arg5: memref<1x128xf32, #tpu.memory_space<vmem>>, %arg6: memref<1x128xf32, #tpu.memory_space<vmem>>, %arg7: memref<384x128xbf16, #tpu.memory_space<vmem>>, %arg8: memref<384x128xbf16, #tpu.memory_space<vmem>>, %arg9: memref<1x128xf32, #tpu.memory_space<vmem>>, %arg10: memref<1x128xf32, #tpu.memory_space<vmem>>, %arg11: memref<384x128xbf16, #tpu.memory_space<vmem>>, %arg12: memref<384x128xbf16, #tpu.memory_space<vmem>>, %arg13: memref<2x128xf32, #tpu.memory_space<vmem>>) attributes {dimension_semantics = [], scalar_prefetch = 0 : i64, scratch_operands = 0 : i64, tpu.core_type = #tpu.core_type<tc>} {
    %c0 = arith.constant 0 : index
    %c0_0 = arith.constant 0 : index
    %0 = vector.load %arg0[%c0, %c0_0] : memref<16x128xf32, #tpu.memory_space<vmem>>, vector<16x128xf32>
    %c0_1 = arith.constant 0 : index
    %c0_2 = arith.constant 0 : index
    %1 = vector.load %arg1[%c0_1, %c0_2] : memref<16x16xbf16, #tpu.memory_space<vmem>>, vector<16x16xbf16>
    %2 = arith.truncf %0 : vector<16x128xf32> to vector<16x128xbf16>
    %cst = arith.constant dense<0.000000e+00> : vector<16x128xf32>
    %3 = tpu.matmul %1, %2, %cst {dimension_numbers = #tpu.dot_dimension_numbers<[1], [0], [0], [1], [0, 0, 1, 1], [], []>} : vector<16x16xbf16>, vector<16x128xbf16>, vector<16x128xf32> -> vector<16x128xf32>
    %c8_i32 = arith.constant 8 : i32
    %4 = tpu.dynamic_rotate %3 by %c8_i32 dim 1 : vector<16x128xf32>, i32 -> vector<16x128xf32>
    %5 = arith.addf %3, %4 : vector<16x128xf32>
    %c16_i32 = arith.constant 16 : i32
    %6 = tpu.dynamic_rotate %5 by %c16_i32 dim 1 : vector<16x128xf32>, i32 -> vector<16x128xf32>
    %7 = arith.addf %5, %6 : vector<16x128xf32>
    %c32_i32 = arith.constant 32 : i32
    %8 = tpu.dynamic_rotate %7 by %c32_i32 dim 1 : vector<16x128xf32>, i32 -> vector<16x128xf32>
    %9 = arith.addf %7, %8 : vector<16x128xf32>
    %c64_i32 = arith.constant 64 : i32
    %10 = tpu.dynamic_rotate %9 by %c64_i32 dim 1 : vector<16x128xf32>, i32 -> vector<16x128xf32>
    %11 = arith.addf %9, %10 : vector<16x128xf32>
    %cst_3 = arith.constant 0.000000e+00 : f32
    %12 = vector.broadcast %cst_3 : f32 to vector<16x128xf32>
    %13 = arith.subf %12, %11 : vector<16x128xf32>
    %14 = math.exp %13 : vector<16x128xf32>
    %cst_4 = arith.constant 1.000000e+00 : f32
    %15 = vector.broadcast %cst_4 : f32 to vector<16x128xf32>
    %16 = arith.addf %15, %14 : vector<16x128xf32>
    %17 = tpu.reciprocal %16 {approx = true} : vector<16x128xf32> -> vector<16x128xf32>
    %18 = arith.mulf %11, %17 : vector<16x128xf32>
    %cst_5 = arith.constant -2.200000e+00 : f32
    %19 = vector.broadcast %cst_5 : f32 to vector<16x128xf32>
    %20 = arith.subf %11, %19 : vector<16x128xf32>
    %cst_6 = arith.constant 2.500000e+00 : f32
    %21 = vector.broadcast %cst_6 : f32 to vector<16x128xf32>
    %22 = arith.mulf %20, %21 : vector<16x128xf32>
    %23 = math.floor %22 : vector<16x128xf32>
    %24 = arith.subf %22, %23 : vector<16x128xf32>
    %25 = arith.mulf %24, %24 : vector<16x128xf32>
    %26 = arith.mulf %25, %24 : vector<16x128xf32>
    %cst_7 = arith.constant 1.000000e+00 : f32
    %27 = vector.broadcast %cst_7 : f32 to vector<16x128xf32>
    %28 = arith.subf %27, %24 : vector<16x128xf32>
    %cst_8 = arith.constant 0.166666672 : f32
    %29 = vector.broadcast %cst_8 : f32 to vector<16x128xf32>
    %30 = arith.mulf %26, %29 : vector<16x128xf32>
    %31 = arith.mulf %28, %28 : vector<16x128xf32>
    %32 = arith.mulf %31, %28 : vector<16x128xf32>
    %cst_9 = arith.constant 0.166666672 : f32
    %33 = vector.broadcast %cst_9 : f32 to vector<16x128xf32>
    %34 = arith.mulf %32, %33 : vector<16x128xf32>
    %cst_10 = arith.constant 5.000000e-01 : f32
    %35 = vector.broadcast %cst_10 : f32 to vector<16x128xf32>
    %36 = arith.mulf %35, %26 : vector<16x128xf32>
    %37 = arith.subf %36, %25 : vector<16x128xf32>
    %cst_11 = arith.constant 0.666666686 : f32
    %38 = vector.broadcast %cst_11 : f32 to vector<16x128xf32>
    %39 = arith.addf %37, %38 : vector<16x128xf32>
    %cst_12 = arith.constant 1.000000e+00 : f32
    %40 = vector.broadcast %cst_12 : f32 to vector<16x128xf32>
    %41 = arith.subf %40, %30 : vector<16x128xf32>
    %42 = arith.subf %41, %39 : vector<16x128xf32>
    %43 = arith.subf %42, %34 : vector<16x128xf32>
    %44 = tpu.iota {dimensions = array<i32: 1>} : vector<1x128xi32>
    %c3_i32 = arith.constant 3 : i32
    %45 = vector.broadcast %c3_i32 : i32 to vector<1x128xi32>
    %46 = arith.shrui %44, %45 : vector<1x128xi32>
    %c0_i32 = arith.constant 0 : i32
    %47 = vector.broadcast %c0_i32 : i32 to vector<1x128xi32>
    %48 = arith.addi %46, %47 : vector<1x128xi32>
    %c1_i32 = arith.constant 1 : i32
    %49 = vector.broadcast %c1_i32 : i32 to vector<1x128xi32>
    %50 = arith.subi %48, %49 : vector<1x128xi32>
    %51 = arith.sitofp %50 : vector<1x128xi32> to vector<1x128xf32>
    %c0_i32_13 = arith.constant 0 : i32
    %52 = vector.broadcast %c0_i32_13 : i32 to vector<1x128xi32>
    %53 = arith.cmpi eq, %48, %52 : vector<1x128xi32>
    %54 = arith.extui %53 : vector<1x128xi1> to vector<1x128xi32>
    %55 = arith.sitofp %54 : vector<1x128xi32> to vector<1x128xf32>
    %c1_i32_14 = arith.constant 1 : i32
    %56 = vector.broadcast %c1_i32_14 : i32 to vector<1x128xi32>
    %57 = arith.cmpi sge, %48, %56 : vector<1x128xi32>
    %c8_i32_15 = arith.constant 8 : i32
    %58 = vector.broadcast %c8_i32_15 : i32 to vector<1x128xi32>
    %59 = arith.cmpi sle, %48, %58 : vector<1x128xi32>
    %60 = arith.andi %57, %59 : vector<1x128xi1>
    %61 = arith.extui %60 : vector<1x128xi1> to vector<1x128xi32>
    %62 = arith.sitofp %61 : vector<1x128xi32> to vector<1x128xf32>
    %63 = vector.broadcast %51 : vector<1x128xf32> to vector<16x128xf32>
    %64 = arith.cmpf oeq, %23, %63 : vector<16x128xf32>
    %cst_16 = arith.constant 1.000000e+00 : f32
    %65 = vector.broadcast %cst_16 : f32 to vector<1x128xf32>
    %66 = arith.addf %51, %65 : vector<1x128xf32>
    %67 = vector.broadcast %66 : vector<1x128xf32> to vector<16x128xf32>
    %68 = arith.cmpf oeq, %23, %67 : vector<16x128xf32>
    %cst_17 = arith.constant 2.000000e+00 : f32
    %69 = vector.broadcast %cst_17 : f32 to vector<1x128xf32>
    %70 = arith.addf %51, %69 : vector<1x128xf32>
    %71 = vector.broadcast %70 : vector<1x128xf32> to vector<16x128xf32>
    %72 = arith.cmpf oeq, %23, %71 : vector<16x128xf32>
    %cst_18 = arith.constant 3.000000e+00 : f32
    %73 = vector.broadcast %cst_18 : f32 to vector<1x128xf32>
    %74 = arith.addf %51, %73 : vector<1x128xf32>
    %75 = vector.broadcast %74 : vector<1x128xf32> to vector<16x128xf32>
    %76 = arith.cmpf oeq, %23, %75 : vector<16x128xf32>
    %cst_19 = arith.constant 0.000000e+00 : f32
    %77 = vector.broadcast %cst_19 : f32 to vector<16x128xf32>
    %78 = arith.select %76, %34, %77 : vector<16x128xi1>, vector<16x128xf32>
    %79 = arith.select %72, %39, %78 : vector<16x128xi1>, vector<16x128xf32>
    %80 = arith.select %68, %43, %79 : vector<16x128xi1>, vector<16x128xf32>
    %81 = arith.select %64, %30, %80 : vector<16x128xi1>, vector<16x128xf32>
    %82 = vector.broadcast %55 : vector<1x128xf32> to vector<16x128xf32>
    %83 = arith.mulf %18, %82 : vector<16x128xf32>
    %84 = vector.broadcast %62 : vector<1x128xf32> to vector<16x128xf32>
    %85 = arith.mulf %81, %84 : vector<16x128xf32>
    %86 = arith.addf %83, %85 : vector<16x128xf32>
    %87 = arith.truncf %86 : vector<16x128xf32> to vector<16x128xbf16>
    %c0_20 = arith.constant 0 : index
    %c0_21 = arith.constant 0 : index
    %88 = vector.load %arg3[%c0_20, %c0_21] : memref<128x128xbf16, #tpu.memory_space<vmem>>, vector<128x128xbf16>
    %cst_22 = arith.constant dense<0.000000e+00> : vector<16x128xf32>
    %89 = tpu.matmul %87, %88, %cst_22 {dimension_numbers = #tpu.dot_dimension_numbers<[1], [0], [0], [1], [0, 0, 1, 1], [], []>} : vector<16x128xbf16>, vector<128x128xbf16>, vector<16x128xf32> -> vector<16x128xf32>
    %c32_i32_23 = arith.constant 32 : i32
    %90 = tpu.dynamic_rotate %89 by %c32_i32_23 dim 1 : vector<16x128xf32>, i32 -> vector<16x128xf32>
    %91 = arith.addf %89, %90 : vector<16x128xf32>
    %c64_i32_24 = arith.constant 64 : i32
    %92 = tpu.dynamic_rotate %91 by %c64_i32_24 dim 1 : vector<16x128xf32>, i32 -> vector<16x128xf32>
    %93 = arith.addf %91, %92 : vector<16x128xf32>
    %cst_25 = arith.constant 0.000000e+00 : f32
    %94 = vector.broadcast %cst_25 : f32 to vector<16x128xf32>
    %95 = arith.subf %94, %93 : vector<16x128xf32>
    %96 = math.exp %95 : vector<16x128xf32>
    %cst_26 = arith.constant 1.000000e+00 : f32
    %97 = vector.broadcast %cst_26 : f32 to vector<16x128xf32>
    %98 = arith.addf %97, %96 : vector<16x128xf32>
    %99 = tpu.reciprocal %98 {approx = true} : vector<16x128xf32> -> vector<16x128xf32>
    %100 = arith.mulf %93, %99 : vector<16x128xf32>
    %cst_27 = arith.constant -2.200000e+00 : f32
    %101 = vector.broadcast %cst_27 : f32 to vector<16x128xf32>
    %102 = arith.subf %93, %101 : vector<16x128xf32>
    %cst_28 = arith.constant 2.500000e+00 : f32
    %103 = vector.broadcast %cst_28 : f32 to vector<16x128xf32>
    %104 = arith.mulf %102, %103 : vector<16x128xf32>
    %105 = math.floor %104 : vector<16x128xf32>
    %106 = arith.subf %104, %105 : vector<16x128xf32>
    %107 = arith.mulf %106, %106 : vector<16x128xf32>
    %108 = arith.mulf %107, %106 : vector<16x128xf32>
    %cst_29 = arith.constant 1.000000e+00 : f32
    %109 = vector.broadcast %cst_29 : f32 to vector<16x128xf32>
    %110 = arith.subf %109, %106 : vector<16x128xf32>
    %cst_30 = arith.constant 0.166666672 : f32
    %111 = vector.broadcast %cst_30 : f32 to vector<16x128xf32>
    %112 = arith.mulf %108, %111 : vector<16x128xf32>
    %113 = arith.mulf %110, %110 : vector<16x128xf32>
    %114 = arith.mulf %113, %110 : vector<16x128xf32>
    %cst_31 = arith.constant 0.166666672 : f32
    %115 = vector.broadcast %cst_31 : f32 to vector<16x128xf32>
    %116 = arith.mulf %114, %115 : vector<16x128xf32>
    %cst_32 = arith.constant 5.000000e-01 : f32
    %117 = vector.broadcast %cst_32 : f32 to vector<16x128xf32>
    %118 = arith.mulf %117, %108 : vector<16x128xf32>
    %119 = arith.subf %118, %107 : vector<16x128xf32>
    %cst_33 = arith.constant 0.666666686 : f32
    %120 = vector.broadcast %cst_33 : f32 to vector<16x128xf32>
    %121 = arith.addf %119, %120 : vector<16x128xf32>
    %cst_34 = arith.constant 1.000000e+00 : f32
    %122 = vector.broadcast %cst_34 : f32 to vector<16x128xf32>
    %123 = arith.subf %122, %112 : vector<16x128xf32>
    %124 = arith.subf %123, %121 : vector<16x128xf32>
    %125 = arith.subf %124, %116 : vector<16x128xf32>
    %126 = tpu.iota {dimensions = array<i32: 1>} : vector<1x128xi32>
    %c5_i32 = arith.constant 5 : i32
    %127 = vector.broadcast %c5_i32 : i32 to vector<1x128xi32>
    %128 = arith.shrui %126, %127 : vector<1x128xi32>
    %c0_i32_35 = arith.constant 0 : i32
    %129 = vector.broadcast %c0_i32_35 : i32 to vector<1x128xi32>
    %130 = arith.addi %128, %129 : vector<1x128xi32>
    %c1_i32_36 = arith.constant 1 : i32
    %131 = vector.broadcast %c1_i32_36 : i32 to vector<1x128xi32>
    %132 = arith.subi %130, %131 : vector<1x128xi32>
    %133 = arith.sitofp %132 : vector<1x128xi32> to vector<1x128xf32>
    %c0_i32_37 = arith.constant 0 : i32
    %134 = vector.broadcast %c0_i32_37 : i32 to vector<1x128xi32>
    %135 = arith.cmpi eq, %130, %134 : vector<1x128xi32>
    %136 = arith.extui %135 : vector<1x128xi1> to vector<1x128xi32>
    %137 = arith.sitofp %136 : vector<1x128xi32> to vector<1x128xf32>
    %c1_i32_38 = arith.constant 1 : i32
    %138 = vector.broadcast %c1_i32_38 : i32 to vector<1x128xi32>
    %139 = arith.cmpi sge, %130, %138 : vector<1x128xi32>
    %c8_i32_39 = arith.constant 8 : i32
    %140 = vector.broadcast %c8_i32_39 : i32 to vector<1x128xi32>
    %141 = arith.cmpi sle, %130, %140 : vector<1x128xi32>
    %142 = arith.andi %139, %141 : vector<1x128xi1>
    %143 = arith.extui %142 : vector<1x128xi1> to vector<1x128xi32>
    %144 = arith.sitofp %143 : vector<1x128xi32> to vector<1x128xf32>
    %145 = vector.broadcast %133 : vector<1x128xf32> to vector<16x128xf32>
    %146 = arith.cmpf oeq, %105, %145 : vector<16x128xf32>
    %cst_40 = arith.constant 1.000000e+00 : f32
    %147 = vector.broadcast %cst_40 : f32 to vector<1x128xf32>
    %148 = arith.addf %133, %147 : vector<1x128xf32>
    %149 = vector.broadcast %148 : vector<1x128xf32> to vector<16x128xf32>
    %150 = arith.cmpf oeq, %105, %149 : vector<16x128xf32>
    %cst_41 = arith.constant 2.000000e+00 : f32
    %151 = vector.broadcast %cst_41 : f32 to vector<1x128xf32>
    %152 = arith.addf %133, %151 : vector<1x128xf32>
    %153 = vector.broadcast %152 : vector<1x128xf32> to vector<16x128xf32>
    %154 = arith.cmpf oeq, %105, %153 : vector<16x128xf32>
    %cst_42 = arith.constant 3.000000e+00 : f32
    %155 = vector.broadcast %cst_42 : f32 to vector<1x128xf32>
    %156 = arith.addf %133, %155 : vector<1x128xf32>
    %157 = vector.broadcast %156 : vector<1x128xf32> to vector<16x128xf32>
    %158 = arith.cmpf oeq, %105, %157 : vector<16x128xf32>
    %cst_43 = arith.constant 0.000000e+00 : f32
    %159 = vector.broadcast %cst_43 : f32 to vector<16x128xf32>
    %160 = arith.select %158, %116, %159 : vector<16x128xi1>, vector<16x128xf32>
    %161 = arith.select %154, %121, %160 : vector<16x128xi1>, vector<16x128xf32>
    %162 = arith.select %150, %125, %161 : vector<16x128xi1>, vector<16x128xf32>
    %163 = arith.select %146, %112, %162 : vector<16x128xi1>, vector<16x128xf32>
    %164 = vector.broadcast %137 : vector<1x128xf32> to vector<16x128xf32>
    %165 = arith.mulf %100, %164 : vector<16x128xf32>
    %166 = vector.broadcast %144 : vector<1x128xf32> to vector<16x128xf32>
    %167 = arith.mulf %163, %166 : vector<16x128xf32>
    %168 = arith.addf %165, %167 : vector<16x128xf32>
    %169 = arith.truncf %168 : vector<16x128xf32> to vector<16x128xbf16>
    %c4_i32 = arith.constant 4 : i32
    %170 = vector.broadcast %c4_i32 : i32 to vector<1x128xi32>
    %171 = arith.addi %128, %170 : vector<1x128xi32>
    %c1_i32_44 = arith.constant 1 : i32
    %172 = vector.broadcast %c1_i32_44 : i32 to vector<1x128xi32>
    %173 = arith.subi %171, %172 : vector<1x128xi32>
    %174 = arith.sitofp %173 : vector<1x128xi32> to vector<1x128xf32>
    %c0_i32_45 = arith.constant 0 : i32
    %175 = vector.broadcast %c0_i32_45 : i32 to vector<1x128xi32>
    %176 = arith.cmpi eq, %171, %175 : vector<1x128xi32>
    %177 = arith.extui %176 : vector<1x128xi1> to vector<1x128xi32>
    %178 = arith.sitofp %177 : vector<1x128xi32> to vector<1x128xf32>
    %c1_i32_46 = arith.constant 1 : i32
    %179 = vector.broadcast %c1_i32_46 : i32 to vector<1x128xi32>
    %180 = arith.cmpi sge, %171, %179 : vector<1x128xi32>
    %c8_i32_47 = arith.constant 8 : i32
    %181 = vector.broadcast %c8_i32_47 : i32 to vector<1x128xi32>
    %182 = arith.cmpi sle, %171, %181 : vector<1x128xi32>
    %183 = arith.andi %180, %182 : vector<1x128xi1>
    %184 = arith.extui %183 : vector<1x128xi1> to vector<1x128xi32>
    %185 = arith.sitofp %184 : vector<1x128xi32> to vector<1x128xf32>
    %186 = vector.broadcast %174 : vector<1x128xf32> to vector<16x128xf32>
    %187 = arith.cmpf oeq, %105, %186 : vector<16x128xf32>
    %cst_48 = arith.constant 1.000000e+00 : f32
    %188 = vector.broadcast %cst_48 : f32 to vector<1x128xf32>
    %189 = arith.addf %174, %188 : vector<1x128xf32>
    %190 = vector.broadcast %189 : vector<1x128xf32> to vector<16x128xf32>
    %191 = arith.cmpf oeq, %105, %190 : vector<16x128xf32>
    %cst_49 = arith.constant 2.000000e+00 : f32
    %192 = vector.broadcast %cst_49 : f32 to vector<1x128xf32>
    %193 = arith.addf %174, %192 : vector<1x128xf32>
    %194 = vector.broadcast %193 : vector<1x128xf32> to vector<16x128xf32>
    %195 = arith.cmpf oeq, %105, %194 : vector<16x128xf32>
    %cst_50 = arith.constant 3.000000e+00 : f32
    %196 = vector.broadcast %cst_50 : f32 to vector<1x128xf32>
    %197 = arith.addf %174, %196 : vector<1x128xf32>
    %198 = vector.broadcast %197 : vector<1x128xf32> to vector<16x128xf32>
    %199 = arith.cmpf oeq, %105, %198 : vector<16x128xf32>
    %cst_51 = arith.constant 0.000000e+00 : f32
    %200 = vector.broadcast %cst_51 : f32 to vector<16x128xf32>
    %201 = arith.select %199, %116, %200 : vector<16x128xi1>, vector<16x128xf32>
    %202 = arith.select %195, %121, %201 : vector<16x128xi1>, vector<16x128xf32>
    %203 = arith.select %191, %125, %202 : vector<16x128xi1>, vector<16x128xf32>
    %204 = arith.select %187, %112, %203 : vector<16x128xi1>, vector<16x128xf32>
    %205 = vector.broadcast %178 : vector<1x128xf32> to vector<16x128xf32>
    %206 = arith.mulf %100, %205 : vector<16x128xf32>
    %207 = vector.broadcast %185 : vector<1x128xf32> to vector<16x128xf32>
    %208 = arith.mulf %204, %207 : vector<16x128xf32>
    %209 = arith.addf %206, %208 : vector<16x128xf32>
    %210 = arith.truncf %209 : vector<16x128xf32> to vector<16x128xbf16>
    %c8_i32_52 = arith.constant 8 : i32
    %211 = vector.broadcast %c8_i32_52 : i32 to vector<1x128xi32>
    %212 = arith.addi %128, %211 : vector<1x128xi32>
    %c1_i32_53 = arith.constant 1 : i32
    %213 = vector.broadcast %c1_i32_53 : i32 to vector<1x128xi32>
    %214 = arith.subi %212, %213 : vector<1x128xi32>
    %215 = arith.sitofp %214 : vector<1x128xi32> to vector<1x128xf32>
    %c0_i32_54 = arith.constant 0 : i32
    %216 = vector.broadcast %c0_i32_54 : i32 to vector<1x128xi32>
    %217 = arith.cmpi eq, %212, %216 : vector<1x128xi32>
    %218 = arith.extui %217 : vector<1x128xi1> to vector<1x128xi32>
    %219 = arith.sitofp %218 : vector<1x128xi32> to vector<1x128xf32>
    %c1_i32_55 = arith.constant 1 : i32
    %220 = vector.broadcast %c1_i32_55 : i32 to vector<1x128xi32>
    %221 = arith.cmpi sge, %212, %220 : vector<1x128xi32>
    %c8_i32_56 = arith.constant 8 : i32
    %222 = vector.broadcast %c8_i32_56 : i32 to vector<1x128xi32>
    %223 = arith.cmpi sle, %212, %222 : vector<1x128xi32>
    %224 = arith.andi %221, %223 : vector<1x128xi1>
    %225 = arith.extui %224 : vector<1x128xi1> to vector<1x128xi32>
    %226 = arith.sitofp %225 : vector<1x128xi32> to vector<1x128xf32>
    %227 = vector.broadcast %215 : vector<1x128xf32> to vector<16x128xf32>
    %228 = arith.cmpf oeq, %105, %227 : vector<16x128xf32>
    %cst_57 = arith.constant 1.000000e+00 : f32
    %229 = vector.broadcast %cst_57 : f32 to vector<1x128xf32>
    %230 = arith.addf %215, %229 : vector<1x128xf32>
    %231 = vector.broadcast %230 : vector<1x128xf32> to vector<16x128xf32>
    %232 = arith.cmpf oeq, %105, %231 : vector<16x128xf32>
    %cst_58 = arith.constant 2.000000e+00 : f32
    %233 = vector.broadcast %cst_58 : f32 to vector<1x128xf32>
    %234 = arith.addf %215, %233 : vector<1x128xf32>
    %235 = vector.broadcast %234 : vector<1x128xf32> to vector<16x128xf32>
    %236 = arith.cmpf oeq, %105, %235 : vector<16x128xf32>
    %cst_59 = arith.constant 3.000000e+00 : f32
    %237 = vector.broadcast %cst_59 : f32 to vector<1x128xf32>
    %238 = arith.addf %215, %237 : vector<1x128xf32>
    %239 = vector.broadcast %238 : vector<1x128xf32> to vector<16x128xf32>
    %240 = arith.cmpf oeq, %105, %239 : vector<16x128xf32>
    %cst_60 = arith.constant 0.000000e+00 : f32
    %241 = vector.broadcast %cst_60 : f32 to vector<16x128xf32>
    %242 = arith.select %240, %116, %241 : vector<16x128xi1>, vector<16x128xf32>
    %243 = arith.select %236, %121, %242 : vector<16x128xi1>, vector<16x128xf32>
    %244 = arith.select %232, %125, %243 : vector<16x128xi1>, vector<16x128xf32>
    %245 = arith.select %228, %112, %244 : vector<16x128xi1>, vector<16x128xf32>
    %246 = vector.broadcast %219 : vector<1x128xf32> to vector<16x128xf32>
    %247 = arith.mulf %100, %246 : vector<16x128xf32>
    %248 = vector.broadcast %226 : vector<1x128xf32> to vector<16x128xf32>
    %249 = arith.mulf %245, %248 : vector<16x128xf32>
    %250 = arith.addf %247, %249 : vector<16x128xf32>
    %251 = arith.truncf %250 : vector<16x128xf32> to vector<16x128xbf16>
    %252 = tpu.concatenate %169, %210, %251 in 1 : vector<16x128xbf16>, vector<16x128xbf16>, vector<16x128xbf16> -> vector<16x384xbf16>
    %c0_61 = arith.constant 0 : index
    %c0_62 = arith.constant 0 : index
    %253 = vector.load %arg4[%c0_61, %c0_62] : memref<384x128xbf16, #tpu.memory_space<vmem>>, vector<384x128xbf16>
    %cst_63 = arith.constant dense<0.000000e+00> : vector<16x128xf32>
    %254 = tpu.matmul %252, %253, %cst_63 {dimension_numbers = #tpu.dot_dimension_numbers<[1], [0], [0], [1], [0, 0, 1, 1], [], []>} : vector<16x384xbf16>, vector<384x128xbf16>, vector<16x128xf32> -> vector<16x128xf32>
    %c0_64 = arith.constant 0 : index
    %c0_65 = arith.constant 0 : index
    %255 = vector.load %arg5[%c0_64, %c0_65] : memref<1x128xf32, #tpu.memory_space<vmem>>, vector<1x128xf32>
    %256 = vector.broadcast %255 : vector<1x128xf32> to vector<16x128xf32>
    %257 = arith.mulf %254, %256 : vector<16x128xf32>
    %c0_66 = arith.constant 0 : index
    %c0_67 = arith.constant 0 : index
    %258 = vector.load %arg6[%c0_66, %c0_67] : memref<1x128xf32, #tpu.memory_space<vmem>>, vector<1x128xf32>
    %259 = vector.broadcast %258 : vector<1x128xf32> to vector<16x128xf32>
    %260 = arith.addf %257, %259 : vector<16x128xf32>
    %261 = arith.truncf %260 : vector<16x128xf32> to vector<16x128xbf16>
    %cst_68 = arith.constant dense<0.000000e+00> : vector<16x128xf32>
    %262 = tpu.matmul %1, %261, %cst_68 {dimension_numbers = #tpu.dot_dimension_numbers<[1], [0], [0], [1], [0, 0, 1, 1], [], []>} : vector<16x16xbf16>, vector<16x128xbf16>, vector<16x128xf32> -> vector<16x128xf32>
    %c32_i32_69 = arith.constant 32 : i32
    %263 = tpu.dynamic_rotate %262 by %c32_i32_69 dim 1 : vector<16x128xf32>, i32 -> vector<16x128xf32>
    %264 = arith.addf %262, %263 : vector<16x128xf32>
    %c64_i32_70 = arith.constant 64 : i32
    %265 = tpu.dynamic_rotate %264 by %c64_i32_70 dim 1 : vector<16x128xf32>, i32 -> vector<16x128xf32>
    %266 = arith.addf %264, %265 : vector<16x128xf32>
    %cst_71 = arith.constant 0.000000e+00 : f32
    %267 = vector.broadcast %cst_71 : f32 to vector<16x128xf32>
    %268 = arith.subf %267, %266 : vector<16x128xf32>
    %269 = math.exp %268 : vector<16x128xf32>
    %cst_72 = arith.constant 1.000000e+00 : f32
    %270 = vector.broadcast %cst_72 : f32 to vector<16x128xf32>
    %271 = arith.addf %270, %269 : vector<16x128xf32>
    %272 = tpu.reciprocal %271 {approx = true} : vector<16x128xf32> -> vector<16x128xf32>
    %273 = arith.mulf %266, %272 : vector<16x128xf32>
    %cst_73 = arith.constant -2.200000e+00 : f32
    %274 = vector.broadcast %cst_73 : f32 to vector<16x128xf32>
    %275 = arith.subf %266, %274 : vector<16x128xf32>
    %cst_74 = arith.constant 2.500000e+00 : f32
    %276 = vector.broadcast %cst_74 : f32 to vector<16x128xf32>
    %277 = arith.mulf %275, %276 : vector<16x128xf32>
    %278 = math.floor %277 : vector<16x128xf32>
    %279 = arith.subf %277, %278 : vector<16x128xf32>
    %280 = arith.mulf %279, %279 : vector<16x128xf32>
    %281 = arith.mulf %280, %279 : vector<16x128xf32>
    %cst_75 = arith.constant 1.000000e+00 : f32
    %282 = vector.broadcast %cst_75 : f32 to vector<16x128xf32>
    %283 = arith.subf %282, %279 : vector<16x128xf32>
    %cst_76 = arith.constant 0.166666672 : f32
    %284 = vector.broadcast %cst_76 : f32 to vector<16x128xf32>
    %285 = arith.mulf %281, %284 : vector<16x128xf32>
    %286 = arith.mulf %283, %283 : vector<16x128xf32>
    %287 = arith.mulf %286, %283 : vector<16x128xf32>
    %cst_77 = arith.constant 0.166666672 : f32
    %288 = vector.broadcast %cst_77 : f32 to vector<16x128xf32>
    %289 = arith.mulf %287, %288 : vector<16x128xf32>
    %cst_78 = arith.constant 5.000000e-01 : f32
    %290 = vector.broadcast %cst_78 : f32 to vector<16x128xf32>
    %291 = arith.mulf %290, %281 : vector<16x128xf32>
    %292 = arith.subf %291, %280 : vector<16x128xf32>
    %cst_79 = arith.constant 0.666666686 : f32
    %293 = vector.broadcast %cst_79 : f32 to vector<16x128xf32>
    %294 = arith.addf %292, %293 : vector<16x128xf32>
    %cst_80 = arith.constant 1.000000e+00 : f32
    %295 = vector.broadcast %cst_80 : f32 to vector<16x128xf32>
    %296 = arith.subf %295, %285 : vector<16x128xf32>
    %297 = arith.subf %296, %294 : vector<16x128xf32>
    %298 = arith.subf %297, %289 : vector<16x128xf32>
    %299 = tpu.iota {dimensions = array<i32: 1>} : vector<1x128xi32>
    %c5_i32_81 = arith.constant 5 : i32
    %300 = vector.broadcast %c5_i32_81 : i32 to vector<1x128xi32>
    %301 = arith.shrui %299, %300 : vector<1x128xi32>
    %c0_i32_82 = arith.constant 0 : i32
    %302 = vector.broadcast %c0_i32_82 : i32 to vector<1x128xi32>
    %303 = arith.addi %301, %302 : vector<1x128xi32>
    %c1_i32_83 = arith.constant 1 : i32
    %304 = vector.broadcast %c1_i32_83 : i32 to vector<1x128xi32>
    %305 = arith.subi %303, %304 : vector<1x128xi32>
    %306 = arith.sitofp %305 : vector<1x128xi32> to vector<1x128xf32>
    %c0_i32_84 = arith.constant 0 : i32
    %307 = vector.broadcast %c0_i32_84 : i32 to vector<1x128xi32>
    %308 = arith.cmpi eq, %303, %307 : vector<1x128xi32>
    %309 = arith.extui %308 : vector<1x128xi1> to vector<1x128xi32>
    %310 = arith.sitofp %309 : vector<1x128xi32> to vector<1x128xf32>
    %c1_i32_85 = arith.constant 1 : i32
    %311 = vector.broadcast %c1_i32_85 : i32 to vector<1x128xi32>
    %312 = arith.cmpi sge, %303, %311 : vector<1x128xi32>
    %c8_i32_86 = arith.constant 8 : i32
    %313 = vector.broadcast %c8_i32_86 : i32 to vector<1x128xi32>
    %314 = arith.cmpi sle, %303, %313 : vector<1x128xi32>
    %315 = arith.andi %312, %314 : vector<1x128xi1>
    %316 = arith.extui %315 : vector<1x128xi1> to vector<1x128xi32>
    %317 = arith.sitofp %316 : vector<1x128xi32> to vector<1x128xf32>
    %318 = vector.broadcast %306 : vector<1x128xf32> to vector<16x128xf32>
    %319 = arith.cmpf oeq, %278, %318 : vector<16x128xf32>
    %cst_87 = arith.constant 1.000000e+00 : f32
    %320 = vector.broadcast %cst_87 : f32 to vector<1x128xf32>
    %321 = arith.addf %306, %320 : vector<1x128xf32>
    %322 = vector.broadcast %321 : vector<1x128xf32> to vector<16x128xf32>
    %323 = arith.cmpf oeq, %278, %322 : vector<16x128xf32>
    %cst_88 = arith.constant 2.000000e+00 : f32
    %324 = vector.broadcast %cst_88 : f32 to vector<1x128xf32>
    %325 = arith.addf %306, %324 : vector<1x128xf32>
    %326 = vector.broadcast %325 : vector<1x128xf32> to vector<16x128xf32>
    %327 = arith.cmpf oeq, %278, %326 : vector<16x128xf32>
    %cst_89 = arith.constant 3.000000e+00 : f32
    %328 = vector.broadcast %cst_89 : f32 to vector<1x128xf32>
    %329 = arith.addf %306, %328 : vector<1x128xf32>
    %330 = vector.broadcast %329 : vector<1x128xf32> to vector<16x128xf32>
    %331 = arith.cmpf oeq, %278, %330 : vector<16x128xf32>
    %cst_90 = arith.constant 0.000000e+00 : f32
    %332 = vector.broadcast %cst_90 : f32 to vector<16x128xf32>
    %333 = arith.select %331, %289, %332 : vector<16x128xi1>, vector<16x128xf32>
    %334 = arith.select %327, %294, %333 : vector<16x128xi1>, vector<16x128xf32>
    %335 = arith.select %323, %298, %334 : vector<16x128xi1>, vector<16x128xf32>
    %336 = arith.select %319, %285, %335 : vector<16x128xi1>, vector<16x128xf32>
    %337 = vector.broadcast %310 : vector<1x128xf32> to vector<16x128xf32>
    %338 = arith.mulf %273, %337 : vector<16x128xf32>
    %339 = vector.broadcast %317 : vector<1x128xf32> to vector<16x128xf32>
    %340 = arith.mulf %336, %339 : vector<16x128xf32>
    %341 = arith.addf %338, %340 : vector<16x128xf32>
    %342 = arith.truncf %341 : vector<16x128xf32> to vector<16x128xbf16>
    %c4_i32_91 = arith.constant 4 : i32
    %343 = vector.broadcast %c4_i32_91 : i32 to vector<1x128xi32>
    %344 = arith.addi %301, %343 : vector<1x128xi32>
    %c1_i32_92 = arith.constant 1 : i32
    %345 = vector.broadcast %c1_i32_92 : i32 to vector<1x128xi32>
    %346 = arith.subi %344, %345 : vector<1x128xi32>
    %347 = arith.sitofp %346 : vector<1x128xi32> to vector<1x128xf32>
    %c0_i32_93 = arith.constant 0 : i32
    %348 = vector.broadcast %c0_i32_93 : i32 to vector<1x128xi32>
    %349 = arith.cmpi eq, %344, %348 : vector<1x128xi32>
    %350 = arith.extui %349 : vector<1x128xi1> to vector<1x128xi32>
    %351 = arith.sitofp %350 : vector<1x128xi32> to vector<1x128xf32>
    %c1_i32_94 = arith.constant 1 : i32
    %352 = vector.broadcast %c1_i32_94 : i32 to vector<1x128xi32>
    %353 = arith.cmpi sge, %344, %352 : vector<1x128xi32>
    %c8_i32_95 = arith.constant 8 : i32
    %354 = vector.broadcast %c8_i32_95 : i32 to vector<1x128xi32>
    %355 = arith.cmpi sle, %344, %354 : vector<1x128xi32>
    %356 = arith.andi %353, %355 : vector<1x128xi1>
    %357 = arith.extui %356 : vector<1x128xi1> to vector<1x128xi32>
    %358 = arith.sitofp %357 : vector<1x128xi32> to vector<1x128xf32>
    %359 = vector.broadcast %347 : vector<1x128xf32> to vector<16x128xf32>
    %360 = arith.cmpf oeq, %278, %359 : vector<16x128xf32>
    %cst_96 = arith.constant 1.000000e+00 : f32
    %361 = vector.broadcast %cst_96 : f32 to vector<1x128xf32>
    %362 = arith.addf %347, %361 : vector<1x128xf32>
    %363 = vector.broadcast %362 : vector<1x128xf32> to vector<16x128xf32>
    %364 = arith.cmpf oeq, %278, %363 : vector<16x128xf32>
    %cst_97 = arith.constant 2.000000e+00 : f32
    %365 = vector.broadcast %cst_97 : f32 to vector<1x128xf32>
    %366 = arith.addf %347, %365 : vector<1x128xf32>
    %367 = vector.broadcast %366 : vector<1x128xf32> to vector<16x128xf32>
    %368 = arith.cmpf oeq, %278, %367 : vector<16x128xf32>
    %cst_98 = arith.constant 3.000000e+00 : f32
    %369 = vector.broadcast %cst_98 : f32 to vector<1x128xf32>
    %370 = arith.addf %347, %369 : vector<1x128xf32>
    %371 = vector.broadcast %370 : vector<1x128xf32> to vector<16x128xf32>
    %372 = arith.cmpf oeq, %278, %371 : vector<16x128xf32>
    %cst_99 = arith.constant 0.000000e+00 : f32
    %373 = vector.broadcast %cst_99 : f32 to vector<16x128xf32>
    %374 = arith.select %372, %289, %373 : vector<16x128xi1>, vector<16x128xf32>
    %375 = arith.select %368, %294, %374 : vector<16x128xi1>, vector<16x128xf32>
    %376 = arith.select %364, %298, %375 : vector<16x128xi1>, vector<16x128xf32>
    %377 = arith.select %360, %285, %376 : vector<16x128xi1>, vector<16x128xf32>
    %378 = vector.broadcast %351 : vector<1x128xf32> to vector<16x128xf32>
    %379 = arith.mulf %273, %378 : vector<16x128xf32>
    %380 = vector.broadcast %358 : vector<1x128xf32> to vector<16x128xf32>
    %381 = arith.mulf %377, %380 : vector<16x128xf32>
    %382 = arith.addf %379, %381 : vector<16x128xf32>
    %383 = arith.truncf %382 : vector<16x128xf32> to vector<16x128xbf16>
    %c8_i32_100 = arith.constant 8 : i32
    %384 = vector.broadcast %c8_i32_100 : i32 to vector<1x128xi32>
    %385 = arith.addi %301, %384 : vector<1x128xi32>
    %c1_i32_101 = arith.constant 1 : i32
    %386 = vector.broadcast %c1_i32_101 : i32 to vector<1x128xi32>
    %387 = arith.subi %385, %386 : vector<1x128xi32>
    %388 = arith.sitofp %387 : vector<1x128xi32> to vector<1x128xf32>
    %c0_i32_102 = arith.constant 0 : i32
    %389 = vector.broadcast %c0_i32_102 : i32 to vector<1x128xi32>
    %390 = arith.cmpi eq, %385, %389 : vector<1x128xi32>
    %391 = arith.extui %390 : vector<1x128xi1> to vector<1x128xi32>
    %392 = arith.sitofp %391 : vector<1x128xi32> to vector<1x128xf32>
    %c1_i32_103 = arith.constant 1 : i32
    %393 = vector.broadcast %c1_i32_103 : i32 to vector<1x128xi32>
    %394 = arith.cmpi sge, %385, %393 : vector<1x128xi32>
    %c8_i32_104 = arith.constant 8 : i32
    %395 = vector.broadcast %c8_i32_104 : i32 to vector<1x128xi32>
    %396 = arith.cmpi sle, %385, %395 : vector<1x128xi32>
    %397 = arith.andi %394, %396 : vector<1x128xi1>
    %398 = arith.extui %397 : vector<1x128xi1> to vector<1x128xi32>
    %399 = arith.sitofp %398 : vector<1x128xi32> to vector<1x128xf32>
    %400 = vector.broadcast %388 : vector<1x128xf32> to vector<16x128xf32>
    %401 = arith.cmpf oeq, %278, %400 : vector<16x128xf32>
    %cst_105 = arith.constant 1.000000e+00 : f32
    %402 = vector.broadcast %cst_105 : f32 to vector<1x128xf32>
    %403 = arith.addf %388, %402 : vector<1x128xf32>
    %404 = vector.broadcast %403 : vector<1x128xf32> to vector<16x128xf32>
    %405 = arith.cmpf oeq, %278, %404 : vector<16x128xf32>
    %cst_106 = arith.constant 2.000000e+00 : f32
    %406 = vector.broadcast %cst_106 : f32 to vector<1x128xf32>
    %407 = arith.addf %388, %406 : vector<1x128xf32>
    %408 = vector.broadcast %407 : vector<1x128xf32> to vector<16x128xf32>
    %409 = arith.cmpf oeq, %278, %408 : vector<16x128xf32>
    %cst_107 = arith.constant 3.000000e+00 : f32
    %410 = vector.broadcast %cst_107 : f32 to vector<1x128xf32>
    %411 = arith.addf %388, %410 : vector<1x128xf32>
    %412 = vector.broadcast %411 : vector<1x128xf32> to vector<16x128xf32>
    %413 = arith.cmpf oeq, %278, %412 : vector<16x128xf32>
    %cst_108 = arith.constant 0.000000e+00 : f32
    %414 = vector.broadcast %cst_108 : f32 to vector<16x128xf32>
    %415 = arith.select %413, %289, %414 : vector<16x128xi1>, vector<16x128xf32>
    %416 = arith.select %409, %294, %415 : vector<16x128xi1>, vector<16x128xf32>
    %417 = arith.select %405, %298, %416 : vector<16x128xi1>, vector<16x128xf32>
    %418 = arith.select %401, %285, %417 : vector<16x128xi1>, vector<16x128xf32>
    %419 = vector.broadcast %392 : vector<1x128xf32> to vector<16x128xf32>
    %420 = arith.mulf %273, %419 : vector<16x128xf32>
    %421 = vector.broadcast %399 : vector<1x128xf32> to vector<16x128xf32>
    %422 = arith.mulf %418, %421 : vector<16x128xf32>
    %423 = arith.addf %420, %422 : vector<16x128xf32>
    %424 = arith.truncf %423 : vector<16x128xf32> to vector<16x128xbf16>
    %425 = tpu.concatenate %342, %383, %424 in 1 : vector<16x128xbf16>, vector<16x128xbf16>, vector<16x128xbf16> -> vector<16x384xbf16>
    %c0_109 = arith.constant 0 : index
    %c0_110 = arith.constant 0 : index
    %426 = vector.load %arg7[%c0_109, %c0_110] : memref<384x128xbf16, #tpu.memory_space<vmem>>, vector<384x128xbf16>
    %cst_111 = arith.constant dense<0.000000e+00> : vector<16x128xf32>
    %427 = tpu.matmul %425, %426, %cst_111 {dimension_numbers = #tpu.dot_dimension_numbers<[1], [0], [0], [1], [0, 0, 1, 1], [], []>} : vector<16x384xbf16>, vector<384x128xbf16>, vector<16x128xf32> -> vector<16x128xf32>
    %c32_i32_112 = arith.constant 32 : i32
    %428 = tpu.dynamic_rotate %427 by %c32_i32_112 dim 1 : vector<16x128xf32>, i32 -> vector<16x128xf32>
    %429 = arith.addf %427, %428 : vector<16x128xf32>
    %c64_i32_113 = arith.constant 64 : i32
    %430 = tpu.dynamic_rotate %429 by %c64_i32_113 dim 1 : vector<16x128xf32>, i32 -> vector<16x128xf32>
    %431 = arith.addf %429, %430 : vector<16x128xf32>
    %cst_114 = arith.constant 0.000000e+00 : f32
    %432 = vector.broadcast %cst_114 : f32 to vector<16x128xf32>
    %433 = arith.subf %432, %431 : vector<16x128xf32>
    %434 = math.exp %433 : vector<16x128xf32>
    %cst_115 = arith.constant 1.000000e+00 : f32
    %435 = vector.broadcast %cst_115 : f32 to vector<16x128xf32>
    %436 = arith.addf %435, %434 : vector<16x128xf32>
    %437 = tpu.reciprocal %436 {approx = true} : vector<16x128xf32> -> vector<16x128xf32>
    %438 = arith.mulf %431, %437 : vector<16x128xf32>
    %cst_116 = arith.constant -2.200000e+00 : f32
    %439 = vector.broadcast %cst_116 : f32 to vector<16x128xf32>
    %440 = arith.subf %431, %439 : vector<16x128xf32>
    %cst_117 = arith.constant 2.500000e+00 : f32
    %441 = vector.broadcast %cst_117 : f32 to vector<16x128xf32>
    %442 = arith.mulf %440, %441 : vector<16x128xf32>
    %443 = math.floor %442 : vector<16x128xf32>
    %444 = arith.subf %442, %443 : vector<16x128xf32>
    %445 = arith.mulf %444, %444 : vector<16x128xf32>
    %446 = arith.mulf %445, %444 : vector<16x128xf32>
    %cst_118 = arith.constant 1.000000e+00 : f32
    %447 = vector.broadcast %cst_118 : f32 to vector<16x128xf32>
    %448 = arith.subf %447, %444 : vector<16x128xf32>
    %cst_119 = arith.constant 0.166666672 : f32
    %449 = vector.broadcast %cst_119 : f32 to vector<16x128xf32>
    %450 = arith.mulf %446, %449 : vector<16x128xf32>
    %451 = arith.mulf %448, %448 : vector<16x128xf32>
    %452 = arith.mulf %451, %448 : vector<16x128xf32>
    %cst_120 = arith.constant 0.166666672 : f32
    %453 = vector.broadcast %cst_120 : f32 to vector<16x128xf32>
    %454 = arith.mulf %452, %453 : vector<16x128xf32>
    %cst_121 = arith.constant 5.000000e-01 : f32
    %455 = vector.broadcast %cst_121 : f32 to vector<16x128xf32>
    %456 = arith.mulf %455, %446 : vector<16x128xf32>
    %457 = arith.subf %456, %445 : vector<16x128xf32>
    %cst_122 = arith.constant 0.666666686 : f32
    %458 = vector.broadcast %cst_122 : f32 to vector<16x128xf32>
    %459 = arith.addf %457, %458 : vector<16x128xf32>
    %cst_123 = arith.constant 1.000000e+00 : f32
    %460 = vector.broadcast %cst_123 : f32 to vector<16x128xf32>
    %461 = arith.subf %460, %450 : vector<16x128xf32>
    %462 = arith.subf %461, %459 : vector<16x128xf32>
    %463 = arith.subf %462, %454 : vector<16x128xf32>
    %464 = tpu.iota {dimensions = array<i32: 1>} : vector<1x128xi32>
    %c5_i32_124 = arith.constant 5 : i32
    %465 = vector.broadcast %c5_i32_124 : i32 to vector<1x128xi32>
    %466 = arith.shrui %464, %465 : vector<1x128xi32>
    %c0_i32_125 = arith.constant 0 : i32
    %467 = vector.broadcast %c0_i32_125 : i32 to vector<1x128xi32>
    %468 = arith.addi %466, %467 : vector<1x128xi32>
    %c1_i32_126 = arith.constant 1 : i32
    %469 = vector.broadcast %c1_i32_126 : i32 to vector<1x128xi32>
    %470 = arith.subi %468, %469 : vector<1x128xi32>
    %471 = arith.sitofp %470 : vector<1x128xi32> to vector<1x128xf32>
    %c0_i32_127 = arith.constant 0 : i32
    %472 = vector.broadcast %c0_i32_127 : i32 to vector<1x128xi32>
    %473 = arith.cmpi eq, %468, %472 : vector<1x128xi32>
    %474 = arith.extui %473 : vector<1x128xi1> to vector<1x128xi32>
    %475 = arith.sitofp %474 : vector<1x128xi32> to vector<1x128xf32>
    %c1_i32_128 = arith.constant 1 : i32
    %476 = vector.broadcast %c1_i32_128 : i32 to vector<1x128xi32>
    %477 = arith.cmpi sge, %468, %476 : vector<1x128xi32>
    %c8_i32_129 = arith.constant 8 : i32
    %478 = vector.broadcast %c8_i32_129 : i32 to vector<1x128xi32>
    %479 = arith.cmpi sle, %468, %478 : vector<1x128xi32>
    %480 = arith.andi %477, %479 : vector<1x128xi1>
    %481 = arith.extui %480 : vector<1x128xi1> to vector<1x128xi32>
    %482 = arith.sitofp %481 : vector<1x128xi32> to vector<1x128xf32>
    %483 = vector.broadcast %471 : vector<1x128xf32> to vector<16x128xf32>
    %484 = arith.cmpf oeq, %443, %483 : vector<16x128xf32>
    %cst_130 = arith.constant 1.000000e+00 : f32
    %485 = vector.broadcast %cst_130 : f32 to vector<1x128xf32>
    %486 = arith.addf %471, %485 : vector<1x128xf32>
    %487 = vector.broadcast %486 : vector<1x128xf32> to vector<16x128xf32>
    %488 = arith.cmpf oeq, %443, %487 : vector<16x128xf32>
    %cst_131 = arith.constant 2.000000e+00 : f32
    %489 = vector.broadcast %cst_131 : f32 to vector<1x128xf32>
    %490 = arith.addf %471, %489 : vector<1x128xf32>
    %491 = vector.broadcast %490 : vector<1x128xf32> to vector<16x128xf32>
    %492 = arith.cmpf oeq, %443, %491 : vector<16x128xf32>
    %cst_132 = arith.constant 3.000000e+00 : f32
    %493 = vector.broadcast %cst_132 : f32 to vector<1x128xf32>
    %494 = arith.addf %471, %493 : vector<1x128xf32>
    %495 = vector.broadcast %494 : vector<1x128xf32> to vector<16x128xf32>
    %496 = arith.cmpf oeq, %443, %495 : vector<16x128xf32>
    %cst_133 = arith.constant 0.000000e+00 : f32
    %497 = vector.broadcast %cst_133 : f32 to vector<16x128xf32>
    %498 = arith.select %496, %454, %497 : vector<16x128xi1>, vector<16x128xf32>
    %499 = arith.select %492, %459, %498 : vector<16x128xi1>, vector<16x128xf32>
    %500 = arith.select %488, %463, %499 : vector<16x128xi1>, vector<16x128xf32>
    %501 = arith.select %484, %450, %500 : vector<16x128xi1>, vector<16x128xf32>
    %502 = vector.broadcast %475 : vector<1x128xf32> to vector<16x128xf32>
    %503 = arith.mulf %438, %502 : vector<16x128xf32>
    %504 = vector.broadcast %482 : vector<1x128xf32> to vector<16x128xf32>
    %505 = arith.mulf %501, %504 : vector<16x128xf32>
    %506 = arith.addf %503, %505 : vector<16x128xf32>
    %507 = arith.truncf %506 : vector<16x128xf32> to vector<16x128xbf16>
    %c4_i32_134 = arith.constant 4 : i32
    %508 = vector.broadcast %c4_i32_134 : i32 to vector<1x128xi32>
    %509 = arith.addi %466, %508 : vector<1x128xi32>
    %c1_i32_135 = arith.constant 1 : i32
    %510 = vector.broadcast %c1_i32_135 : i32 to vector<1x128xi32>
    %511 = arith.subi %509, %510 : vector<1x128xi32>
    %512 = arith.sitofp %511 : vector<1x128xi32> to vector<1x128xf32>
    %c0_i32_136 = arith.constant 0 : i32
    %513 = vector.broadcast %c0_i32_136 : i32 to vector<1x128xi32>
    %514 = arith.cmpi eq, %509, %513 : vector<1x128xi32>
    %515 = arith.extui %514 : vector<1x128xi1> to vector<1x128xi32>
    %516 = arith.sitofp %515 : vector<1x128xi32> to vector<1x128xf32>
    %c1_i32_137 = arith.constant 1 : i32
    %517 = vector.broadcast %c1_i32_137 : i32 to vector<1x128xi32>
    %518 = arith.cmpi sge, %509, %517 : vector<1x128xi32>
    %c8_i32_138 = arith.constant 8 : i32
    %519 = vector.broadcast %c8_i32_138 : i32 to vector<1x128xi32>
    %520 = arith.cmpi sle, %509, %519 : vector<1x128xi32>
    %521 = arith.andi %518, %520 : vector<1x128xi1>
    %522 = arith.extui %521 : vector<1x128xi1> to vector<1x128xi32>
    %523 = arith.sitofp %522 : vector<1x128xi32> to vector<1x128xf32>
    %524 = vector.broadcast %512 : vector<1x128xf32> to vector<16x128xf32>
    %525 = arith.cmpf oeq, %443, %524 : vector<16x128xf32>
    %cst_139 = arith.constant 1.000000e+00 : f32
    %526 = vector.broadcast %cst_139 : f32 to vector<1x128xf32>
    %527 = arith.addf %512, %526 : vector<1x128xf32>
    %528 = vector.broadcast %527 : vector<1x128xf32> to vector<16x128xf32>
    %529 = arith.cmpf oeq, %443, %528 : vector<16x128xf32>
    %cst_140 = arith.constant 2.000000e+00 : f32
    %530 = vector.broadcast %cst_140 : f32 to vector<1x128xf32>
    %531 = arith.addf %512, %530 : vector<1x128xf32>
    %532 = vector.broadcast %531 : vector<1x128xf32> to vector<16x128xf32>
    %533 = arith.cmpf oeq, %443, %532 : vector<16x128xf32>
    %cst_141 = arith.constant 3.000000e+00 : f32
    %534 = vector.broadcast %cst_141 : f32 to vector<1x128xf32>
    %535 = arith.addf %512, %534 : vector<1x128xf32>
    %536 = vector.broadcast %535 : vector<1x128xf32> to vector<16x128xf32>
    %537 = arith.cmpf oeq, %443, %536 : vector<16x128xf32>
    %cst_142 = arith.constant 0.000000e+00 : f32
    %538 = vector.broadcast %cst_142 : f32 to vector<16x128xf32>
    %539 = arith.select %537, %454, %538 : vector<16x128xi1>, vector<16x128xf32>
    %540 = arith.select %533, %459, %539 : vector<16x128xi1>, vector<16x128xf32>
    %541 = arith.select %529, %463, %540 : vector<16x128xi1>, vector<16x128xf32>
    %542 = arith.select %525, %450, %541 : vector<16x128xi1>, vector<16x128xf32>
    %543 = vector.broadcast %516 : vector<1x128xf32> to vector<16x128xf32>
    %544 = arith.mulf %438, %543 : vector<16x128xf32>
    %545 = vector.broadcast %523 : vector<1x128xf32> to vector<16x128xf32>
    %546 = arith.mulf %542, %545 : vector<16x128xf32>
    %547 = arith.addf %544, %546 : vector<16x128xf32>
    %548 = arith.truncf %547 : vector<16x128xf32> to vector<16x128xbf16>
    %c8_i32_143 = arith.constant 8 : i32
    %549 = vector.broadcast %c8_i32_143 : i32 to vector<1x128xi32>
    %550 = arith.addi %466, %549 : vector<1x128xi32>
    %c1_i32_144 = arith.constant 1 : i32
    %551 = vector.broadcast %c1_i32_144 : i32 to vector<1x128xi32>
    %552 = arith.subi %550, %551 : vector<1x128xi32>
    %553 = arith.sitofp %552 : vector<1x128xi32> to vector<1x128xf32>
    %c0_i32_145 = arith.constant 0 : i32
    %554 = vector.broadcast %c0_i32_145 : i32 to vector<1x128xi32>
    %555 = arith.cmpi eq, %550, %554 : vector<1x128xi32>
    %556 = arith.extui %555 : vector<1x128xi1> to vector<1x128xi32>
    %557 = arith.sitofp %556 : vector<1x128xi32> to vector<1x128xf32>
    %c1_i32_146 = arith.constant 1 : i32
    %558 = vector.broadcast %c1_i32_146 : i32 to vector<1x128xi32>
    %559 = arith.cmpi sge, %550, %558 : vector<1x128xi32>
    %c8_i32_147 = arith.constant 8 : i32
    %560 = vector.broadcast %c8_i32_147 : i32 to vector<1x128xi32>
    %561 = arith.cmpi sle, %550, %560 : vector<1x128xi32>
    %562 = arith.andi %559, %561 : vector<1x128xi1>
    %563 = arith.extui %562 : vector<1x128xi1> to vector<1x128xi32>
    %564 = arith.sitofp %563 : vector<1x128xi32> to vector<1x128xf32>
    %565 = vector.broadcast %553 : vector<1x128xf32> to vector<16x128xf32>
    %566 = arith.cmpf oeq, %443, %565 : vector<16x128xf32>
    %cst_148 = arith.constant 1.000000e+00 : f32
    %567 = vector.broadcast %cst_148 : f32 to vector<1x128xf32>
    %568 = arith.addf %553, %567 : vector<1x128xf32>
    %569 = vector.broadcast %568 : vector<1x128xf32> to vector<16x128xf32>
    %570 = arith.cmpf oeq, %443, %569 : vector<16x128xf32>
    %cst_149 = arith.constant 2.000000e+00 : f32
    %571 = vector.broadcast %cst_149 : f32 to vector<1x128xf32>
    %572 = arith.addf %553, %571 : vector<1x128xf32>
    %573 = vector.broadcast %572 : vector<1x128xf32> to vector<16x128xf32>
    %574 = arith.cmpf oeq, %443, %573 : vector<16x128xf32>
    %cst_150 = arith.constant 3.000000e+00 : f32
    %575 = vector.broadcast %cst_150 : f32 to vector<1x128xf32>
    %576 = arith.addf %553, %575 : vector<1x128xf32>
    %577 = vector.broadcast %576 : vector<1x128xf32> to vector<16x128xf32>
    %578 = arith.cmpf oeq, %443, %577 : vector<16x128xf32>
    %cst_151 = arith.constant 0.000000e+00 : f32
    %579 = vector.broadcast %cst_151 : f32 to vector<16x128xf32>
    %580 = arith.select %578, %454, %579 : vector<16x128xi1>, vector<16x128xf32>
    %581 = arith.select %574, %459, %580 : vector<16x128xi1>, vector<16x128xf32>
    %582 = arith.select %570, %463, %581 : vector<16x128xi1>, vector<16x128xf32>
    %583 = arith.select %566, %450, %582 : vector<16x128xi1>, vector<16x128xf32>
    %584 = vector.broadcast %557 : vector<1x128xf32> to vector<16x128xf32>
    %585 = arith.mulf %438, %584 : vector<16x128xf32>
    %586 = vector.broadcast %564 : vector<1x128xf32> to vector<16x128xf32>
    %587 = arith.mulf %583, %586 : vector<16x128xf32>
    %588 = arith.addf %585, %587 : vector<16x128xf32>
    %589 = arith.truncf %588 : vector<16x128xf32> to vector<16x128xbf16>
    %590 = tpu.concatenate %507, %548, %589 in 1 : vector<16x128xbf16>, vector<16x128xbf16>, vector<16x128xbf16> -> vector<16x384xbf16>
    %c0_152 = arith.constant 0 : index
    %c0_153 = arith.constant 0 : index
    %591 = vector.load %arg8[%c0_152, %c0_153] : memref<384x128xbf16, #tpu.memory_space<vmem>>, vector<384x128xbf16>
    %cst_154 = arith.constant dense<0.000000e+00> : vector<16x128xf32>
    %592 = tpu.matmul %590, %591, %cst_154 {dimension_numbers = #tpu.dot_dimension_numbers<[1], [0], [0], [1], [0, 0, 1, 1], [], []>} : vector<16x384xbf16>, vector<384x128xbf16>, vector<16x128xf32> -> vector<16x128xf32>
    %c0_155 = arith.constant 0 : index
    %c0_156 = arith.constant 0 : index
    %593 = vector.load %arg9[%c0_155, %c0_156] : memref<1x128xf32, #tpu.memory_space<vmem>>, vector<1x128xf32>
    %594 = vector.broadcast %593 : vector<1x128xf32> to vector<16x128xf32>
    %595 = arith.mulf %592, %594 : vector<16x128xf32>
    %c0_157 = arith.constant 0 : index
    %c0_158 = arith.constant 0 : index
    %596 = vector.load %arg10[%c0_157, %c0_158] : memref<1x128xf32, #tpu.memory_space<vmem>>, vector<1x128xf32>
    %597 = vector.broadcast %596 : vector<1x128xf32> to vector<16x128xf32>
    %598 = arith.addf %595, %597 : vector<16x128xf32>
    %c0_159 = arith.constant 0 : index
    %c0_160 = arith.constant 0 : index
    %599 = vector.load %arg2[%c0_159, %c0_160] : memref<2x16xbf16, #tpu.memory_space<vmem>>, vector<2x16xbf16>
    %600 = arith.truncf %598 : vector<16x128xf32> to vector<16x128xbf16>
    %cst_161 = arith.constant dense<0.000000e+00> : vector<2x128xf32>
    %601 = tpu.matmul %599, %600, %cst_161 {dimension_numbers = #tpu.dot_dimension_numbers<[1], [0], [0], [1], [0, 0, 1, 1], [], []>} : vector<2x16xbf16>, vector<16x128xbf16>, vector<2x128xf32> -> vector<2x128xf32>
    %c32_i32_162 = arith.constant 32 : i32
    %602 = tpu.dynamic_rotate %601 by %c32_i32_162 dim 1 : vector<2x128xf32>, i32 -> vector<2x128xf32>
    %603 = arith.addf %601, %602 : vector<2x128xf32>
    %c64_i32_163 = arith.constant 64 : i32
    %604 = tpu.dynamic_rotate %603 by %c64_i32_163 dim 1 : vector<2x128xf32>, i32 -> vector<2x128xf32>
    %605 = arith.addf %603, %604 : vector<2x128xf32>
    %cst_164 = arith.constant 0.000000e+00 : f32
    %606 = vector.broadcast %cst_164 : f32 to vector<2x128xf32>
    %607 = arith.subf %606, %605 : vector<2x128xf32>
    %608 = math.exp %607 : vector<2x128xf32>
    %cst_165 = arith.constant 1.000000e+00 : f32
    %609 = vector.broadcast %cst_165 : f32 to vector<2x128xf32>
    %610 = arith.addf %609, %608 : vector<2x128xf32>
    %611 = tpu.reciprocal %610 {approx = true} : vector<2x128xf32> -> vector<2x128xf32>
    %612 = arith.mulf %605, %611 : vector<2x128xf32>
    %cst_166 = arith.constant -2.200000e+00 : f32
    %613 = vector.broadcast %cst_166 : f32 to vector<2x128xf32>
    %614 = arith.subf %605, %613 : vector<2x128xf32>
    %cst_167 = arith.constant 2.500000e+00 : f32
    %615 = vector.broadcast %cst_167 : f32 to vector<2x128xf32>
    %616 = arith.mulf %614, %615 : vector<2x128xf32>
    %617 = math.floor %616 : vector<2x128xf32>
    %618 = arith.subf %616, %617 : vector<2x128xf32>
    %619 = arith.mulf %618, %618 : vector<2x128xf32>
    %620 = arith.mulf %619, %618 : vector<2x128xf32>
    %cst_168 = arith.constant 1.000000e+00 : f32
    %621 = vector.broadcast %cst_168 : f32 to vector<2x128xf32>
    %622 = arith.subf %621, %618 : vector<2x128xf32>
    %cst_169 = arith.constant 0.166666672 : f32
    %623 = vector.broadcast %cst_169 : f32 to vector<2x128xf32>
    %624 = arith.mulf %620, %623 : vector<2x128xf32>
    %625 = arith.mulf %622, %622 : vector<2x128xf32>
    %626 = arith.mulf %625, %622 : vector<2x128xf32>
    %cst_170 = arith.constant 0.166666672 : f32
    %627 = vector.broadcast %cst_170 : f32 to vector<2x128xf32>
    %628 = arith.mulf %626, %627 : vector<2x128xf32>
    %cst_171 = arith.constant 5.000000e-01 : f32
    %629 = vector.broadcast %cst_171 : f32 to vector<2x128xf32>
    %630 = arith.mulf %629, %620 : vector<2x128xf32>
    %631 = arith.subf %630, %619 : vector<2x128xf32>
    %cst_172 = arith.constant 0.666666686 : f32
    %632 = vector.broadcast %cst_172 : f32 to vector<2x128xf32>
    %633 = arith.addf %631, %632 : vector<2x128xf32>
    %cst_173 = arith.constant 1.000000e+00 : f32
    %634 = vector.broadcast %cst_173 : f32 to vector<2x128xf32>
    %635 = arith.subf %634, %624 : vector<2x128xf32>
    %636 = arith.subf %635, %633 : vector<2x128xf32>
    %637 = arith.subf %636, %628 : vector<2x128xf32>
    %638 = tpu.iota {dimensions = array<i32: 1>} : vector<1x128xi32>
    %c5_i32_174 = arith.constant 5 : i32
    %639 = vector.broadcast %c5_i32_174 : i32 to vector<1x128xi32>
    %640 = arith.shrui %638, %639 : vector<1x128xi32>
    %c0_i32_175 = arith.constant 0 : i32
    %641 = vector.broadcast %c0_i32_175 : i32 to vector<1x128xi32>
    %642 = arith.addi %640, %641 : vector<1x128xi32>
    %c1_i32_176 = arith.constant 1 : i32
    %643 = vector.broadcast %c1_i32_176 : i32 to vector<1x128xi32>
    %644 = arith.subi %642, %643 : vector<1x128xi32>
    %645 = arith.sitofp %644 : vector<1x128xi32> to vector<1x128xf32>
    %c0_i32_177 = arith.constant 0 : i32
    %646 = vector.broadcast %c0_i32_177 : i32 to vector<1x128xi32>
    %647 = arith.cmpi eq, %642, %646 : vector<1x128xi32>
    %648 = arith.extui %647 : vector<1x128xi1> to vector<1x128xi32>
    %649 = arith.sitofp %648 : vector<1x128xi32> to vector<1x128xf32>
    %c1_i32_178 = arith.constant 1 : i32
    %650 = vector.broadcast %c1_i32_178 : i32 to vector<1x128xi32>
    %651 = arith.cmpi sge, %642, %650 : vector<1x128xi32>
    %c8_i32_179 = arith.constant 8 : i32
    %652 = vector.broadcast %c8_i32_179 : i32 to vector<1x128xi32>
    %653 = arith.cmpi sle, %642, %652 : vector<1x128xi32>
    %654 = arith.andi %651, %653 : vector<1x128xi1>
    %655 = arith.extui %654 : vector<1x128xi1> to vector<1x128xi32>
    %656 = arith.sitofp %655 : vector<1x128xi32> to vector<1x128xf32>
    %657 = vector.broadcast %645 : vector<1x128xf32> to vector<2x128xf32>
    %658 = arith.cmpf oeq, %617, %657 : vector<2x128xf32>
    %cst_180 = arith.constant 1.000000e+00 : f32
    %659 = vector.broadcast %cst_180 : f32 to vector<1x128xf32>
    %660 = arith.addf %645, %659 : vector<1x128xf32>
    %661 = vector.broadcast %660 : vector<1x128xf32> to vector<2x128xf32>
    %662 = arith.cmpf oeq, %617, %661 : vector<2x128xf32>
    %cst_181 = arith.constant 2.000000e+00 : f32
    %663 = vector.broadcast %cst_181 : f32 to vector<1x128xf32>
    %664 = arith.addf %645, %663 : vector<1x128xf32>
    %665 = vector.broadcast %664 : vector<1x128xf32> to vector<2x128xf32>
    %666 = arith.cmpf oeq, %617, %665 : vector<2x128xf32>
    %cst_182 = arith.constant 3.000000e+00 : f32
    %667 = vector.broadcast %cst_182 : f32 to vector<1x128xf32>
    %668 = arith.addf %645, %667 : vector<1x128xf32>
    %669 = vector.broadcast %668 : vector<1x128xf32> to vector<2x128xf32>
    %670 = arith.cmpf oeq, %617, %669 : vector<2x128xf32>
    %cst_183 = arith.constant 0.000000e+00 : f32
    %671 = vector.broadcast %cst_183 : f32 to vector<2x128xf32>
    %672 = arith.select %670, %628, %671 : vector<2x128xi1>, vector<2x128xf32>
    %673 = arith.select %666, %633, %672 : vector<2x128xi1>, vector<2x128xf32>
    %674 = arith.select %662, %637, %673 : vector<2x128xi1>, vector<2x128xf32>
    %675 = arith.select %658, %624, %674 : vector<2x128xi1>, vector<2x128xf32>
    %676 = vector.broadcast %649 : vector<1x128xf32> to vector<2x128xf32>
    %677 = arith.mulf %612, %676 : vector<2x128xf32>
    %678 = vector.broadcast %656 : vector<1x128xf32> to vector<2x128xf32>
    %679 = arith.mulf %675, %678 : vector<2x128xf32>
    %680 = arith.addf %677, %679 : vector<2x128xf32>
    %681 = arith.truncf %680 : vector<2x128xf32> to vector<2x128xbf16>
    %c4_i32_184 = arith.constant 4 : i32
    %682 = vector.broadcast %c4_i32_184 : i32 to vector<1x128xi32>
    %683 = arith.addi %640, %682 : vector<1x128xi32>
    %c1_i32_185 = arith.constant 1 : i32
    %684 = vector.broadcast %c1_i32_185 : i32 to vector<1x128xi32>
    %685 = arith.subi %683, %684 : vector<1x128xi32>
    %686 = arith.sitofp %685 : vector<1x128xi32> to vector<1x128xf32>
    %c0_i32_186 = arith.constant 0 : i32
    %687 = vector.broadcast %c0_i32_186 : i32 to vector<1x128xi32>
    %688 = arith.cmpi eq, %683, %687 : vector<1x128xi32>
    %689 = arith.extui %688 : vector<1x128xi1> to vector<1x128xi32>
    %690 = arith.sitofp %689 : vector<1x128xi32> to vector<1x128xf32>
    %c1_i32_187 = arith.constant 1 : i32
    %691 = vector.broadcast %c1_i32_187 : i32 to vector<1x128xi32>
    %692 = arith.cmpi sge, %683, %691 : vector<1x128xi32>
    %c8_i32_188 = arith.constant 8 : i32
    %693 = vector.broadcast %c8_i32_188 : i32 to vector<1x128xi32>
    %694 = arith.cmpi sle, %683, %693 : vector<1x128xi32>
    %695 = arith.andi %692, %694 : vector<1x128xi1>
    %696 = arith.extui %695 : vector<1x128xi1> to vector<1x128xi32>
    %697 = arith.sitofp %696 : vector<1x128xi32> to vector<1x128xf32>
    %698 = vector.broadcast %686 : vector<1x128xf32> to vector<2x128xf32>
    %699 = arith.cmpf oeq, %617, %698 : vector<2x128xf32>
    %cst_189 = arith.constant 1.000000e+00 : f32
    %700 = vector.broadcast %cst_189 : f32 to vector<1x128xf32>
    %701 = arith.addf %686, %700 : vector<1x128xf32>
    %702 = vector.broadcast %701 : vector<1x128xf32> to vector<2x128xf32>
    %703 = arith.cmpf oeq, %617, %702 : vector<2x128xf32>
    %cst_190 = arith.constant 2.000000e+00 : f32
    %704 = vector.broadcast %cst_190 : f32 to vector<1x128xf32>
    %705 = arith.addf %686, %704 : vector<1x128xf32>
    %706 = vector.broadcast %705 : vector<1x128xf32> to vector<2x128xf32>
    %707 = arith.cmpf oeq, %617, %706 : vector<2x128xf32>
    %cst_191 = arith.constant 3.000000e+00 : f32
    %708 = vector.broadcast %cst_191 : f32 to vector<1x128xf32>
    %709 = arith.addf %686, %708 : vector<1x128xf32>
    %710 = vector.broadcast %709 : vector<1x128xf32> to vector<2x128xf32>
    %711 = arith.cmpf oeq, %617, %710 : vector<2x128xf32>
    %cst_192 = arith.constant 0.000000e+00 : f32
    %712 = vector.broadcast %cst_192 : f32 to vector<2x128xf32>
    %713 = arith.select %711, %628, %712 : vector<2x128xi1>, vector<2x128xf32>
    %714 = arith.select %707, %633, %713 : vector<2x128xi1>, vector<2x128xf32>
    %715 = arith.select %703, %637, %714 : vector<2x128xi1>, vector<2x128xf32>
    %716 = arith.select %699, %624, %715 : vector<2x128xi1>, vector<2x128xf32>
    %717 = vector.broadcast %690 : vector<1x128xf32> to vector<2x128xf32>
    %718 = arith.mulf %612, %717 : vector<2x128xf32>
    %719 = vector.broadcast %697 : vector<1x128xf32> to vector<2x128xf32>
    %720 = arith.mulf %716, %719 : vector<2x128xf32>
    %721 = arith.addf %718, %720 : vector<2x128xf32>
    %722 = arith.truncf %721 : vector<2x128xf32> to vector<2x128xbf16>
    %c8_i32_193 = arith.constant 8 : i32
    %723 = vector.broadcast %c8_i32_193 : i32 to vector<1x128xi32>
    %724 = arith.addi %640, %723 : vector<1x128xi32>
    %c1_i32_194 = arith.constant 1 : i32
    %725 = vector.broadcast %c1_i32_194 : i32 to vector<1x128xi32>
    %726 = arith.subi %724, %725 : vector<1x128xi32>
    %727 = arith.sitofp %726 : vector<1x128xi32> to vector<1x128xf32>
    %c0_i32_195 = arith.constant 0 : i32
    %728 = vector.broadcast %c0_i32_195 : i32 to vector<1x128xi32>
    %729 = arith.cmpi eq, %724, %728 : vector<1x128xi32>
    %730 = arith.extui %729 : vector<1x128xi1> to vector<1x128xi32>
    %731 = arith.sitofp %730 : vector<1x128xi32> to vector<1x128xf32>
    %c1_i32_196 = arith.constant 1 : i32
    %732 = vector.broadcast %c1_i32_196 : i32 to vector<1x128xi32>
    %733 = arith.cmpi sge, %724, %732 : vector<1x128xi32>
    %c8_i32_197 = arith.constant 8 : i32
    %734 = vector.broadcast %c8_i32_197 : i32 to vector<1x128xi32>
    %735 = arith.cmpi sle, %724, %734 : vector<1x128xi32>
    %736 = arith.andi %733, %735 : vector<1x128xi1>
    %737 = arith.extui %736 : vector<1x128xi1> to vector<1x128xi32>
    %738 = arith.sitofp %737 : vector<1x128xi32> to vector<1x128xf32>
    %739 = vector.broadcast %727 : vector<1x128xf32> to vector<2x128xf32>
    %740 = arith.cmpf oeq, %617, %739 : vector<2x128xf32>
    %cst_198 = arith.constant 1.000000e+00 : f32
    %741 = vector.broadcast %cst_198 : f32 to vector<1x128xf32>
    %742 = arith.addf %727, %741 : vector<1x128xf32>
    %743 = vector.broadcast %742 : vector<1x128xf32> to vector<2x128xf32>
    %744 = arith.cmpf oeq, %617, %743 : vector<2x128xf32>
    %cst_199 = arith.constant 2.000000e+00 : f32
    %745 = vector.broadcast %cst_199 : f32 to vector<1x128xf32>
    %746 = arith.addf %727, %745 : vector<1x128xf32>
    %747 = vector.broadcast %746 : vector<1x128xf32> to vector<2x128xf32>
    %748 = arith.cmpf oeq, %617, %747 : vector<2x128xf32>
    %cst_200 = arith.constant 3.000000e+00 : f32
    %749 = vector.broadcast %cst_200 : f32 to vector<1x128xf32>
    %750 = arith.addf %727, %749 : vector<1x128xf32>
    %751 = vector.broadcast %750 : vector<1x128xf32> to vector<2x128xf32>
    %752 = arith.cmpf oeq, %617, %751 : vector<2x128xf32>
    %cst_201 = arith.constant 0.000000e+00 : f32
    %753 = vector.broadcast %cst_201 : f32 to vector<2x128xf32>
    %754 = arith.select %752, %628, %753 : vector<2x128xi1>, vector<2x128xf32>
    %755 = arith.select %748, %633, %754 : vector<2x128xi1>, vector<2x128xf32>
    %756 = arith.select %744, %637, %755 : vector<2x128xi1>, vector<2x128xf32>
    %757 = arith.select %740, %624, %756 : vector<2x128xi1>, vector<2x128xf32>
    %758 = vector.broadcast %731 : vector<1x128xf32> to vector<2x128xf32>
    %759 = arith.mulf %612, %758 : vector<2x128xf32>
    %760 = vector.broadcast %738 : vector<1x128xf32> to vector<2x128xf32>
    %761 = arith.mulf %757, %760 : vector<2x128xf32>
    %762 = arith.addf %759, %761 : vector<2x128xf32>
    %763 = arith.truncf %762 : vector<2x128xf32> to vector<2x128xbf16>
    %764 = tpu.concatenate %681, %722, %763 in 1 : vector<2x128xbf16>, vector<2x128xbf16>, vector<2x128xbf16> -> vector<2x384xbf16>
    %c0_202 = arith.constant 0 : index
    %c0_203 = arith.constant 0 : index
    %765 = vector.load %arg11[%c0_202, %c0_203] : memref<384x128xbf16, #tpu.memory_space<vmem>>, vector<384x128xbf16>
    %cst_204 = arith.constant dense<0.000000e+00> : vector<2x128xf32>
    %766 = tpu.matmul %764, %765, %cst_204 {dimension_numbers = #tpu.dot_dimension_numbers<[1], [0], [0], [1], [0, 0, 1, 1], [], []>} : vector<2x384xbf16>, vector<384x128xbf16>, vector<2x128xf32> -> vector<2x128xf32>
    %c32_i32_205 = arith.constant 32 : i32
    %767 = tpu.dynamic_rotate %766 by %c32_i32_205 dim 1 : vector<2x128xf32>, i32 -> vector<2x128xf32>
    %768 = arith.addf %766, %767 : vector<2x128xf32>
    %c64_i32_206 = arith.constant 64 : i32
    %769 = tpu.dynamic_rotate %768 by %c64_i32_206 dim 1 : vector<2x128xf32>, i32 -> vector<2x128xf32>
    %770 = arith.addf %768, %769 : vector<2x128xf32>
    %cst_207 = arith.constant 0.000000e+00 : f32
    %771 = vector.broadcast %cst_207 : f32 to vector<2x128xf32>
    %772 = arith.subf %771, %770 : vector<2x128xf32>
    %773 = math.exp %772 : vector<2x128xf32>
    %cst_208 = arith.constant 1.000000e+00 : f32
    %774 = vector.broadcast %cst_208 : f32 to vector<2x128xf32>
    %775 = arith.addf %774, %773 : vector<2x128xf32>
    %776 = tpu.reciprocal %775 {approx = true} : vector<2x128xf32> -> vector<2x128xf32>
    %777 = arith.mulf %770, %776 : vector<2x128xf32>
    %cst_209 = arith.constant -2.200000e+00 : f32
    %778 = vector.broadcast %cst_209 : f32 to vector<2x128xf32>
    %779 = arith.subf %770, %778 : vector<2x128xf32>
    %cst_210 = arith.constant 2.500000e+00 : f32
    %780 = vector.broadcast %cst_210 : f32 to vector<2x128xf32>
    %781 = arith.mulf %779, %780 : vector<2x128xf32>
    %782 = math.floor %781 : vector<2x128xf32>
    %783 = arith.subf %781, %782 : vector<2x128xf32>
    %784 = arith.mulf %783, %783 : vector<2x128xf32>
    %785 = arith.mulf %784, %783 : vector<2x128xf32>
    %cst_211 = arith.constant 1.000000e+00 : f32
    %786 = vector.broadcast %cst_211 : f32 to vector<2x128xf32>
    %787 = arith.subf %786, %783 : vector<2x128xf32>
    %cst_212 = arith.constant 0.166666672 : f32
    %788 = vector.broadcast %cst_212 : f32 to vector<2x128xf32>
    %789 = arith.mulf %785, %788 : vector<2x128xf32>
    %790 = arith.mulf %787, %787 : vector<2x128xf32>
    %791 = arith.mulf %790, %787 : vector<2x128xf32>
    %cst_213 = arith.constant 0.166666672 : f32
    %792 = vector.broadcast %cst_213 : f32 to vector<2x128xf32>
    %793 = arith.mulf %791, %792 : vector<2x128xf32>
    %cst_214 = arith.constant 5.000000e-01 : f32
    %794 = vector.broadcast %cst_214 : f32 to vector<2x128xf32>
    %795 = arith.mulf %794, %785 : vector<2x128xf32>
    %796 = arith.subf %795, %784 : vector<2x128xf32>
    %cst_215 = arith.constant 0.666666686 : f32
    %797 = vector.broadcast %cst_215 : f32 to vector<2x128xf32>
    %798 = arith.addf %796, %797 : vector<2x128xf32>
    %cst_216 = arith.constant 1.000000e+00 : f32
    %799 = vector.broadcast %cst_216 : f32 to vector<2x128xf32>
    %800 = arith.subf %799, %789 : vector<2x128xf32>
    %801 = arith.subf %800, %798 : vector<2x128xf32>
    %802 = arith.subf %801, %793 : vector<2x128xf32>
    %803 = tpu.iota {dimensions = array<i32: 1>} : vector<1x128xi32>
    %c5_i32_217 = arith.constant 5 : i32
    %804 = vector.broadcast %c5_i32_217 : i32 to vector<1x128xi32>
    %805 = arith.shrui %803, %804 : vector<1x128xi32>
    %c0_i32_218 = arith.constant 0 : i32
    %806 = vector.broadcast %c0_i32_218 : i32 to vector<1x128xi32>
    %807 = arith.addi %805, %806 : vector<1x128xi32>
    %c1_i32_219 = arith.constant 1 : i32
    %808 = vector.broadcast %c1_i32_219 : i32 to vector<1x128xi32>
    %809 = arith.subi %807, %808 : vector<1x128xi32>
    %810 = arith.sitofp %809 : vector<1x128xi32> to vector<1x128xf32>
    %c0_i32_220 = arith.constant 0 : i32
    %811 = vector.broadcast %c0_i32_220 : i32 to vector<1x128xi32>
    %812 = arith.cmpi eq, %807, %811 : vector<1x128xi32>
    %813 = arith.extui %812 : vector<1x128xi1> to vector<1x128xi32>
    %814 = arith.sitofp %813 : vector<1x128xi32> to vector<1x128xf32>
    %c1_i32_221 = arith.constant 1 : i32
    %815 = vector.broadcast %c1_i32_221 : i32 to vector<1x128xi32>
    %816 = arith.cmpi sge, %807, %815 : vector<1x128xi32>
    %c8_i32_222 = arith.constant 8 : i32
    %817 = vector.broadcast %c8_i32_222 : i32 to vector<1x128xi32>
    %818 = arith.cmpi sle, %807, %817 : vector<1x128xi32>
    %819 = arith.andi %816, %818 : vector<1x128xi1>
    %820 = arith.extui %819 : vector<1x128xi1> to vector<1x128xi32>
    %821 = arith.sitofp %820 : vector<1x128xi32> to vector<1x128xf32>
    %822 = vector.broadcast %810 : vector<1x128xf32> to vector<2x128xf32>
    %823 = arith.cmpf oeq, %782, %822 : vector<2x128xf32>
    %cst_223 = arith.constant 1.000000e+00 : f32
    %824 = vector.broadcast %cst_223 : f32 to vector<1x128xf32>
    %825 = arith.addf %810, %824 : vector<1x128xf32>
    %826 = vector.broadcast %825 : vector<1x128xf32> to vector<2x128xf32>
    %827 = arith.cmpf oeq, %782, %826 : vector<2x128xf32>
    %cst_224 = arith.constant 2.000000e+00 : f32
    %828 = vector.broadcast %cst_224 : f32 to vector<1x128xf32>
    %829 = arith.addf %810, %828 : vector<1x128xf32>
    %830 = vector.broadcast %829 : vector<1x128xf32> to vector<2x128xf32>
    %831 = arith.cmpf oeq, %782, %830 : vector<2x128xf32>
    %cst_225 = arith.constant 3.000000e+00 : f32
    %832 = vector.broadcast %cst_225 : f32 to vector<1x128xf32>
    %833 = arith.addf %810, %832 : vector<1x128xf32>
    %834 = vector.broadcast %833 : vector<1x128xf32> to vector<2x128xf32>
    %835 = arith.cmpf oeq, %782, %834 : vector<2x128xf32>
    %cst_226 = arith.constant 0.000000e+00 : f32
    %836 = vector.broadcast %cst_226 : f32 to vector<2x128xf32>
    %837 = arith.select %835, %793, %836 : vector<2x128xi1>, vector<2x128xf32>
    %838 = arith.select %831, %798, %837 : vector<2x128xi1>, vector<2x128xf32>
    %839 = arith.select %827, %802, %838 : vector<2x128xi1>, vector<2x128xf32>
    %840 = arith.select %823, %789, %839 : vector<2x128xi1>, vector<2x128xf32>
    %841 = vector.broadcast %814 : vector<1x128xf32> to vector<2x128xf32>
    %842 = arith.mulf %777, %841 : vector<2x128xf32>
    %843 = vector.broadcast %821 : vector<1x128xf32> to vector<2x128xf32>
    %844 = arith.mulf %840, %843 : vector<2x128xf32>
    %845 = arith.addf %842, %844 : vector<2x128xf32>
    %846 = arith.truncf %845 : vector<2x128xf32> to vector<2x128xbf16>
    %c4_i32_227 = arith.constant 4 : i32
    %847 = vector.broadcast %c4_i32_227 : i32 to vector<1x128xi32>
    %848 = arith.addi %805, %847 : vector<1x128xi32>
    %c1_i32_228 = arith.constant 1 : i32
    %849 = vector.broadcast %c1_i32_228 : i32 to vector<1x128xi32>
    %850 = arith.subi %848, %849 : vector<1x128xi32>
    %851 = arith.sitofp %850 : vector<1x128xi32> to vector<1x128xf32>
    %c0_i32_229 = arith.constant 0 : i32
    %852 = vector.broadcast %c0_i32_229 : i32 to vector<1x128xi32>
    %853 = arith.cmpi eq, %848, %852 : vector<1x128xi32>
    %854 = arith.extui %853 : vector<1x128xi1> to vector<1x128xi32>
    %855 = arith.sitofp %854 : vector<1x128xi32> to vector<1x128xf32>
    %c1_i32_230 = arith.constant 1 : i32
    %856 = vector.broadcast %c1_i32_230 : i32 to vector<1x128xi32>
    %857 = arith.cmpi sge, %848, %856 : vector<1x128xi32>
    %c8_i32_231 = arith.constant 8 : i32
    %858 = vector.broadcast %c8_i32_231 : i32 to vector<1x128xi32>
    %859 = arith.cmpi sle, %848, %858 : vector<1x128xi32>
    %860 = arith.andi %857, %859 : vector<1x128xi1>
    %861 = arith.extui %860 : vector<1x128xi1> to vector<1x128xi32>
    %862 = arith.sitofp %861 : vector<1x128xi32> to vector<1x128xf32>
    %863 = vector.broadcast %851 : vector<1x128xf32> to vector<2x128xf32>
    %864 = arith.cmpf oeq, %782, %863 : vector<2x128xf32>
    %cst_232 = arith.constant 1.000000e+00 : f32
    %865 = vector.broadcast %cst_232 : f32 to vector<1x128xf32>
    %866 = arith.addf %851, %865 : vector<1x128xf32>
    %867 = vector.broadcast %866 : vector<1x128xf32> to vector<2x128xf32>
    %868 = arith.cmpf oeq, %782, %867 : vector<2x128xf32>
    %cst_233 = arith.constant 2.000000e+00 : f32
    %869 = vector.broadcast %cst_233 : f32 to vector<1x128xf32>
    %870 = arith.addf %851, %869 : vector<1x128xf32>
    %871 = vector.broadcast %870 : vector<1x128xf32> to vector<2x128xf32>
    %872 = arith.cmpf oeq, %782, %871 : vector<2x128xf32>
    %cst_234 = arith.constant 3.000000e+00 : f32
    %873 = vector.broadcast %cst_234 : f32 to vector<1x128xf32>
    %874 = arith.addf %851, %873 : vector<1x128xf32>
    %875 = vector.broadcast %874 : vector<1x128xf32> to vector<2x128xf32>
    %876 = arith.cmpf oeq, %782, %875 : vector<2x128xf32>
    %cst_235 = arith.constant 0.000000e+00 : f32
    %877 = vector.broadcast %cst_235 : f32 to vector<2x128xf32>
    %878 = arith.select %876, %793, %877 : vector<2x128xi1>, vector<2x128xf32>
    %879 = arith.select %872, %798, %878 : vector<2x128xi1>, vector<2x128xf32>
    %880 = arith.select %868, %802, %879 : vector<2x128xi1>, vector<2x128xf32>
    %881 = arith.select %864, %789, %880 : vector<2x128xi1>, vector<2x128xf32>
    %882 = vector.broadcast %855 : vector<1x128xf32> to vector<2x128xf32>
    %883 = arith.mulf %777, %882 : vector<2x128xf32>
    %884 = vector.broadcast %862 : vector<1x128xf32> to vector<2x128xf32>
    %885 = arith.mulf %881, %884 : vector<2x128xf32>
    %886 = arith.addf %883, %885 : vector<2x128xf32>
    %887 = arith.truncf %886 : vector<2x128xf32> to vector<2x128xbf16>
    %c8_i32_236 = arith.constant 8 : i32
    %888 = vector.broadcast %c8_i32_236 : i32 to vector<1x128xi32>
    %889 = arith.addi %805, %888 : vector<1x128xi32>
    %c1_i32_237 = arith.constant 1 : i32
    %890 = vector.broadcast %c1_i32_237 : i32 to vector<1x128xi32>
    %891 = arith.subi %889, %890 : vector<1x128xi32>
    %892 = arith.sitofp %891 : vector<1x128xi32> to vector<1x128xf32>
    %c0_i32_238 = arith.constant 0 : i32
    %893 = vector.broadcast %c0_i32_238 : i32 to vector<1x128xi32>
    %894 = arith.cmpi eq, %889, %893 : vector<1x128xi32>
    %895 = arith.extui %894 : vector<1x128xi1> to vector<1x128xi32>
    %896 = arith.sitofp %895 : vector<1x128xi32> to vector<1x128xf32>
    %c1_i32_239 = arith.constant 1 : i32
    %897 = vector.broadcast %c1_i32_239 : i32 to vector<1x128xi32>
    %898 = arith.cmpi sge, %889, %897 : vector<1x128xi32>
    %c8_i32_240 = arith.constant 8 : i32
    %899 = vector.broadcast %c8_i32_240 : i32 to vector<1x128xi32>
    %900 = arith.cmpi sle, %889, %899 : vector<1x128xi32>
    %901 = arith.andi %898, %900 : vector<1x128xi1>
    %902 = arith.extui %901 : vector<1x128xi1> to vector<1x128xi32>
    %903 = arith.sitofp %902 : vector<1x128xi32> to vector<1x128xf32>
    %904 = vector.broadcast %892 : vector<1x128xf32> to vector<2x128xf32>
    %905 = arith.cmpf oeq, %782, %904 : vector<2x128xf32>
    %cst_241 = arith.constant 1.000000e+00 : f32
    %906 = vector.broadcast %cst_241 : f32 to vector<1x128xf32>
    %907 = arith.addf %892, %906 : vector<1x128xf32>
    %908 = vector.broadcast %907 : vector<1x128xf32> to vector<2x128xf32>
    %909 = arith.cmpf oeq, %782, %908 : vector<2x128xf32>
    %cst_242 = arith.constant 2.000000e+00 : f32
    %910 = vector.broadcast %cst_242 : f32 to vector<1x128xf32>
    %911 = arith.addf %892, %910 : vector<1x128xf32>
    %912 = vector.broadcast %911 : vector<1x128xf32> to vector<2x128xf32>
    %913 = arith.cmpf oeq, %782, %912 : vector<2x128xf32>
    %cst_243 = arith.constant 3.000000e+00 : f32
    %914 = vector.broadcast %cst_243 : f32 to vector<1x128xf32>
    %915 = arith.addf %892, %914 : vector<1x128xf32>
    %916 = vector.broadcast %915 : vector<1x128xf32> to vector<2x128xf32>
    %917 = arith.cmpf oeq, %782, %916 : vector<2x128xf32>
    %cst_244 = arith.constant 0.000000e+00 : f32
    %918 = vector.broadcast %cst_244 : f32 to vector<2x128xf32>
    %919 = arith.select %917, %793, %918 : vector<2x128xi1>, vector<2x128xf32>
    %920 = arith.select %913, %798, %919 : vector<2x128xi1>, vector<2x128xf32>
    %921 = arith.select %909, %802, %920 : vector<2x128xi1>, vector<2x128xf32>
    %922 = arith.select %905, %789, %921 : vector<2x128xi1>, vector<2x128xf32>
    %923 = vector.broadcast %896 : vector<1x128xf32> to vector<2x128xf32>
    %924 = arith.mulf %777, %923 : vector<2x128xf32>
    %925 = vector.broadcast %903 : vector<1x128xf32> to vector<2x128xf32>
    %926 = arith.mulf %922, %925 : vector<2x128xf32>
    %927 = arith.addf %924, %926 : vector<2x128xf32>
    %928 = arith.truncf %927 : vector<2x128xf32> to vector<2x128xbf16>
    %929 = tpu.concatenate %846, %887, %928 in 1 : vector<2x128xbf16>, vector<2x128xbf16>, vector<2x128xbf16> -> vector<2x384xbf16>
    %c0_245 = arith.constant 0 : index
    %c0_246 = arith.constant 0 : index
    %930 = vector.load %arg12[%c0_245, %c0_246] : memref<384x128xbf16, #tpu.memory_space<vmem>>, vector<384x128xbf16>
    %cst_247 = arith.constant dense<0.000000e+00> : vector<2x128xf32>
    %931 = tpu.matmul %929, %930, %cst_247 {dimension_numbers = #tpu.dot_dimension_numbers<[1], [0], [0], [1], [0, 0, 1, 1], [], []>} : vector<2x384xbf16>, vector<384x128xbf16>, vector<2x128xf32> -> vector<2x128xf32>
    %932 = tpu.iota {dimensions = array<i32: 1>} : vector<2x128xi32>
    %c4_i32_248 = arith.constant 4 : i32
    %933 = vector.broadcast %c4_i32_248 : i32 to vector<2x128xi32>
    %934 = arith.cmpi slt, %932, %933 : vector<2x128xi32>
    %cst_249 = arith.constant -1.000000e+30 : f32
    %935 = vector.broadcast %cst_249 : f32 to vector<2x128xf32>
    %936 = arith.select %934, %931, %935 : vector<2x128xi1>, vector<2x128xf32>
    %cst_250 = arith.constant dense<0xFF800000> : vector<2xf32>
    %937 = vector.multi_reduction <maximumf>, %936, %cst_250 [1] : vector<2x128xf32> to vector<2xf32>
    %938 = vector.shape_cast %937 : vector<2xf32> to vector<2x1xf32>
    %939 = vector.broadcast %938 : vector<2x1xf32> to vector<2x128xf32>
    %940 = arith.subf %936, %939 : vector<2x128xf32>
    %941 = math.exp %940 : vector<2x128xf32>
    %cst_251 = arith.constant dense<0.000000e+00> : vector<2xf32>
    %942 = vector.multi_reduction <add>, %941, %cst_251 [1] : vector<2x128xf32> to vector<2xf32>
    %943 = vector.shape_cast %942 : vector<2xf32> to vector<2x1xf32>
    %944 = math.log %943 : vector<2x1xf32>
    %945 = vector.broadcast %944 : vector<2x1xf32> to vector<2x128xf32>
    %946 = arith.subf %940, %945 : vector<2x128xf32>
    %c0_252 = arith.constant 0 : index
    %c0_253 = arith.constant 0 : index
    %947 = vector.load %arg13[%c0_252, %c0_253] : memref<2x128xf32, #tpu.memory_space<vmem>>, vector<2x128xf32>
    tpu.vector_store %arg13[%c0_252, %c0_253], %946 {strides = array<i32>} : memref<2x128xf32, #tpu.memory_space<vmem>>, vector<2x128xf32>,
    return
  }
}

</mosaic_0001>

<bundles_post_ra>
// kernel: forward.1
= control target key start
LH: loop header
LB: loop body
LE: loop exit
PB: predicated region body
PF: predicated region fallthrough
CT: control target
= control target key end

     0   :  { %18 = vsyncpa [#allocation3], 0  ;;  %s3933_s0 = inlined_call_operand.vmem [shape: f32[16,128], index: 0, kind: input, shape index: {}]   ;;  %s3934_s1 = inlined_call_operand.vmem [shape: bf16[16,16], index: 1, kind: input, shape index: {}]   ;;  %s3935_s2 = inlined_call_operand.vmem [shape: bf16[2,16], index: 2, kind: input, shape index: {}]   ;;  %s3936_s3 = inlined_call_operand.vmem [shape: bf16[128,128], index: 3, kind: input, shape index: {}]   ;;  %s3937_s4 = inlined_call_operand.hbm [shape: bf16[384,128], index: 4, kind: input, shape index: {}]   ;;  %s3938_s5 = inlined_call_operand.vmem [shape: f32[1,128], index: 5, kind: input, shape index: {}]   ;;  %s3939_s6 = inlined_call_operand.vmem [shape: f32[1,128], index: 6, kind: input, shape index: {}]   ;;  %s3940_s7 = inlined_call_operand.hbm [shape: bf16[384,128], index: 7, kind: input, shape index: {}]   ;;  %s3941_s8 = inlined_call_operand.hbm [shape: bf16[384,128], index: 8, kind: input, shape index: {}]   ;;  %s3942_s9 = inlined_call_operand.vmem [shape: f32[1,128], index: 9, kind: input, shape index: {}]   ;;  %s3943_s10 = inlined_call_operand.vmem [shape: f32[1,128], index: 10, kind: input, shape index: {}]   ;;  %s3944_s11 = inlined_call_operand.hbm [shape: bf16[384,128], index: 11, kind: input, shape index: {}]   ;;  %s3945_s12 = inlined_call_operand.hbm [shape: bf16[384,128], index: 12, kind: input, shape index: {}]   ;;  %s3946_s13 = inlined_call_operand.hbm [shape: f32[2,128], index: 13, kind: output, shape index: {}]  }
   0x1   :  { %19 = vsyncpa [#allocation6], 0 }
   0x2   :  { %20 = vsyncpa [#allocation9], 0 }
   0x3   :  { %21 = vsyncpa [#allocation4], 0  ;;  %s3236_s25 = smov [#allocation5]   ;;  %s3237_s27 = smov [#allocation8]  }
   0x4   :  { %s51_s26 = sshll.u32 %s3236_s25, 4  ;;  %s79_s28 = sshll.u32 %s3237_s27, 4  ;;  %s52_s26 = int_to_ptr.vmem [resolvable:$true] %s51_s26  ;;  %s80_s28 = int_to_ptr.vmem [resolvable:$true] %s79_s28 }
   0x5   :  { %s3116_s29 = scalar_lea.vmem %s52_s26, 3072  ;;  %p3121_p1 = scmp.lt.s32.totalorder %s52_s26, %s52_s26 }
   0x6   :  { %p3117_p0 = scmp.ne.s32.totalorder %s52_s26, %s3116_s29  ;;  %p3122_p2 = scmp.lt.s32.totalorder %s3116_s29, %s3116_s29 }
   0x8   :  { %p3123_p3 = por %p3122_p2, %p3121_p1 }
   0xa   :  { %p3124_p4 = pnand %p3123_p3, %p3117_p0 }
   0xc   :  { %3127 = shalt.err (!%p3124_p4)
}
   0xd   :  { %s3238_s30 = smov 64   ;;  %s3239_s14 = smov 4  }
   0xe   :  { %57 = dma.hbm_to_vmem [thread:$0]  %s3940_s7, 3072, %s52_s26, [#allocation6], %s3238_s30, %s3238_s30, %s3239_s14  }
   0xf   :  { %s3136_s17 = scalar_lea.vmem %s80_s28, 3072  ;;  %p3141_p6 = scmp.lt.s32.totalorder %s80_s28, %s80_s28 }
  0x10   :  { %p3137_p5 = scmp.ne.s32.totalorder %s80_s28, %s3136_s17  ;;  %p3142_p7 = scmp.lt.s32.totalorder %s3136_s17, %s3136_s17 }
  0x12   :  { %p3143_p8 = por %p3142_p7, %p3141_p6 }
  0x14   :  { %p3144_p9 = pnand %p3143_p8, %p3137_p5 }
  0x16   :  { %3147 = shalt.err (!%p3144_p9)
}
  0x17   :  { %85 = dma.hbm_to_vmem [thread:$0]  %s3944_s11, 3072, %s80_s28, [#allocation9], %s3238_s30, %s3238_s30, %s3239_s14  }
  0x18   :  { %s3240_s20 = smov [#allocation2]   ;;  %s3241_s22 = smov [#allocation7]  }
  0x19   :  { %s35_s21 = sshll.u32 %s3240_s20, 4  ;;  %s63_s23 = sshll.u32 %s3241_s22, 4  ;;  %s36_s21 = int_to_ptr.vmem [resolvable:$true] %s35_s21  ;;  %s64_s23 = int_to_ptr.vmem [resolvable:$true] %s63_s23 }
  0x1a   :  { %s3156_s7 = scalar_lea.vmem %s36_s21, 3072  ;;  %p3161_p11 = scmp.lt.s32.totalorder %s36_s21, %s36_s21 }
  0x1b   :  { %p3157_p10 = scmp.ne.s32.totalorder %s36_s21, %s3156_s7  ;;  %p3162_p12 = scmp.lt.s32.totalorder %s3156_s7, %s3156_s7 }
  0x1d   :  { %p3163_p13 = por %p3162_p12, %p3161_p11 }
  0x1f   :  { %p3164_p0 = pnand %p3163_p13, %p3157_p10 }
  0x21   :  { %3167 = shalt.err (!%p3164_p0)
}
  0x22   :  { %41 = dma.hbm_to_vmem [thread:$0]  %s3937_s4, 3072, %s36_s21, [#allocation3], %s3238_s30, %s3238_s30, %s3239_s14  }
  0x23   :  { %s3176_s11 = scalar_lea.vmem %s64_s23, 3072  ;;  %p3181_p2 = scmp.lt.s32.totalorder %s64_s23, %s64_s23 }
  0x24   :  { %p3177_p1 = scmp.ne.s32.totalorder %s64_s23, %s3176_s11  ;;  %p3182_p3 = scmp.lt.s32.totalorder %s3176_s11, %s3176_s11 }
  0x26   :  { %p3183_p4 = por %p3182_p3, %p3181_p2 }
  0x28   :  { %p3184_p5 = pnand %p3183_p4, %p3177_p1 }
  0x2a   :  { %3187 = shalt.err (!%p3184_p5)
}
  0x2b   :  { %69 = dma.hbm_to_vmem [thread:$0]  %s3941_s8, 3072, %s64_s23, [#allocation6], %s3238_s30, %s3238_s30, %s3239_s14  }
  0x2c   :  { %s3242_s28 = smov [#allocation10]  }
  0x2d   :  { %s91_s29 = sshll.u32 %s3242_s28, 4  ;;  %s92_s29 = int_to_ptr.vmem [resolvable:$true] %s91_s29 }
  0x2e   :  { %s3196_s15 = scalar_lea.vmem %s92_s29, 3072  ;;  %p3201_p7 = scmp.lt.s32.totalorder %s92_s29, %s92_s29 }
  0x2f   :  { %p3197_p6 = scmp.ne.s32.totalorder %s92_s29, %s3196_s15  ;;  %p3202_p8 = scmp.lt.s32.totalorder %s3196_s15, %s3196_s15 }
  0x31   :  { %p3203_p9 = por %p3202_p8, %p3201_p7 }
  0x33   :  { %p3204_p10 = pnand %p3203_p9, %p3197_p6 }
  0x35   :  { %3207 = shalt.err (!%p3204_p10)
}
  0x36   :  { %97 = dma.hbm_to_vmem [thread:$0]  %s3945_s12, 3072, %s92_s29, [#allocation9], %s3238_s30, %s3238_s30, %s3239_s14  }
  0x37   :  { %3228 = dma.done.wait [#allocation3], 3072  }
  0x38   :  { %3229 = vsyncadd [#allocation3], 4294964224 }
  0x39   :  { %3230 = dma.done.wait [#allocation6], 6144  }
  0x3a   :  { %3231 = vsyncadd [#allocation6], 4294961152 }
  0x3b   :  { %3232 = dma.done.wait [#allocation9], 6144  }
  0x3c   :  { %3233 = vsyncadd [#allocation9], 4294961152  ;;  %v3243_v0 = vmov 0.0   ;;  %vm3244_vm0 = vmmov 0   ;;  %v114_v1 = vld [vmem:[%s3933_s0] sm:$0xff]  ;;  %v115_v2 = vld [vmem:[%s3933_s0 + $0x8] sm:$0xff]  ;;  %v239_v40 = vlaneseq }
  0x3d   :  { %2783 = vmatprep.subr.bf16.mxu0 %v3243_v0  ;;  %2785 = vmatprep.mubr.msk.bf16.mxu0 %vm3244_vm0, %v3243_v0  ;;  %v118_v3 = vpack.c.bf16 %v115_v2, %v114_v1  ;;  %v2934_v4 = vld [vmem:[%s3934_s1] sm:$0xff]   ;;  %vm124_vm1 = vcmask 130048   ;;  %s3245_s20 = smov 8   ;;  %s3246_s21 = smov 16   ;;  %v2935_v21 = vld [vmem:[%s3936_s3 + $0x38] sm:$0xff]   ;;  %v2936_v22 = vld [vmem:[%s3936_s3 + $0x30] sm:$0xff]  }
  0x3e   :  { %2789 = vmatprep.subr.bf16.mxu1 %v3243_v0  ;;  %2805 = vmatprep.mubr.msk.bf16.mxu1 %vm3244_vm0, %v3243_v0  ;;  %s3247_s0 = smov 32   ;;  %v2937_v23 = vld [vmem:[%s3936_s3 + $0x28] sm:$0xff]   ;;  %v2938_v24 = vld [vmem:[%s3936_s3 + $0x20] sm:$0xff]   ;;  %v2939_v25 = vld [vmem:[%s3936_s3 + $0x18] sm:$0xff]   ;;  %v3414_v46 = vand.u32 127, %v239_v40 }
  0x3f   :  { %2784 = vmatpush3.bf16.msra.mxu0 %v118_v3  ;;  %2790 = vmatpush3.bf16.msra.mxu1 %v2935_v21  ;;  %v2940_v26 = vld [vmem:[%s3936_s3 + $0x10] sm:$0xff]   ;;  %v2941_v27 = vld [vmem:[%s3936_s3 + $0x8] sm:$0xff]   ;;  %v2942_v28 = vld [vmem:[%s3936_s3] sm:$0xff]  }
  0x40   :  { %2791 = vmatprep.subr.bf16.mxu1 %v3243_v0  ;;  %v241_v50 = vshrl.u32 %v3414_v46, 3 }
  0x42   :  { %2786 = vmatmul.mubr.msk.bf16.vlgmr.msra.gmra.mxu0 %vm124_vm1, %v2934_v4  ;;  %v2462_v58 = vadd.s32 4294967295, %v241_v50  ;;  %vm247_vm4 = vcmp.ge.s32.totalorder %v241_v50, 1  ;;  %vm248_vm5 = vcmp.le.s32.totalorder %v241_v50, 8  ;;  %vm244_vm6 = vcmp.eq.s32.totalorder %v241_v50, 0  ;;  %v2943_v50 = vld [vmem:[#allocation2 + $0x78] sm:$0xff]  }
  0x43   :  { %2792 = vmatpush3.bf16.msra.mxu1 %v2936_v22  ;;  %vm249_vm11 = vmand %vm247_vm4, %vm248_vm5  ;;  %2624 = vmatprep.subr.bf16.mxu0 %v2943_v50 }
  0x44   :  { %2793 = vmatprep.subr.bf16.mxu1 %v3243_v0  ;;  %v243_v4 = vcvt.s32.f32 %v2462_v58  ;;  %v2951_v58 = vld [vmem:[#allocation2 + $0x28] sm:$0xff]  }
  0x47   :  { %2794 = vmatpush3.bf16.msra.mxu1 %v2937_v23 }
  0x48   :  { %2795 = vmatprep.subr.bf16.mxu1 %v3243_v0 }
  0x4b   :  { %2796 = vmatpush3.bf16.msra.mxu1 %v2938_v24 }
  0x4c   :  { %2797 = vmatprep.subr.bf16.mxu1 %v3243_v0 }
  0x4f   :  { %2798 = vmatpush3.bf16.msra.mxu1 %v2939_v25 }
  0x50   :  { %2799 = vmatprep.subr.bf16.mxu1 %v3243_v0 }
  0x53   :  { %2800 = vmatpush3.bf16.msra.mxu1 %v2940_v26 }
  0x54   :  { %2801 = vmatprep.subr.bf16.mxu1 %v3243_v0 }
  0x57   :  { %2802 = vmatpush3.bf16.msra.mxu1 %v2941_v27 }
  0x58   :  { %2803 = vmatprep.subr.bf16.mxu1 %v3243_v0 }
  0x5b   :  { %2804 = vmatpush3.bf16.msra.mxu1 %v2942_v28  ;;  %v2463_v28 = vsel %vm244_vm6, 1.0, %v3243_v0 }
  0x5c   :  { %2809 = vmatprep.subr.bf16.mxu1 %v3243_v0 }
 0x102   :  { %v162_v5 = vpop.f32.mrf.mxu0 }
 0x103   :  { %169 = vrot.lane.b32.xlu0 %v162_v5, %s3245_s20 }
 0x104   :  { %v2787_v6 = vpop.f32.mrf.mxu0 }
 0x106   :  { %v165_v7 = vpop.f32.mrf.mxu0 }
 0x107   :  { %171 = vrot.lane.b32.xlu0 %v165_v7, %s3245_s20 }
 0x108   :  { %v2788_v8 = vpop.f32.mrf.mxu0 }
 0x175   :  { %v170_v9 = vpop.permute.xlu0 %169 }
 0x176   :  { %v173_v10 = vadd.f32 %v170_v9, %v162_v5 }
 0x178   :  { %175 = vrot.lane.b32.xlu1 %v173_v10, %s3246_s21 }
 0x179   :  { %v172_v11 = vpop.permute.xlu0 %171 }
 0x17a   :  { %v174_v12 = vadd.f32 %v172_v11, %v165_v7  ;;  %v260_v11 = vadd.f32 3.0, %v243_v4 }
 0x17c   :  { %177 = vrot.lane.b32.xlu1 %v174_v12, %s3246_s21 }
 0x1ea   :  { %v176_v13 = vpop.permute.xlu1 %175 }
 0x1eb   :  { %v179_v14 = vadd.f32 %v176_v13, %v173_v10 }
 0x1ed   :  { %181 = vrot.lane.b32.xlu0 %v179_v14, %s3247_s0 }
 0x1ee   :  { %v178_v15 = vpop.permute.xlu1 %177 }
 0x1ef   :  { %v180_v16 = vadd.f32 %v178_v15, %v174_v12 }
 0x1f1   :  { %183 = vrot.lane.b32.xlu1 %v180_v16, %s3247_s0 }
 0x25f   :  { %v182_v17 = vpop.permute.xlu0 %181 }
 0x260   :  { %v185_v18 = vadd.f32 %v182_v17, %v179_v14  ;;  %v254_v17 = vadd.f32 1.0, %v243_v4 }
 0x262   :  { %187 = vrot.lane.b32.xlu0 %v185_v18, %s3238_s30 }
 0x263   :  { %v184_v19 = vpop.permute.xlu1 %183 }
 0x264   :  { %v186_v20 = vadd.f32 %v184_v19, %v180_v16  ;;  %v257_v16 = vadd.f32 2.0, %v243_v4 }
 0x266   :  { %189 = vrot.lane.b32.xlu1 %v186_v20, %s3238_s30 }
 0x2d4   :  { %v188_v29 = vpop.permute.xlu0 %187 }
 0x2d5   :  { %v3401_v30 = vadd.f32 %v188_v29, %v185_v18 }
 0x2d7   :  { %v193_v31 = vsub.f32 0.0, %v3401_v30  ;;  %v2460_v32 = vadd.f32 2.2, %v3401_v30 }
 0x2d8   :  { %v190_v33 = vpop.permute.xlu1 %189 }
 0x2d9   :  { %v195_v34 = vmul.f32 1.442695, %v193_v31  ;;  %v207_v35 = vmul.f32 2.5, %v2460_v32  ;;  %v3405_v36 = vadd.f32 %v190_v33, %v186_v20  ;;  %v2464_v31 = vsel %vm249_vm11, 1.0, %v3243_v0 }
 0x2db   :  { %3063 = vpow2.f32 %v195_v34  ;;  %v3407_v37 = vfloor.f32 %v207_v35  ;;  %v194_v38 = vsub.f32 0.0, %v3405_v36  ;;  %v2461_v39 = vadd.f32 2.2, %v3405_v36 }
 0x2dd   :  { %v211_v41 = vsub.f32 %v207_v35, %v3407_v37  ;;  %v197_v42 = vmul.f32 1.442695, %v194_v38  ;;  %v208_v43 = vmul.f32 2.5, %v2461_v39  ;;  %vm261_vm2 = vcmp.eq.f32.partialorder %v3407_v37, %v260_v11 }
 0x2de   :  { %vm258_vm7 = vcmp.eq.f32.partialorder %v3407_v37, %v257_v16  ;;  %vm255_vm9 = vcmp.eq.f32.partialorder %v3407_v37, %v254_v17  ;;  %vm252_vm12 = vcmp.eq.f32.partialorder %v3407_v37, %v243_v4 }
 0x2df   :  { %v213_v44 = vmul.f32 %v211_v41, %v211_v41  ;;  %3065 = vpow2.f32 %v197_v42  ;;  %v3412_v45 = vfloor.f32 %v208_v43  ;;  %v217_v51 = vsub.f32 1.0, %v211_v41 }
 0x2e1   :  { %v215_v47 = vmul.f32 %v213_v44, %v211_v41  ;;  %v212_v48 = vsub.f32 %v208_v43, %v3412_v45  ;;  %v221_v57 = vmul.f32 %v217_v51, %v217_v51  ;;  %vm262_vm3 = vcmp.eq.f32.partialorder %v3412_v45, %v260_v11 }
 0x2e2   :  { %vm259_vm8 = vcmp.eq.f32.partialorder %v3412_v45, %v257_v16  ;;  %vm256_vm10 = vcmp.eq.f32.partialorder %v3412_v45, %v254_v17  ;;  %vm253_vm13 = vcmp.eq.f32.partialorder %v3412_v45, %v243_v4  ;;  %v2960_v4 = vld [vmem:[#allocation2 + $0x10] sm:$0xff]  }
 0x2e3   :  { %v214_v49 = vmul.f32 %v212_v48, %v212_v48  ;;  %v227_v52 = vmul.f32 0.5, %v215_v47  ;;  %v218_v54 = vsub.f32 1.0, %v212_v48  ;;  %v219_v63 = vmul.f32 0.16666667, %v215_v47 }
 0x2e4   :  { %v223_v3 = vmul.f32 %v221_v57, %v217_v51  ;;  %v2944_v51 = vld [vmem:[#allocation2 + $0xb8] sm:$0xff]   ;;  %v2950_v57 = vld [vmem:[#allocation2 + $0xa8] sm:$0xff]  }
 0x2e5   :  { %v216_v53 = vmul.f32 %v214_v49, %v212_v48  ;;  %v229_v60 = vsub.f32 %v227_v52, %v213_v44  ;;  %v222_v61 = vmul.f32 %v218_v54, %v218_v54  ;;  %v233_v9 = vsub.f32 1.0, %v219_v63  ;;  %v2945_v52 = vld [vmem:[#allocation2 + $0x38] sm:$0xff]  }
 0x2e6   :  { %v225_v12 = vmul.f32 0.16666667, %v223_v3  ;;  %2625 = vmatpush3.bf16.msra.mxu0 %v2945_v52  ;;  %v2959_v3 = vld [vmem:[#allocation2 + $0x90] sm:$0xff]  }
 0x2e7   :  { %v228_v55 = vmul.f32 0.5, %v216_v53  ;;  %v220_v1 = vmul.f32 0.16666667, %v216_v53  ;;  %v231_v5 = vadd.f32 0.6666667, %v229_v60  ;;  %v224_v7 = vmul.f32 %v222_v61, %v218_v54  ;;  %v2946_v53 = vld [vmem:[#allocation2 + $0x70] sm:$0xff]  }
 0x2e8   :  { %v3064_v56 = vpop.eup %3063  ;;  %v263_v20 = vsel %vm261_vm2, %v225_v12, 0.0  ;;  %v2947_v54 = vld [vmem:[#allocation2 + $0xb0] sm:$0xff]   ;;  %2626 = vmatprep.subr.bf16.mxu0 %v2946_v53  ;;  %v2953_v60 = vld [vmem:[#allocation2 + $0xa0] sm:$0xff]  }
 0x2e9   :  { %v199_v59 = vadd.f32 1.0, %v3064_v56  ;;  %v230_v62 = vsub.f32 %v228_v55, %v214_v49  ;;  %v234_v10 = vsub.f32 1.0, %v220_v1  ;;  %v226_v13 = vmul.f32 0.16666667, %v224_v7  ;;  %v2948_v55 = vld [vmem:[#allocation2 + $0x30] sm:$0xff]   ;;  %v2949_v56 = vld [vmem:[#allocation2 + $0x68] sm:$0xff]  }
 0x2ea   :  { %v235_v14 = vsub.f32 %v233_v9, %v231_v5  ;;  %v265_v23 = vsel %vm258_vm7, %v231_v5, %v263_v20  ;;  %2627 = vmatpush3.bf16.msra.mxu0 %v2948_v55  ;;  %v2954_v61 = vld [vmem:[#allocation2 + $0x20] sm:$0xff]   ;;  %v2961_v5 = vld [vmem:[#allocation2 + $0x48] sm:$0xff]  }
 0x2eb   :  { %3067 = vrcp.f32 %v199_v59  ;;  %v232_v8 = vadd.f32 0.6666667, %v230_v62  ;;  %v264_v21 = vsel %vm262_vm3, %v226_v13, 0.0  ;;  %2628 = vmatprep.subr.bf16.mxu0 %v2949_v56  ;;  %v2952_v59 = vld [vmem:[#allocation2 + $0x60] sm:$0xff]   ;;  %v2955_v62 = vld [vmem:[#allocation2 + $0x58] sm:$0xff]   ;;  %v2963_v7 = vld [vmem:[#allocation2 + $0x8] sm:$0xff]  }
 0x2ec   :  { %v3066_v2 = vpop.eup %3065  ;;  %v237_v18 = vsub.f32 %v235_v14, %v225_v12  ;;  %v2965_v9 = vld [vmem:[#allocation2 + $0x80] sm:$0xff]  }
 0x2ed   :  { %v200_v6 = vadd.f32 1.0, %v3066_v2  ;;  %v236_v15 = vsub.f32 %v234_v10, %v232_v8  ;;  %v266_v24 = vsel %vm259_vm8, %v232_v8, %v264_v21  ;;  %v2958_v2 = vld [vmem:[#allocation2 + $0x50] sm:$0xff]   ;;  %v2964_v8 = vld [vmem:[#allocation2 + $0x40] sm:$0xff]  }
 0x2ee   :  { %v267_v26 = vsel %vm255_vm9, %v237_v18, %v265_v23  ;;  %2629 = vmatpush3.bf16.msra.mxu0 %v2951_v58  ;;  %v2966_v10 = vld [vmem:[#allocation2] sm:$0xff]  }
 0x2ef   :  { %3069 = vrcp.f32 %v200_v6  ;;  %v238_v19 = vsub.f32 %v236_v15, %v226_v13  ;;  %v269_v32 = vsel %vm252_vm12, %v219_v63, %v267_v26  ;;  %2630 = vmatprep.subr.bf16.mxu0 %v2952_v59  ;;  %v2956_v63 = vld [vmem:[#allocation2 + $0x98] sm:$0xff]   ;;  %v2962_v6 = vld [vmem:[#allocation2 + $0x88] sm:$0xff]  }
 0x2f0   :  { %v273_v39 = vmul.f32 %v2464_v31, %v269_v32 }
 0x2f1   :  { %v268_v27 = vsel %vm256_vm10, %v238_v19, %v266_v24 }
 0x2f2   :  { %v270_v33 = vsel %vm253_vm13, %v220_v1, %v268_v27  ;;  %2631 = vmatpush3.bf16.msra.mxu0 %v2954_v61  ;;  %v2957_v1 = vld [vmem:[#allocation2 + $0x18] sm:$0xff]  }
 0x2f3   :  { %2632 = vmatprep.subr.bf16.mxu0 %v2955_v62 }
 0x2f6   :  { %2633 = vmatpush3.bf16.msra.mxu0 %v2957_v1 }
 0x2f7   :  { %2634 = vmatprep.subr.bf16.mxu0 %v2958_v2 }
 0x2f8   :  { %v3068_v22 = vpop.eup %3067 }
 0x2f9   :  { %v203_v25 = vmul.f32 %v3068_v22, %v3401_v30  ;;  %v274_v30 = vmul.f32 %v2464_v31, %v270_v33 }
 0x2fa   :  { %2635 = vmatpush3.bf16.msra.mxu0 %v2960_v4 }
 0x2fb   :  { %v271_v34 = vmul.f32 %v2463_v28, %v203_v25  ;;  %2636 = vmatprep.subr.bf16.mxu0 %v2961_v5  ;;  %v441_v25 = vshrl.u32 %v3414_v46, 5 }
 0x2fc   :  { %v3070_v29 = vpop.eup %3069 }
 0x2fd   :  { %v204_v35 = vmul.f32 %v3070_v29, %v3405_v36  ;;  %v275_v40 = vadd.f32 %v273_v39, %v271_v34  ;;  %v478_v29 = vadd.s32 4, %v441_v25  ;;  %v515_v31 = vadd.s32 8, %v441_v25 }
 0x2fe   :  { %2637 = vmatpush3.bf16.msra.mxu0 %v2963_v7  ;;  %v2475_v33 = vadd.s32 4294967295, %v441_v25  ;;  %vm444_vm14 = vcmp.eq.s32.totalorder %v441_v25, 0  ;;  %vm447_vm15 = vcmp.ge.s32.totalorder %v441_v25, 1 }
 0x2ff   :  { %v272_v38 = vmul.f32 %v2463_v28, %v204_v35  ;;  %2638 = vmatprep.subr.bf16.mxu0 %v2964_v8  ;;  %v3487_v58 = vsel %vm447_vm15, 1.0, %v3243_v0  ;;  %vm522_vm2 = vcmp.le.s32.totalorder %v515_v31, 8 }
 0x300   :  { %v3508_v8 = vsel %vm522_vm2, 1.0, %v3243_v0 }
 0x301   :  { %v276_v41 = vadd.f32 %v274_v30, %v272_v38 }
 0x302   :  { %2639 = vmatpush3.bf16.msra.mxu0 %v2966_v10 }
 0x303   :  { %v277_v42 = vpack.c.bf16 %v276_v41, %v275_v40  ;;  %2829 = vmatprep.subr.bf16.mxu0 %v3243_v0  ;;  %v2478_v40 = vadd.s32 4294967295, %v478_v29  ;;  %v2479_v41 = vadd.s32 4294967295, %v515_v31 }
 0x305   :  { %2806 = vmatmul.mubr.bf16.vlgmr.msra.gmra.mxu1 %v277_v42  ;;  %v3474_v50 = vcvt.s32.f32 %v2479_v41 }
 0x306   :  { %2825 = vmatprep.mubr.msk.bf16.mxu1 %vm3244_vm0, %v3243_v0  ;;  %2810 = vmatpush3.bf16.msra.mxu1 %v2944_v51 }
 0x307   :  { %2811 = vmatprep.subr.bf16.mxu1 %v3243_v0  ;;  %v3497_v2 = vadd.f32 1.0, %v3474_v50  ;;  %v3503_v4 = vadd.f32 3.0, %v3474_v50 }
 0x30a   :  { %2812 = vmatpush3.bf16.msra.mxu1 %v2947_v54 }
 0x30b   :  { %2813 = vmatprep.subr.bf16.mxu1 %v3243_v0 }
 0x30e   :  { %2814 = vmatpush3.bf16.msra.mxu1 %v2950_v57  ;;  %v3484_v57 = vsel %vm444_vm14, 1.0, %v3243_v0 }
 0x30f   :  { %2815 = vmatprep.subr.bf16.mxu1 %v3243_v0 }
 0x312   :  { %2816 = vmatpush3.bf16.msra.mxu1 %v2953_v60 }
 0x313   :  { %2817 = vmatprep.subr.bf16.mxu1 %v3243_v0 }
 0x316   :  { %2818 = vmatpush3.bf16.msra.mxu1 %v2956_v63 }
 0x317   :  { %2819 = vmatprep.subr.bf16.mxu1 %v3243_v0 }
 0x31a   :  { %2820 = vmatpush3.bf16.msra.mxu1 %v2959_v3  ;;  %v3500_v3 = vadd.f32 2.0, %v3474_v50 }
 0x31b   :  { %2821 = vmatprep.subr.bf16.mxu1 %v3243_v0 }
 0x31e   :  { %2822 = vmatpush3.bf16.msra.mxu1 %v2962_v6 }
 0x31f   :  { %2823 = vmatprep.subr.bf16.mxu1 %v3243_v0 }
 0x322   :  { %2824 = vmatpush3.bf16.msra.mxu1 %v2965_v9 }
 0x323   :  { %2835 = vmatprep.subr.bf16.mxu1 %v3243_v0 }
 0x3c5   :  { %v376_v37 = vpop.f32.mrf.mxu1 }
 0x3c6   :  { %383 = vrot.lane.b32.xlu0 %v376_v37, %s3247_s0 }
 0x3c7   :  { %v2807_v43 = vpop.f32.mrf.mxu1 }
 0x3c9   :  { %v379_v44 = vpop.f32.mrf.mxu1 }
 0x3ca   :  { %385 = vrot.lane.b32.xlu1 %v379_v44, %s3247_s0 }
 0x3cb   :  { %v2808_v45 = vpop.f32.mrf.mxu1 }
 0x438   :  { %v384_v47 = vpop.permute.xlu0 %383 }
 0x439   :  { %v3434_v36 = vadd.f32 %v384_v47, %v376_v37  ;;  %v3468_v37 = vcvt.s32.f32 %v2475_v33 }
 0x43b   :  { %389 = vrot.lane.b32.xlu0 %v3434_v36, %s3238_s30  ;;  %v3477_v52 = vadd.f32 1.0, %v3468_v37  ;;  %v3490_v59 = vadd.f32 2.0, %v3468_v37  ;;  %v3494_v1 = vadd.f32 3.0, %v3468_v37 }
 0x43c   :  { %v386_v48 = vpop.permute.xlu1 %385 }
 0x43d   :  { %v3438_v49 = vadd.f32 %v386_v48, %v379_v44 }
 0x43f   :  { %391 = vrot.lane.b32.xlu1 %v3438_v49, %s3238_s30 }
 0x4ad   :  { %v390_v11 = vpop.permute.xlu0 %389 }
 0x4ae   :  { %v3452_v12 = vadd.f32 %v390_v11, %v3434_v36 }
 0x4b0   :  { %v395_v13 = vsub.f32 0.0, %v3452_v12  ;;  %v2473_v14 = vadd.f32 2.2, %v3452_v12 }
 0x4b1   :  { %v392_v15 = vpop.permute.xlu1 %391 }
 0x4b2   :  { %v397_v16 = vmul.f32 1.442695, %v395_v13  ;;  %v409_v17 = vmul.f32 2.5, %v2473_v14  ;;  %v3457_v18 = vadd.f32 %v392_v15, %v3438_v49  ;;  %v3472_v49 = vcvt.s32.f32 %v2478_v40 }
 0x4b4   :  { %3071 = vpow2.f32 %v397_v16  ;;  %v3459_v19 = vfloor.f32 %v409_v17  ;;  %v396_v20 = vsub.f32 0.0, %v3457_v18  ;;  %v2474_v21 = vadd.f32 2.2, %v3457_v18 }
 0x4b5   :  { %v3511_v9 = vadd.f32 1.0, %v3472_v49  ;;  %v3514_v10 = vadd.f32 2.0, %v3472_v49  ;;  %v3517_v11 = vadd.f32 3.0, %v3472_v49 }
 0x4b6   :  { %v413_v22 = vsub.f32 %v409_v17, %v3459_v19  ;;  %v399_v24 = vmul.f32 1.442695, %v396_v20  ;;  %v410_v26 = vmul.f32 2.5, %v2474_v21  ;;  %vm455_vm3 = vcmp.eq.f32.partialorder %v3459_v19, %v3477_v52 }
 0x4b7   :  { %vm458_vm4 = vcmp.eq.f32.partialorder %v3459_v19, %v3490_v59  ;;  %vm452_vm5 = vcmp.eq.f32.partialorder %v3459_v19, %v3468_v37  ;;  %vm461_vm6 = vcmp.eq.f32.partialorder %v3459_v19, %v3494_v1  ;;  %vm526_vm7 = vcmp.eq.f32.partialorder %v3459_v19, %v3474_v50 }
 0x4b8   :  { %v415_v23 = vmul.f32 %v413_v22, %v413_v22  ;;  %3073 = vpow2.f32 %v399_v24  ;;  %v3465_v28 = vfloor.f32 %v410_v26  ;;  %v419_v34 = vsub.f32 1.0, %v413_v22 }
 0x4b9   :  { %vm529_vm8 = vcmp.eq.f32.partialorder %v3459_v19, %v3497_v2  ;;  %vm535_vm9 = vcmp.eq.f32.partialorder %v3459_v19, %v3503_v4  ;;  %vm532_vm10 = vcmp.eq.f32.partialorder %v3459_v19, %v3500_v3  ;;  %vm498_vm14 = vcmp.eq.f32.partialorder %v3459_v19, %v3517_v11 }
 0x4ba   :  { %v417_v27 = vmul.f32 %v415_v23, %v413_v22  ;;  %v414_v32 = vsub.f32 %v410_v26, %v3465_v28  ;;  %v423_v44 = vmul.f32 %v419_v34, %v419_v34  ;;  %vm456_vm11 = vcmp.eq.f32.partialorder %v3465_v28, %v3477_v52 }
 0x4bb   :  { %vm462_vm12 = vcmp.eq.f32.partialorder %v3465_v28, %v3494_v1  ;;  %vm536_vm13 = vcmp.eq.f32.partialorder %v3465_v28, %v3503_v4  ;;  %vm459_vm15 = vcmp.eq.f32.partialorder %v3465_v28, %v3490_v59  ;;  %vm530_vm2 = vcmp.eq.f32.partialorder %v3465_v28, %v3497_v2 }
 0x4bc   :  { %v429_v35 = vmul.f32 0.5, %v417_v27  ;;  %v416_v38 = vmul.f32 %v414_v32, %v414_v32  ;;  %v420_v39 = vsub.f32 1.0, %v414_v32  ;;  %v3470_v36 = vmul.f32 0.16666667, %v417_v27 }
 0x4bd   :  { %v425_v53 = vmul.f32 %v423_v44, %v419_v34 }
 0x4be   :  { %v418_v42 = vmul.f32 %v416_v38, %v414_v32  ;;  %v431_v45 = vsub.f32 %v429_v35, %v415_v23  ;;  %v424_v48 = vmul.f32 %v420_v39, %v420_v39  ;;  %v435_v60 = vsub.f32 1.0, %v3470_v36 }
 0x4bf   :  { %v427_v5 = vmul.f32 0.16666667, %v425_v53 }
 0x4c0   :  { %v430_v47 = vmul.f32 0.5, %v418_v42  ;;  %v3479_v54 = vadd.f32 0.6666667, %v431_v45  ;;  %v3481_v55 = vmul.f32 0.16666667, %v418_v42  ;;  %v426_v62 = vmul.f32 %v424_v48, %v420_v39 }
 0x4c1   :  { %v3072_v30 = vpop.eup %3071  ;;  %v463_v16 = vsel %vm461_vm6, %v427_v5, 0.0  ;;  %v537_v17 = vsel %vm535_vm9, %v427_v5, 0.0  ;;  %vm533_vm6 = vcmp.eq.f32.partialorder %v3465_v28, %v3500_v3  ;;  %vm499_vm9 = vcmp.eq.f32.partialorder %v3465_v28, %v3517_v11 }
 0x4c2   :  { %v401_v43 = vadd.f32 1.0, %v3072_v30  ;;  %v432_v51 = vsub.f32 %v430_v47, %v416_v38  ;;  %v437_v6 = vsub.f32 %v435_v60, %v3479_v54  ;;  %v436_v7 = vsub.f32 1.0, %v3481_v55 }
 0x4c3   :  { %v428_v13 = vmul.f32 0.16666667, %v426_v62  ;;  %v465_v24 = vsel %vm458_vm4, %v3479_v54, %v463_v16  ;;  %v539_v25 = vsel %vm532_vm10, %v3479_v54, %v537_v17  ;;  %v500_v29 = vsel %vm498_vm14, %v427_v5, 0.0 }
 0x4c4   :  { %3075 = vrcp.f32 %v401_v43  ;;  %v434_v63 = vadd.f32 0.6666667, %v432_v51  ;;  %v439_v15 = vsub.f32 %v437_v6, %v427_v5  ;;  %vm495_vm4 = vcmp.eq.f32.partialorder %v3459_v19, %v3514_v10 }
 0x4c5   :  { %v3074_v56 = vpop.eup %3073  ;;  %v464_v21 = vsel %vm462_vm12, %v428_v13, 0.0  ;;  %v538_v22 = vsel %vm536_vm13, %v428_v13, 0.0  ;;  %v501_v34 = vsel %vm499_vm9, %v428_v13, 0.0  ;;  %vm527_vm10 = vcmp.eq.f32.partialorder %v3465_v28, %v3474_v50 }
 0x4c6   :  { %v402_v61 = vadd.f32 1.0, %v3074_v56  ;;  %v438_v14 = vsub.f32 %v436_v7, %v434_v63  ;;  %v467_v26 = vsel %vm455_vm3, %v439_v15, %v465_v24  ;;  %v541_v27 = vsel %vm529_vm8, %v439_v15, %v539_v25 }
 0x4c7   :  { %v466_v32 = vsel %vm459_vm15, %v434_v63, %v464_v21  ;;  %v540_v33 = vsel %vm533_vm6, %v434_v63, %v538_v22  ;;  %vm492_vm3 = vcmp.eq.f32.partialorder %v3459_v19, %v3511_v9  ;;  %vm453_vm8 = vcmp.eq.f32.partialorder %v3465_v28, %v3468_v37 }
 0x4c8   :  { %3077 = vrcp.f32 %v402_v61  ;;  %v440_v20 = vsub.f32 %v438_v14, %v428_v13  ;;  %vm493_vm12 = vcmp.eq.f32.partialorder %v3465_v28, %v3511_v9  ;;  %vm496_vm13 = vcmp.eq.f32.partialorder %v3465_v28, %v3514_v10 }
 0x4c9   :  { %v543_v39 = vsel %vm526_vm7, %v3470_v36, %v541_v27  ;;  %v502_v30 = vsel %vm495_vm4, %v3479_v54, %v500_v29  ;;  %v503_v40 = vsel %vm496_vm13, %v434_v63, %v501_v34  ;;  %vm490_vm7 = vcmp.eq.f32.partialorder %v3465_v28, %v3472_v49 }
 0x4ca   :  { %v468_v35 = vsel %vm456_vm11, %v440_v20, %v466_v32  ;;  %v542_v38 = vsel %vm530_vm2, %v440_v20, %v540_v33  ;;  %v504_v48 = vsel %vm492_vm3, %v439_v15, %v502_v30  ;;  %v505_v51 = vsel %vm493_vm12, %v440_v20, %v503_v40  ;;  %v2506_v33 = vld [vmem:[%s3939_s6] ss:$0 sm:$0xff] }
 0x4cb   :  { %v470_v44 = vsel %vm453_vm8, %v3481_v55, %v468_v35  ;;  %v544_v45 = vsel %vm527_vm10, %v3481_v55, %v542_v38  ;;  %v547_v54 = vmul.f32 %v3508_v8, %v543_v39  ;;  %v507_v6 = vsel %vm490_vm7, %v3481_v55, %v505_v51  ;;  %v3107_v39 = vld [vmem:[%s3934_s1] sm:$0xff]   ;;  %v2968_v51 = vld [vmem:[#allocation5 + $0xb8] sm:$0xff]  }
 0x4cc   :  { %v474_v60 = vmul.f32 %v3487_v58, %v470_v44  ;;  %v548_v61 = vmul.f32 %v3508_v8, %v544_v45 }
 0x4d1   :  { %v3076_v23 = vpop.eup %3075 }
 0x4d2   :  { %v405_v31 = vmul.f32 %v3076_v23, %v3452_v12  ;;  %v469_v12 = vsel %vm452_vm5, %v3470_v36, %v467_v26  ;;  %vm489_vm5 = vcmp.eq.f32.partialorder %v3459_v19, %v3472_v49  ;;  %v2505_v26 = vld [vmem:[%s3938_s5] ss:$0 sm:$0xff] }
 0x4d3   :  { %v473_v53 = vmul.f32 %v3487_v58, %v469_v12  ;;  %v506_v5 = vsel %vm489_vm5, %v3470_v36, %v504_v48  ;;  %v2967_v48 = vld [vmem:[#allocation5 + $0x78] sm:$0xff]  }
 0x4d4   :  { %v471_v42 = vmul.f32 %v3484_v57, %v405_v31  ;;  %v508_v43 = vmul.f32 0.0, %v405_v31 }
 0x4d5   :  { %v3078_v41 = vpop.eup %3077 }
 0x4d6   :  { %v406_v47 = vmul.f32 %v3078_v41, %v3457_v18  ;;  %v475_v62 = vadd.f32 %v473_v53, %v471_v42  ;;  %v549_v63 = vadd.f32 %v547_v54, %v508_v43  ;;  %v512_v14 = vadd.f32 %v508_v43, %v506_v5  ;;  %v2969_v53 = vld [vmem:[#allocation5 + $0x38] sm:$0xff]   ;;  %v2970_v54 = vld [vmem:[#allocation5 + $0x70] sm:$0xff]   ;;  %v2977_v5 = vld [vmem:[#allocation5 + $0xa0] sm:$0xff]  }
 0x4d8   :  { %v472_v56 = vmul.f32 %v3484_v57, %v406_v47  ;;  %v509_v18 = vmul.f32 0.0, %v406_v47 }
 0x4da   :  { %v476_v7 = vadd.f32 %v474_v60, %v472_v56  ;;  %v550_v13 = vadd.f32 %v548_v61, %v509_v18  ;;  %v513_v19 = vadd.f32 %v509_v18, %v507_v6  ;;  %v2971_v56 = vld [vmem:[#allocation5 + $0xb0] sm:$0xff]   ;;  %v2973_v18 = vld [vmem:[#allocation5 + $0x68] sm:$0xff]   ;;  %v2978_v6 = vld [vmem:[#allocation5 + $0x20] sm:$0xff]  }
 0x4db   :  { %v2972_v60 = vld [vmem:[#allocation5 + $0x30] sm:$0xff]   ;;  %v2974_v61 = vld [vmem:[#allocation5 + $0xa8] sm:$0xff]  }
 0x4dc   :  { %v514_v15 = vpack.c.bf16 %v513_v19, %v512_v14  ;;  %v551_v16 = vpack.c.bf16 %v550_v13, %v549_v63  ;;  %v477_v28 = vpack.c.bf16 %v476_v7, %v475_v62  ;;  %v2975_v62 = vld [vmem:[#allocation5 + $0x28] sm:$0xff]   ;;  %v2976_v63 = vld [vmem:[#allocation5 + $0x60] sm:$0xff]   ;;  %v2979_v7 = vld [vmem:[#allocation5 + $0x58] sm:$0xff]  }
 0x4dd   :  { %v2980_v13 = vld [vmem:[#allocation5 + $0x98] sm:$0xff]   ;;  %v2982_v19 = vld [vmem:[#allocation5 + $0x50] sm:$0xff]  }
 0x4de   :  { %776 = vmatprep.mubr.bf16.mxu0 %v514_v15  ;;  %2826 = vmatmul.mubr.bf16.vlgmr.msra.gmra.mxu1 %v551_v16  ;;  %v2981_v14 = vld [vmem:[#allocation5 + $0x18] sm:$0xff]   ;;  %v2983_v15 = vld [vmem:[#allocation5 + $0x90] sm:$0xff]  }
 0x4df   :  { %777 = vmatmul.mubr.bf16.vlgmr.msra.gmra.mxu0 %v477_v28  ;;  %2851 = vmatprep.mubr.msk.bf16.mxu1 %vm3244_vm0, %v3243_v0  ;;  %v2984_v16 = vld [vmem:[#allocation5 + $0x10] sm:$0xff]   ;;  %v2985_v28 = vld [vmem:[#allocation5 + $0x48] sm:$0xff]  }
 0x4e0   :  { %2831 = vmatprep.mubr.msk.bf16.mxu0 %vm3244_vm0, %v3243_v0  ;;  %2836 = vmatpush3.bf16.msra.mxu1 %v2968_v51 }
 0x4e1   :  { %2837 = vmatprep.subr.bf16.mxu1 %v3243_v0 }
 0x4e4   :  { %2838 = vmatpush3.bf16.msra.mxu1 %v2971_v56 }
 0x4e5   :  { %2839 = vmatprep.subr.bf16.mxu1 %v3243_v0 }
 0x4e8   :  { %2840 = vmatpush3.bf16.msra.mxu1 %v2974_v61 }
 0x4e9   :  { %2841 = vmatprep.subr.bf16.mxu1 %v3243_v0 }
 0x4ec   :  { %2842 = vmatpush3.bf16.msra.mxu1 %v2977_v5 }
 0x4ed   :  { %2843 = vmatprep.subr.bf16.mxu1 %v3243_v0 }
 0x4f0   :  { %2844 = vmatpush3.bf16.msra.mxu1 %v2980_v13 }
 0x4f1   :  { %2845 = vmatprep.subr.bf16.mxu1 %v3243_v0 }
 0x4f4   :  { %2846 = vmatpush3.bf16.msra.mxu1 %v2983_v15 }
 0x4f5   :  { %2847 = vmatprep.subr.bf16.mxu1 %v3243_v0 }
 0x59e   :  { %v819_v17 = vpop.f32.mrf.mxu1 }
 0x59f   :  { %v2640_v36 = vpop.f32.mrf.mxu0 }
 0x5a0   :  { %v2827_v20 = vpop.f32.mrf.mxu1 }
 0x5a1   :  { %v2641_v55 = vpop.f32.mrf.mxu0  ;;  %v2988_v20 = vld [vmem:[#allocation5 + $0x40] sm:$0xff]  }
 0x5a2   :  { %v2642_v21 = vadd.f32 %v2641_v55, %v2640_v36  ;;  %v822_v22 = vpop.f32.mrf.mxu1  ;;  %v2987_v36 = vld [vmem:[#allocation5 + $0x8] sm:$0xff]   ;;  %v2989_v55 = vld [vmem:[#allocation5 + $0x80] sm:$0xff]  }
 0x5a3   :  { %v2643_v23 = vpop.f32.mrf.mxu0 }
 0x5a4   :  { %v820_v24 = vadd.f32 %v2642_v21, %v819_v17  ;;  %v2828_v25 = vpop.f32.mrf.mxu1  ;;  %v2986_v17 = vld [vmem:[#allocation5 + $0x88] sm:$0xff]   ;;  %v2990_v21 = vld [vmem:[#allocation5] sm:$0xff]  }
 0x5a5   :  { %v2644_v27 = vpop.f32.mrf.mxu0  ;;  %2848 = vmatpush3.bf16.msra.mxu1 %v2986_v17 }
 0x5a6   :  { %v2645_v29 = vadd.f32 %v2644_v27, %v2643_v23  ;;  %v833_v31 = vmul.f32 %v2505_v26, %v820_v24  ;;  %2849 = vmatprep.subr.bf16.mxu1 %v3243_v0 }
 0x5a8   :  { %v823_v32 = vadd.f32 %v2645_v29, %v822_v22  ;;  %v842_v35 = vadd.f32 %v2506_v33, %v833_v31 }
 0x5a9   :  { %2850 = vmatpush3.bf16.msra.mxu1 %v2989_v55 }
 0x5aa   :  { %v834_v34 = vmul.f32 %v2505_v26, %v823_v32  ;;  %2855 = vmatprep.subr.bf16.mxu1 %v3243_v0 }
 0x5ac   :  { %v843_v38 = vadd.f32 %v2506_v33, %v834_v34 }
 0x5ae   :  { %v844_v12 = vpack.c.bf16 %v843_v38, %v842_v35 }
 0x5b0   :  { %2830 = vmatpush3.bf16.msra.mxu0 %v844_v12 }
 0x5b1   :  { %2657 = vmatprep.subr.bf16.mxu0 %v2967_v48 }
 0x5b3   :  { %2832 = vmatmul.mubr.msk.bf16.vlgmr.msra.gmra.mxu0 %vm124_vm1, %v3107_v39 }
 0x5b4   :  { %2658 = vmatpush3.bf16.msra.mxu0 %v2969_v53 }
 0x5b5   :  { %2659 = vmatprep.subr.bf16.mxu0 %v2970_v54 }
 0x5b8   :  { %2660 = vmatpush3.bf16.msra.mxu0 %v2972_v60 }
 0x5b9   :  { %2661 = vmatprep.subr.bf16.mxu0 %v2973_v18 }
 0x5bc   :  { %2662 = vmatpush3.bf16.msra.mxu0 %v2975_v62 }
 0x5bd   :  { %2663 = vmatprep.subr.bf16.mxu0 %v2976_v63 }
 0x5c0   :  { %2664 = vmatpush3.bf16.msra.mxu0 %v2978_v6 }
 0x5c1   :  { %2665 = vmatprep.subr.bf16.mxu0 %v2979_v7 }
 0x5c4   :  { %2666 = vmatpush3.bf16.msra.mxu0 %v2981_v14 }
 0x5c5   :  { %2667 = vmatprep.subr.bf16.mxu0 %v2982_v19 }
 0x5c8   :  { %2668 = vmatpush3.bf16.msra.mxu0 %v2984_v16 }
 0x5c9   :  { %2669 = vmatprep.subr.bf16.mxu0 %v2985_v28 }
 0x5cc   :  { %2670 = vmatpush3.bf16.msra.mxu0 %v2987_v36 }
 0x5cd   :  { %2671 = vmatprep.subr.bf16.mxu0 %v2988_v20 }
 0x5d0   :  { %2672 = vmatpush3.bf16.msra.mxu0 %v2990_v21 }
 0x673   :  { %v879_v30 = vpop.f32.mrf.mxu0 }
 0x674   :  { %886 = vrot.lane.b32.xlu0 %v879_v30, %s3247_s0 }
 0x675   :  { %v2833_v40 = vpop.f32.mrf.mxu0 }
 0x677   :  { %v882_v41 = vpop.f32.mrf.mxu0 }
 0x678   :  { %888 = vrot.lane.b32.xlu1 %v882_v41, %s3247_s0 }
 0x679   :  { %v2834_v42 = vpop.f32.mrf.mxu0 }
 0x6e6   :  { %v887_v43 = vpop.permute.xlu0 %886 }
 0x6e7   :  { %v890_v44 = vadd.f32 %v887_v43, %v879_v30 }
 0x6e9   :  { %892 = vrot.lane.b32.xlu0 %v890_v44, %s3238_s30 }
 0x6ea   :  { %v889_v45 = vpop.permute.xlu1 %888 }
 0x6eb   :  { %v3622_v47 = vadd.f32 %v889_v45, %v882_v41 }
 0x6ed   :  { %894 = vrot.lane.b32.xlu1 %v3622_v47, %s3238_s30 }
 0x75b   :  { %v893_v22 = vpop.permute.xlu0 %892 }
 0x75c   :  { %v3634_v23 = vadd.f32 %v893_v22, %v890_v44 }
 0x75e   :  { %v898_v24 = vsub.f32 0.0, %v3634_v23  ;;  %v2508_v25 = vadd.f32 2.2, %v3634_v23 }
 0x75f   :  { %v895_v26 = vpop.permute.xlu1 %894 }
 0x760   :  { %v900_v27 = vmul.f32 1.442695, %v898_v24  ;;  %v912_v29 = vmul.f32 2.5, %v2508_v25  ;;  %v3639_v31 = vadd.f32 %v895_v26, %v3622_v47 }
 0x762   :  { %3079 = vpow2.f32 %v900_v27  ;;  %v3641_v32 = vfloor.f32 %v912_v29  ;;  %v899_v33 = vsub.f32 0.0, %v3639_v31  ;;  %v2509_v34 = vadd.f32 2.2, %v3639_v31 }
 0x764   :  { %v916_v35 = vsub.f32 %v912_v29, %v3641_v32  ;;  %v902_v12 = vmul.f32 1.442695, %v899_v33  ;;  %v913_v39 = vmul.f32 2.5, %v2509_v34  ;;  %vm946_vm11 = vcmp.eq.f32.partialorder %v3641_v32, %v3477_v52 }
 0x765   :  { %vm948_vm14 = vcmp.eq.f32.partialorder %v3641_v32, %v3490_v59  ;;  %vm944_vm15 = vcmp.eq.f32.partialorder %v3641_v32, %v3468_v37  ;;  %vm950_vm2 = vcmp.eq.f32.partialorder %v3641_v32, %v3494_v1  ;;  %vm990_vm6 = vcmp.eq.f32.partialorder %v3641_v32, %v3474_v50 }
 0x766   :  { %v918_v38 = vmul.f32 %v916_v35, %v916_v35  ;;  %3081 = vpow2.f32 %v902_v12  ;;  %v3646_v40 = vfloor.f32 %v913_v39  ;;  %v922_v42 = vsub.f32 1.0, %v916_v35 }
 0x767   :  { %vm992_vm9 = vcmp.eq.f32.partialorder %v3641_v32, %v3497_v2  ;;  %vm996_vm3 = vcmp.eq.f32.partialorder %v3641_v32, %v3503_v4  ;;  %vm994_vm4 = vcmp.eq.f32.partialorder %v3641_v32, %v3500_v3  ;;  %vm973_vm13 = vcmp.eq.f32.partialorder %v3641_v32, %v3517_v11 }
 0x768   :  { %v920_v30 = vmul.f32 %v918_v38, %v916_v35  ;;  %v917_v41 = vsub.f32 %v913_v39, %v3646_v40  ;;  %v926_v53 = vmul.f32 %v922_v42, %v922_v42  ;;  %vm947_vm8 = vcmp.eq.f32.partialorder %v3646_v40, %v3477_v52 }
 0x769   :  { %vm951_vm10 = vcmp.eq.f32.partialorder %v3646_v40, %v3494_v1  ;;  %vm997_vm12 = vcmp.eq.f32.partialorder %v3646_v40, %v3503_v4  ;;  %vm949_vm5 = vcmp.eq.f32.partialorder %v3646_v40, %v3490_v59  ;;  %vm993_vm7 = vcmp.eq.f32.partialorder %v3646_v40, %v3497_v2 }
 0x76a   :  { %v932_v43 = vmul.f32 0.5, %v920_v30  ;;  %v919_v44 = vmul.f32 %v917_v41, %v917_v41  ;;  %v923_v45 = vsub.f32 1.0, %v917_v41  ;;  %v3649_v60 = vmul.f32 0.16666667, %v920_v30 }
 0x76b   :  { %v928_v62 = vmul.f32 %v926_v53, %v922_v42 }
 0x76c   :  { %v921_v48 = vmul.f32 %v919_v44, %v917_v41  ;;  %v934_v54 = vsub.f32 %v932_v43, %v918_v38  ;;  %v927_v18 = vmul.f32 %v923_v45, %v923_v45  ;;  %v938_v7 = vsub.f32 1.0, %v3649_v60 }
 0x76d   :  { %v930_v15 = vmul.f32 0.16666667, %v928_v62 }
 0x76e   :  { %v933_v56 = vmul.f32 0.5, %v921_v48  ;;  %v936_v63 = vadd.f32 0.6666667, %v934_v54  ;;  %v3651_v5 = vmul.f32 0.16666667, %v921_v48  ;;  %v929_v14 = vmul.f32 %v927_v18, %v923_v45 }
 0x76f   :  { %v3080_v47 = vpop.eup %3079  ;;  %v952_v55 = vsel %vm950_vm2, %v930_v15, 0.0  ;;  %v998_v21 = vsel %vm996_vm3, %v930_v15, 0.0  ;;  %vm995_vm2 = vcmp.eq.f32.partialorder %v3646_v40, %v3500_v3  ;;  %vm974_vm3 = vcmp.eq.f32.partialorder %v3646_v40, %v3517_v11 }
 0x770   :  { %v904_v51 = vadd.f32 1.0, %v3080_v47  ;;  %v935_v61 = vsub.f32 %v933_v56, %v919_v44  ;;  %v940_v16 = vsub.f32 %v938_v7, %v936_v63  ;;  %v939_v28 = vsub.f32 1.0, %v3651_v5 }
 0x771   :  { %v931_v17 = vmul.f32 0.16666667, %v929_v14  ;;  %v954_v27 = vsel %vm948_vm14, %v936_v63, %v952_v55  ;;  %v1000_v29 = vsel %vm994_vm4, %v936_v63, %v998_v21  ;;  %v975_v35 = vsel %vm973_vm13, %v930_v15, 0.0 }
 0x772   :  { %3083 = vrcp.f32 %v904_v51  ;;  %v937_v19 = vadd.f32 0.6666667, %v935_v61  ;;  %v942_v20 = vsub.f32 %v940_v16, %v930_v15  ;;  %vm971_vm14 = vcmp.eq.f32.partialorder %v3641_v32, %v3514_v10 }
 0x773   :  { %v3082_v6 = vpop.eup %3081  ;;  %v953_v24 = vsel %vm951_vm10, %v931_v17, 0.0  ;;  %v999_v25 = vsel %vm997_vm12, %v931_v17, 0.0  ;;  %v976_v30 = vsel %vm974_vm3, %v931_v17, 0.0  ;;  %vm991_vm4 = vcmp.eq.f32.partialorder %v3646_v40, %v3474_v50 }
 0x774   :  { %v905_v13 = vadd.f32 1.0, %v3082_v6  ;;  %v941_v36 = vsub.f32 %v939_v28, %v937_v19  ;;  %v956_v33 = vsel %vm946_vm11, %v942_v20, %v954_v27  ;;  %v1002_v34 = vsel %vm992_vm9, %v942_v20, %v1000_v29 }
 0x775   :  { %v955_v12 = vsel %vm949_vm5, %v937_v19, %v953_v24  ;;  %v1001_v39 = vsel %vm995_vm2, %v937_v19, %v999_v25  ;;  %vm969_vm11 = vcmp.eq.f32.partialorder %v3641_v32, %v3511_v9  ;;  %vm945_vm9 = vcmp.eq.f32.partialorder %v3646_v40, %v3468_v37 }
 0x776   :  { %3085 = vrcp.f32 %v905_v13  ;;  %v943_v22 = vsub.f32 %v941_v36, %v931_v17  ;;  %vm970_vm10 = vcmp.eq.f32.partialorder %v3646_v40, %v3511_v9  ;;  %vm972_vm12 = vcmp.eq.f32.partialorder %v3646_v40, %v3514_v10 }
 0x777   :  { %v1004_v43 = vsel %vm990_vm6, %v3649_v60, %v1002_v34  ;;  %v977_v44 = vsel %vm971_vm14, %v936_v63, %v975_v35  ;;  %v978_v45 = vsel %vm972_vm12, %v937_v19, %v976_v30  ;;  %vm968_vm6 = vcmp.eq.f32.partialorder %v3646_v40, %v3472_v49 }
 0x778   :  { %v957_v41 = vsel %vm947_vm8, %v943_v22, %v955_v12  ;;  %v1003_v42 = vsel %vm993_vm7, %v943_v22, %v1001_v39  ;;  %v979_v18 = vsel %vm969_vm11, %v942_v20, %v977_v44  ;;  %v980_v61 = vsel %vm970_vm10, %v943_v22, %v978_v45  ;;  %v2995_v44 = vld [vmem:[#allocation7 + $0xb0] sm:$0xff]  }
 0x779   :  { %v959_v53 = vsel %vm945_vm9, %v3651_v5, %v957_v41  ;;  %v1005_v54 = vsel %vm991_vm4, %v3651_v5, %v1003_v42  ;;  %v1008_v63 = vmul.f32 %v3508_v8, %v1004_v43  ;;  %v982_v16 = vsel %vm968_vm6, %v3651_v5, %v980_v61  ;;  %v2991_v41 = vld [vmem:[#allocation7 + $0x78] sm:$0xff]   ;;  %v2994_v43 = vld [vmem:[#allocation7 + $0x70] sm:$0xff]  }
 0x77a   :  { %v963_v7 = vmul.f32 %v3487_v58, %v959_v53  ;;  %v1009_v13 = vmul.f32 %v3508_v8, %v1005_v54  ;;  %v2992_v42 = vld [vmem:[#allocation7 + $0xb8] sm:$0xff]   ;;  %2688 = vmatprep.subr.bf16.mxu0 %v2991_v41  ;;  %v2996_v45 = vld [vmem:[#allocation7 + $0x30] sm:$0xff]   ;;  %v3000_v53 = vld [vmem:[#allocation7 + $0x60] sm:$0xff]  }
 0x77b   :  { %v3001_v54 = vld [vmem:[#allocation7 + $0xa0] sm:$0xff]   ;;  %v3004_v61 = vld [vmem:[#allocation7 + $0x98] sm:$0xff]  }
 0x77f   :  { %v3084_v26 = vpop.eup %3083 }
 0x780   :  { %v908_v38 = vmul.f32 %v3084_v26, %v3634_v23  ;;  %v958_v23 = vsel %vm944_vm15, %v3649_v60, %v956_v33  ;;  %vm967_vm15 = vcmp.eq.f32.partialorder %v3641_v32, %v3472_v49 }
 0x781   :  { %v962_v62 = vmul.f32 %v3487_v58, %v958_v23  ;;  %v981_v15 = vsel %vm967_vm15, %v3649_v60, %v979_v18  ;;  %v2993_v23 = vld [vmem:[#allocation7 + $0x38] sm:$0xff]  }
 0x782   :  { %v960_v48 = vmul.f32 %v3484_v57, %v908_v38  ;;  %v983_v51 = vmul.f32 0.0, %v908_v38  ;;  %v3003_v18 = vld [vmem:[#allocation7 + $0x58] sm:$0xff]  }
 0x783   :  { %v3086_v47 = vpop.eup %3085 }
 0x784   :  { %v909_v56 = vmul.f32 %v3086_v47, %v3639_v31  ;;  %v964_v14 = vadd.f32 %v962_v62, %v960_v48  ;;  %v1010_v19 = vadd.f32 %v1008_v63, %v983_v51  ;;  %v987_v36 = vadd.f32 %v983_v51, %v981_v15  ;;  %v2997_v47 = vld [vmem:[#allocation7 + $0x68] sm:$0xff]   ;;  %v3005_v62 = vld [vmem:[#allocation7 + $0x18] sm:$0xff]   ;;  %v3006_v63 = vld [vmem:[#allocation7 + $0x50] sm:$0xff]  }
 0x785   :  { %v2998_v48 = vld [vmem:[#allocation7 + $0xa8] sm:$0xff]   ;;  %v3013_v15 = vld [vmem:[#allocation7 + $0x80] sm:$0xff]  }
 0x786   :  { %v961_v6 = vmul.f32 %v3484_v57, %v909_v56  ;;  %v984_v31 = vmul.f32 0.0, %v909_v56  ;;  %v2999_v51 = vld [vmem:[#allocation7 + $0x28] sm:$0xff]   ;;  %v3002_v56 = vld [vmem:[#allocation7 + $0x20] sm:$0xff]  }
 0x788   :  { %v965_v28 = vadd.f32 %v963_v7, %v961_v6  ;;  %v1011_v17 = vadd.f32 %v1009_v13, %v984_v31  ;;  %v988_v32 = vadd.f32 %v984_v31, %v982_v16  ;;  %v3007_v6 = vld [vmem:[#allocation7 + $0x90] sm:$0xff]   ;;  %v3009_v31 = vld [vmem:[#allocation7 + $0x48] sm:$0xff]   ;;  %v3014_v16 = vld [vmem:[#allocation7] sm:$0xff]  }
 0x789   :  { %v3008_v7 = vld [vmem:[#allocation7 + $0x10] sm:$0xff]   ;;  %v3010_v13 = vld [vmem:[#allocation7 + $0x88] sm:$0xff]  }
 0x78a   :  { %v989_v20 = vpack.c.bf16 %v988_v32, %v987_v36  ;;  %v1012_v55 = vpack.c.bf16 %v1011_v17, %v1010_v19  ;;  %v966_v40 = vpack.c.bf16 %v965_v28, %v964_v14  ;;  %v3011_v14 = vld [vmem:[#allocation7 + $0x8] sm:$0xff]   ;;  %v3012_v19 = vld [vmem:[#allocation7 + $0x40] sm:$0xff]  }
 0x78c   :  { %1237 = vmatprep.mubr.bf16.mxu0 %v989_v20  ;;  %2852 = vmatmul.mubr.bf16.vlgmr.msra.gmra.mxu1 %v1012_v55 }
 0x78d   :  { %1238 = vmatmul.mubr.bf16.vlgmr.msra.gmra.mxu0 %v966_v40  ;;  %2871 = vmatprep.mubr.msk.bf16.mxu1 %vm3244_vm0, %v3243_v0 }
 0x78e   :  { %2856 = vmatpush3.bf16.msra.mxu1 %v2992_v42  ;;  %2689 = vmatpush3.bf16.msra.mxu0 %v2993_v23 }
 0x78f   :  { %2857 = vmatprep.subr.bf16.mxu1 %v3243_v0  ;;  %2690 = vmatprep.subr.bf16.mxu0 %v2994_v43 }
 0x792   :  { %2858 = vmatpush3.bf16.msra.mxu1 %v2995_v44  ;;  %2691 = vmatpush3.bf16.msra.mxu0 %v2996_v45 }
 0x793   :  { %2859 = vmatprep.subr.bf16.mxu1 %v3243_v0  ;;  %2692 = vmatprep.subr.bf16.mxu0 %v2997_v47 }
 0x796   :  { %2860 = vmatpush3.bf16.msra.mxu1 %v2998_v48  ;;  %2693 = vmatpush3.bf16.msra.mxu0 %v2999_v51 }
 0x797   :  { %2861 = vmatprep.subr.bf16.mxu1 %v3243_v0  ;;  %2694 = vmatprep.subr.bf16.mxu0 %v3000_v53 }
 0x79a   :  { %2862 = vmatpush3.bf16.msra.mxu1 %v3001_v54  ;;  %2695 = vmatpush3.bf16.msra.mxu0 %v3002_v56 }
 0x79b   :  { %2863 = vmatprep.subr.bf16.mxu1 %v3243_v0  ;;  %2696 = vmatprep.subr.bf16.mxu0 %v3003_v18 }
 0x79e   :  { %2864 = vmatpush3.bf16.msra.mxu1 %v3004_v61  ;;  %2697 = vmatpush3.bf16.msra.mxu0 %v3005_v62 }
 0x79f   :  { %2865 = vmatprep.subr.bf16.mxu1 %v3243_v0  ;;  %2698 = vmatprep.subr.bf16.mxu0 %v3006_v63 }
 0x7a2   :  { %2866 = vmatpush3.bf16.msra.mxu1 %v3007_v6  ;;  %2699 = vmatpush3.bf16.msra.mxu0 %v3008_v7 }
 0x7a3   :  { %2867 = vmatprep.subr.bf16.mxu1 %v3243_v0  ;;  %2700 = vmatprep.subr.bf16.mxu0 %v3009_v31 }
 0x7a6   :  { %2868 = vmatpush3.bf16.msra.mxu1 %v3010_v13  ;;  %2701 = vmatpush3.bf16.msra.mxu0 %v3011_v14 }
 0x7a7   :  { %2869 = vmatprep.subr.bf16.mxu1 %v3243_v0  ;;  %2702 = vmatprep.subr.bf16.mxu0 %v3012_v19 }
 0x7aa   :  { %2870 = vmatpush3.bf16.msra.mxu1 %v3013_v15  ;;  %2703 = vmatpush3.bf16.msra.mxu0 %v3014_v16 }
 0x7ab   :  { %2881 = vmatprep.subr.bf16.mxu1 %v3243_v0  ;;  %2875 = vmatprep.subr.bf16.mxu0 %v3243_v0 }
 0x84c   :  { %v1280_v21 = vpop.f32.mrf.mxu1 }
 0x84d   :  { %v2673_v22 = vpop.f32.mrf.mxu0 }
 0x84e   :  { %v2853_v24 = vpop.f32.mrf.mxu1 }
 0x84f   :  { %v2674_v25 = vpop.f32.mrf.mxu0 }
 0x850   :  { %v2675_v60 = vadd.f32 %v2674_v25, %v2673_v22  ;;  %v1283_v26 = vpop.f32.mrf.mxu1 }
 0x851   :  { %v2676_v5 = vpop.f32.mrf.mxu0 }
 0x852   :  { %v1281_v27 = vadd.f32 %v2675_v60, %v1280_v21  ;;  %v2854_v29 = vpop.f32.mrf.mxu1 }
 0x853   :  { %v2677_v33 = vpop.f32.mrf.mxu0 }
 0x854   :  { %v2678_v34 = vadd.f32 %v2677_v33, %v2676_v5  ;;  %1287 = vrot.lane.b32.xlu0 %v1281_v27, %s3247_s0 }
 0x856   :  { %v1284_v35 = vadd.f32 %v2678_v34, %v1283_v26 }
 0x858   :  { %1289 = vrot.lane.b32.xlu1 %v1284_v35, %s3247_s0 }
 0x8c6   :  { %v1288_v38 = vpop.permute.xlu0 %1287 }
 0x8c7   :  { %v3742_v12 = vadd.f32 %v1288_v38, %v1281_v27 }
 0x8c9   :  { %1293 = vrot.lane.b32.xlu0 %v3742_v12, %s3238_s30 }
 0x8ca   :  { %v1290_v39 = vpop.permute.xlu1 %1289 }
 0x8cb   :  { %v3746_v30 = vadd.f32 %v1290_v39, %v1284_v35 }
 0x8cd   :  { %1295 = vrot.lane.b32.xlu1 %v3746_v30, %s3238_s30 }
 0x93b   :  { %v1294_v28 = vpop.permute.xlu0 %1293 }
 0x93c   :  { %v3760_v17 = vadd.f32 %v1294_v28, %v3742_v12 }
 0x93e   :  { %v1299_v36 = vsub.f32 0.0, %v3760_v17  ;;  %v2534_v32 = vadd.f32 2.2, %v3760_v17 }
 0x93f   :  { %v1296_v20 = vpop.permute.xlu1 %1295 }
 0x940   :  { %v1301_v55 = vmul.f32 1.442695, %v1299_v36  ;;  %v1313_v40 = vmul.f32 2.5, %v2534_v32  ;;  %v3765_v21 = vadd.f32 %v1296_v20, %v3746_v30 }
 0x942   :  { %3087 = vpow2.f32 %v1301_v55  ;;  %v3767_v22 = vfloor.f32 %v1313_v40  ;;  %v1300_v24 = vsub.f32 0.0, %v3765_v21  ;;  %v2535_v25 = vadd.f32 2.2, %v3765_v21 }
 0x944   :  { %v1317_v60 = vsub.f32 %v1313_v40, %v3767_v22  ;;  %v1303_v5 = vmul.f32 1.442695, %v1300_v24  ;;  %v1314_v27 = vmul.f32 2.5, %v2535_v25  ;;  %vm1347_vm8 = vcmp.eq.f32.partialorder %v3767_v22, %v3477_v52 }
 0x945   :  { %vm1349_vm13 = vcmp.eq.f32.partialorder %v3767_v22, %v3490_v59  ;;  %vm1345_vm5 = vcmp.eq.f32.partialorder %v3767_v22, %v3468_v37  ;;  %vm1351_vm7 = vcmp.eq.f32.partialorder %v3767_v22, %v3494_v1  ;;  %vm1391_vm2 = vcmp.eq.f32.partialorder %v3767_v22, %v3474_v50 }
 0x946   :  { %v1319_v26 = vmul.f32 %v1317_v60, %v1317_v60  ;;  %3089 = vpow2.f32 %v1303_v5  ;;  %v3772_v33 = vfloor.f32 %v1314_v27  ;;  %v1323_v35 = vsub.f32 1.0, %v1317_v60 }
 0x947   :  { %vm1393_vm3 = vcmp.eq.f32.partialorder %v3767_v22, %v3497_v2  ;;  %vm1397_vm11 = vcmp.eq.f32.partialorder %v3767_v22, %v3503_v4  ;;  %vm1395_vm14 = vcmp.eq.f32.partialorder %v3767_v22, %v3500_v3  ;;  %vm1374_vm12 = vcmp.eq.f32.partialorder %v3767_v22, %v3517_v11 }
 0x948   :  { %v1321_v29 = vmul.f32 %v1319_v26, %v1317_v60  ;;  %v1318_v34 = vsub.f32 %v1314_v27, %v3772_v33  ;;  %v1327_v23 = vmul.f32 %v1323_v35, %v1323_v35  ;;  %vm1348_vm9 = vcmp.eq.f32.partialorder %v3772_v33, %v3477_v52 }
 0x949   :  { %vm1352_vm4 = vcmp.eq.f32.partialorder %v3772_v33, %v3494_v1  ;;  %vm1398_vm10 = vcmp.eq.f32.partialorder %v3772_v33, %v3503_v4  ;;  %vm1350_vm15 = vcmp.eq.f32.partialorder %v3772_v33, %v3490_v59  ;;  %vm1394_vm6 = vcmp.eq.f32.partialorder %v3772_v33, %v3497_v2 }
 0x94a   :  { %v1333_v38 = vmul.f32 0.5, %v1321_v29  ;;  %v1320_v12 = vmul.f32 %v1318_v34, %v1318_v34  ;;  %v1324_v39 = vsub.f32 1.0, %v1318_v34  ;;  %v3775_v45 = vmul.f32 0.16666667, %v1321_v29 }
 0x94b   :  { %v1329_v51 = vmul.f32 %v1327_v23, %v1323_v35 }
 0x94c   :  { %v1322_v41 = vmul.f32 %v1320_v12, %v1318_v34  ;;  %v1335_v43 = vsub.f32 %v1333_v38, %v1319_v26  ;;  %v1328_v47 = vmul.f32 %v1324_v39, %v1324_v39  ;;  %v1339_v18 = vsub.f32 1.0, %v3775_v45 }
 0x94d   :  { %v1331_v6 = vmul.f32 0.16666667, %v1329_v51 }
 0x94e   :  { %v1334_v44 = vmul.f32 0.5, %v1322_v41  ;;  %v1337_v53 = vadd.f32 0.6666667, %v1335_v43  ;;  %v3777_v54 = vmul.f32 0.16666667, %v1322_v41  ;;  %v1330_v62 = vmul.f32 %v1328_v47, %v1324_v39 }
 0x94f   :  { %v3088_v30 = vpop.eup %3087  ;;  %v1353_v15 = vsel %vm1351_vm7, %v1331_v6, 0.0  ;;  %v1399_v16 = vsel %vm1397_vm11, %v1331_v6, 0.0  ;;  %vm1396_vm7 = vcmp.eq.f32.partialorder %v3772_v33, %v3500_v3  ;;  %vm1375_vm11 = vcmp.eq.f32.partialorder %v3772_v33, %v3517_v11 }
 0x950   :  { %v1305_v42 = vadd.f32 1.0, %v3088_v30  ;;  %v1336_v48 = vsub.f32 %v1334_v44, %v1320_v12  ;;  %v1341_v7 = vsub.f32 %v1339_v18, %v1337_v53  ;;  %v1340_v31 = vsub.f32 1.0, %v3777_v54 }
 0x951   :  { %v1332_v13 = vmul.f32 0.16666667, %v1330_v62  ;;  %v1355_v55 = vsel %vm1349_vm13, %v1337_v53, %v1353_v15  ;;  %v1401_v40 = vsel %vm1395_vm14, %v1337_v53, %v1399_v16  ;;  %v1376_v60 = vsel %vm1374_vm12, %v1331_v6, 0.0 }
 0x952   :  { %3091 = vrcp.f32 %v1305_v42  ;;  %v1338_v63 = vadd.f32 0.6666667, %v1336_v48  ;;  %v1343_v19 = vsub.f32 %v1341_v7, %v1331_v6  ;;  %vm1372_vm13 = vcmp.eq.f32.partialorder %v3767_v22, %v3514_v10 }
 0x953   :  { %v3090_v56 = vpop.eup %3089  ;;  %v1354_v36 = vsel %vm1352_vm4, %v1332_v13, 0.0  ;;  %v1400_v32 = vsel %vm1398_vm10, %v1332_v13, 0.0  ;;  %v1377_v29 = vsel %vm1375_vm11, %v1332_v13, 0.0  ;;  %vm1392_vm14 = vcmp.eq.f32.partialorder %v3772_v33, %v3474_v50 }
 0x954   :  { %v1306_v61 = vadd.f32 1.0, %v3090_v56  ;;  %v1342_v14 = vsub.f32 %v1340_v31, %v1338_v63  ;;  %v1357_v24 = vsel %vm1347_vm8, %v1343_v19, %v1355_v55  ;;  %v1403_v25 = vsel %vm1393_vm3, %v1343_v19, %v1401_v40 }
 0x955   :  { %v1356_v5 = vsel %vm1350_vm15, %v1338_v63, %v1354_v36  ;;  %v1402_v27 = vsel %vm1396_vm7, %v1338_v63, %v1400_v32  ;;  %vm1370_vm8 = vcmp.eq.f32.partialorder %v3767_v22, %v3511_v9  ;;  %vm1346_vm3 = vcmp.eq.f32.partialorder %v3772_v33, %v3468_v37 }
 0x956   :  { %3093 = vrcp.f32 %v1306_v61  ;;  %v1344_v28 = vsub.f32 %v1342_v14, %v1332_v13  ;;  %vm1371_vm4 = vcmp.eq.f32.partialorder %v3772_v33, %v3511_v9  ;;  %vm1373_vm10 = vcmp.eq.f32.partialorder %v3772_v33, %v3514_v10 }
 0x957   :  { %v1405_v38 = vsel %vm1391_vm2, %v3775_v45, %v1403_v25  ;;  %v1378_v12 = vsel %vm1372_vm13, %v1337_v53, %v1376_v60  ;;  %v1379_v39 = vsel %vm1373_vm10, %v1338_v63, %v1377_v29  ;;  %vm1369_vm2 = vcmp.eq.f32.partialorder %v3772_v33, %v3472_v49 }
 0x958   :  { %v1358_v34 = vsel %vm1348_vm9, %v1344_v28, %v1356_v5  ;;  %v1404_v35 = vsel %vm1394_vm6, %v1344_v28, %v1402_v27  ;;  %v1380_v47 = vsel %vm1370_vm8, %v1343_v19, %v1378_v12  ;;  %v1381_v48 = vsel %vm1371_vm4, %v1344_v28, %v1379_v39  ;;  %v2561_v27 = vld [vmem:[%s3943_s10] ss:$0 sm:$0xff] }
 0x959   :  { %v1360_v23 = vsel %vm1346_vm3, %v3777_v54, %v1358_v34  ;;  %v1406_v43 = vsel %vm1392_vm14, %v3777_v54, %v1404_v35  ;;  %v1409_v53 = vmul.f32 %v3508_v8, %v1405_v38  ;;  %v1383_v7 = vsel %vm1369_vm2, %v3777_v54, %v1381_v48  ;;  %v1706_v38 = vld [vmem:[%s3935_s2] sm:$0x1]  ;;  %v3018_v48 = vld [vmem:[#allocation8 + $0x70] sm:$0xff]   ;;  %s3248_s2 = smov [#allocation11]  }
 0x95a   :  { %v1364_v18 = vmul.f32 %v3487_v58, %v1360_v23  ;;  %v1410_v61 = vmul.f32 %v3508_v8, %v1406_v43  ;;  %v3015_v43 = vld [vmem:[#allocation8 + $0x78] sm:$0xff]  }
 0x95f   :  { %v3092_v20 = vpop.eup %3091 }
 0x960   :  { %v1309_v26 = vmul.f32 %v3092_v20, %v3760_v17  ;;  %v1359_v17 = vsel %vm1345_vm5, %v3775_v45, %v1357_v24  ;;  %vm1368_vm5 = vcmp.eq.f32.partialorder %v3767_v22, %v3472_v49  ;;  %v2560_v24 = vld [vmem:[%s3942_s9] ss:$0 sm:$0xff]  ;;  %s2447_s9 = sshll.u32 %s3248_s2, 4  ;;  %s2448_s9 = int_to_ptr.vmem [resolvable:$true] %s2447_s9 }
 0x961   :  { %v1363_v51 = vmul.f32 %v3487_v58, %v1359_v17  ;;  %v1382_v6 = vsel %vm1368_vm5, %v3775_v45, %v1380_v47  ;;  %v3017_v47 = vld [vmem:[#allocation8 + $0x38] sm:$0xff]   ;;  %s3208_s10 = scalar_lea.vmem %s2448_s9, 32  ;;  %p3213_p12 = scmp.lt.s32.totalorder %s2448_s9, %s2448_s9 }
 0x962   :  { %v1361_v41 = vmul.f32 %v3484_v57, %v1309_v26  ;;  %v1384_v42 = vmul.f32 0.0, %v1309_v26  ;;  %p3209_p11 = scmp.ne.s32.totalorder %s2448_s9, %s3208_s10  ;;  %p3214_p13 = scmp.lt.s32.totalorder %s3208_s10, %s3208_s10 }
 0x963   :  { %v3094_v30 = vpop.eup %3093 }
 0x964   :  { %v1310_v44 = vmul.f32 %v3094_v30, %v3765_v21  ;;  %v1365_v62 = vadd.f32 %v1363_v51, %v1361_v41  ;;  %v1411_v63 = vadd.f32 %v1409_v53, %v1384_v42  ;;  %v1388_v14 = vadd.f32 %v1384_v42, %v1382_v6  ;;  %v3019_v51 = vld [vmem:[#allocation8 + $0xb0] sm:$0xff]   ;;  %v3027_v6 = vld [vmem:[#allocation8 + $0x58] sm:$0xff]   ;;  %p3215_p0 = por %p3214_p13, %p3213_p12 }
 0x965   :  { %v3020_v53 = vld [vmem:[#allocation8 + $0x30] sm:$0xff]  }
 0x966   :  { %v1362_v56 = vmul.f32 %v3484_v57, %v1310_v44  ;;  %v1385_v21 = vmul.f32 0.0, %v1310_v44  ;;  %v3016_v44 = vld [vmem:[#allocation8 + $0xb8] sm:$0xff]   ;;  %p3216_p1 = pnand %p3215_p0, %p3209_p11 }
 0x968   :  { %v1366_v31 = vadd.f32 %v1364_v18, %v1362_v56  ;;  %v1412_v13 = vadd.f32 %v1410_v61, %v1385_v21  ;;  %v1389_v22 = vadd.f32 %v1385_v21, %v1383_v7  ;;  %v3021_v56 = vld [vmem:[#allocation8 + $0x68] sm:$0xff]   ;;  %v3024_v61 = vld [vmem:[#allocation8 + $0x60] sm:$0xff]   ;;  %v3028_v7 = vld [vmem:[#allocation8 + $0x98] sm:$0xff]  }
 0x969   :  { %v3022_v18 = vld [vmem:[#allocation8 + $0xa8] sm:$0xff]  }
 0x96a   :  { %v1390_v19 = vpack.c.bf16 %v1389_v22, %v1388_v14  ;;  %v1413_v15 = vpack.c.bf16 %v1412_v13, %v1411_v63  ;;  %v1367_v33 = vpack.c.bf16 %v1366_v31, %v1365_v62  ;;  %v3023_v21 = vld [vmem:[#allocation8 + $0x28] sm:$0xff]   ;;  %v3025_v62 = vld [vmem:[#allocation8 + $0xa0] sm:$0xff]   ;;  %v3029_v31 = vld [vmem:[#allocation8 + $0x18] sm:$0xff]  }
 0x96b   :  { %v3026_v63 = vld [vmem:[#allocation8 + $0x20] sm:$0xff]   ;;  %v3030_v13 = vld [vmem:[#allocation8 + $0x50] sm:$0xff]  }
 0x96c   :  { %1638 = vmatprep.mubr.bf16.mxu0 %v1390_v19  ;;  %2872 = vmatmul.mubr.bf16.vlgmr.msra.gmra.mxu1 %v1413_v15  ;;  %v3031_v14 = vld [vmem:[#allocation8 + $0x90] sm:$0xff]   ;;  %v3033_v19 = vld [vmem:[#allocation8 + $0x48] sm:$0xff]  }
 0x96d   :  { %1639 = vmatmul.mubr.bf16.vlgmr.msra.gmra.mxu0 %v1367_v33  ;;  %2897 = vmatprep.mubr.msk.bf16.mxu1 %vm3244_vm0, %v3243_v0  ;;  %v3032_v22 = vld [vmem:[#allocation8 + $0x10] sm:$0xff]   ;;  %v3034_v15 = vld [vmem:[#allocation8 + $0x88] sm:$0xff]  }
 0x96e   :  { %2877 = vmatprep.mubr.msk.bf16.mxu0 %vm3244_vm0, %v3243_v0  ;;  %2882 = vmatpush3.bf16.msra.mxu1 %v3016_v44  ;;  %v3035_v33 = vld [vmem:[#allocation8 + $0x8] sm:$0xff]  }
 0x96f   :  { %2883 = vmatprep.subr.bf16.mxu1 %v3243_v0 }
 0x972   :  { %2884 = vmatpush3.bf16.msra.mxu1 %v3019_v51 }
 0x973   :  { %2885 = vmatprep.subr.bf16.mxu1 %v3243_v0 }
 0x976   :  { %2886 = vmatpush3.bf16.msra.mxu1 %v3022_v18 }
 0x977   :  { %2887 = vmatprep.subr.bf16.mxu1 %v3243_v0 }
 0x97a   :  { %2888 = vmatpush3.bf16.msra.mxu1 %v3025_v62 }
 0x97b   :  { %2889 = vmatprep.subr.bf16.mxu1 %v3243_v0 }
 0x97e   :  { %2890 = vmatpush3.bf16.msra.mxu1 %v3028_v7 }
 0x97f   :  { %2891 = vmatprep.subr.bf16.mxu1 %v3243_v0 }
 0x982   :  { %2892 = vmatpush3.bf16.msra.mxu1 %v3031_v14 }
 0x983   :  { %2893 = vmatprep.subr.bf16.mxu1 %v3243_v0 }
 0x986   :  { %2894 = vmatpush3.bf16.msra.mxu1 %v3034_v15 }
 0x987   :  { %2895 = vmatprep.subr.bf16.mxu1 %v3243_v0 }
 0xa2c   :  { %v1681_v16 = vpop.f32.mrf.mxu1 }
 0xa2d   :  { %v2704_v45 = vpop.f32.mrf.mxu0 }
 0xa2e   :  { %v2873_v28 = vpop.f32.mrf.mxu1 }
 0xa2f   :  { %v2705_v54 = vpop.f32.mrf.mxu0  ;;  %v3038_v28 = vld [vmem:[#allocation8] sm:$0xff]  }
 0xa30   :  { %v2706_v36 = vadd.f32 %v2705_v54, %v2704_v45  ;;  %v1684_v32 = vpop.f32.mrf.mxu1  ;;  %v3037_v45 = vld [vmem:[#allocation8 + $0x80] sm:$0xff]  }
 0xa31   :  { %v2707_v20 = vpop.f32.mrf.mxu0  ;;  %2896 = vmatpush3.bf16.msra.mxu1 %v3037_v45 }
 0xa32   :  { %v1682_v55 = vadd.f32 %v2706_v36, %v1681_v16  ;;  %v2874_v40 = vpop.f32.mrf.mxu1  ;;  %v3036_v16 = vld [vmem:[#allocation8 + $0x40] sm:$0xff]   ;;  %2901 = vmatprep.subr.bf16.mxu1 %v3243_v0 }
 0xa33   :  { %v2708_v25 = vpop.f32.mrf.mxu0 }
 0xa34   :  { %v2709_v60 = vadd.f32 %v2708_v25, %v2707_v20  ;;  %v1695_v26 = vmul.f32 %v2560_v24, %v1682_v55 }
 0xa36   :  { %v1685_v5 = vadd.f32 %v2709_v60, %v1684_v32  ;;  %v1704_v34 = vadd.f32 %v2561_v27, %v1695_v26 }
 0xa38   :  { %v1696_v29 = vmul.f32 %v2560_v24, %v1685_v5 }
 0xa3a   :  { %v1705_v35 = vadd.f32 %v2561_v27, %v1696_v29 }
 0xa3c   :  { %v1707_v17 = vpack.c.bf16 %v1705_v35, %v1704_v34 }
 0xa3e   :  { %2876 = vmatpush3.bf16.msra.mxu0 %v1707_v17 }
 0xa3f   :  { %2721 = vmatprep.subr.bf16.mxu0 %v3015_v43 }
 0xa41   :  { %2878 = vmatmul.mubr.msk.bf16.vlgmr.msra.gmra.mxu0 %vm124_vm1, %v1706_v38 }
 0xa42   :  { %2722 = vmatpush3.bf16.msra.mxu0 %v3017_v47 }
 0xa43   :  { %2723 = vmatprep.subr.bf16.mxu0 %v3018_v48 }
 0xa46   :  { %2724 = vmatpush3.bf16.msra.mxu0 %v3020_v53 }
 0xa47   :  { %2725 = vmatprep.subr.bf16.mxu0 %v3021_v56 }
 0xa4a   :  { %2726 = vmatpush3.bf16.msra.mxu0 %v3023_v21 }
 0xa4b   :  { %2727 = vmatprep.subr.bf16.mxu0 %v3024_v61 }
 0xa4e   :  { %2728 = vmatpush3.bf16.msra.mxu0 %v3026_v63 }
 0xa4f   :  { %2729 = vmatprep.subr.bf16.mxu0 %v3027_v6 }
 0xa52   :  { %2730 = vmatpush3.bf16.msra.mxu0 %v3029_v31 }
 0xa53   :  { %2731 = vmatprep.subr.bf16.mxu0 %v3030_v13 }
 0xa56   :  { %2732 = vmatpush3.bf16.msra.mxu0 %v3032_v22 }
 0xa57   :  { %2733 = vmatprep.subr.bf16.mxu0 %v3033_v19 }
 0xa5a   :  { %2734 = vmatpush3.bf16.msra.mxu0 %v3035_v33 }
 0xa5b   :  { %2735 = vmatprep.subr.bf16.mxu0 %v3036_v16 }
 0xa5e   :  { %2736 = vmatpush3.bf16.msra.mxu0 %v3038_v28 }
 0xb01   :  { %v1745_v12 = vpop.f32.mrf.mxu0 }
 0xb02   :  { %1751 = vrot.lane.b32.xlu0 %v1745_v12, %s3247_s0 }
 0xb03   :  { %v2879_v39 = vpop.f32.mrf.mxu0 }
 0xb05   :  { %v1748_v30 = vpop.f32.mrf.mxu0 }
 0xb07   :  { %v2880_v41 = vpop.f32.mrf.mxu0 }
 0xb74   :  { %v1752_v42 = vpop.permute.xlu0 %1751 }
 0xb75   :  { %v1753_v23 = vadd.f32 %v1752_v42, %v1745_v12 }
 0xb77   :  { %1754 = vrot.lane.b32.xlu1 %v1753_v23, %s3238_s30 }
 0xbe9   :  { %v1755_v54 = vpop.permute.xlu1 %1754 }
 0xbea   :  { %v1756_v36 = vadd.f32 %v1755_v54, %v1753_v23 }
 0xbec   :  { %v1757_v32 = vsub.f32 0.0, %v1756_v36  ;;  %v2563_v20 = vadd.f32 2.2, %v1756_v36 }
 0xbee   :  { %v1758_v55 = vmul.f32 1.442695, %v1757_v32  ;;  %v1764_v40 = vmul.f32 2.5, %v2563_v20 }
 0xbf0   :  { %3095 = vpow2.f32 %v1758_v55  ;;  %v1765_v24 = vfloor.f32 %v1764_v40 }
 0xbf2   :  { %v1766_v25 = vsub.f32 %v1764_v40, %v1765_v24  ;;  %vm1807_vm1 = vcmp.eq.f32.partialorder %v1765_v24, %v3503_v4  ;;  %vm1783_vm9 = vcmp.eq.f32.partialorder %v1765_v24, %v3494_v1  ;;  %vm1795_vm12 = vcmp.eq.f32.partialorder %v1765_v24, %v3517_v11 }
 0xbf3   :  { %vm1806_vm15 = vcmp.eq.f32.partialorder %v1765_v24, %v3500_v3  ;;  %vm1782_vm6 = vcmp.eq.f32.partialorder %v1765_v24, %v3490_v59  ;;  %vm1805_vm7 = vcmp.eq.f32.partialorder %v1765_v24, %v3497_v2  ;;  %vm1781_vm11 = vcmp.eq.f32.partialorder %v1765_v24, %v3477_v52 }
 0xbf4   :  { %v1767_v60 = vmul.f32 %v1766_v25, %v1766_v25  ;;  %v1769_v5 = vsub.f32 1.0, %v1766_v25  ;;  %vm1794_vm8 = vcmp.eq.f32.partialorder %v1765_v24, %v3514_v10  ;;  %vm1804_vm13 = vcmp.eq.f32.partialorder %v1765_v24, %v3474_v50 }
 0xbf5   :  { %vm1780_vm3 = vcmp.eq.f32.partialorder %v1765_v24, %v3468_v37  ;;  %vm1793_vm14 = vcmp.eq.f32.partialorder %v1765_v24, %v3511_v9  ;;  %vm1792_vm4 = vcmp.eq.f32.partialorder %v1765_v24, %v3472_v49 }
 0xbf6   :  { %v1768_v26 = vmul.f32 %v1767_v60, %v1766_v25  ;;  %v1771_v29 = vmul.f32 %v1769_v5, %v1769_v5 }
 0xbf8   :  { %v1774_v27 = vmul.f32 0.5, %v1768_v26  ;;  %v1770_v35 = vmul.f32 0.16666667, %v1768_v26  ;;  %v1772_v12 = vmul.f32 %v1771_v29, %v1769_v5  ;;  %v3039_v29 = vld [vmem:[#allocation10 + $0x78] sm:$0xff]  }
 0xbf9   :  { %2752 = vmatprep.subr.bf16.mxu0 %v3039_v29 }
 0xbfa   :  { %v1775_v34 = vsub.f32 %v1774_v27, %v1767_v60  ;;  %v1777_v30 = vsub.f32 1.0, %v1770_v35  ;;  %v1773_v41 = vmul.f32 0.16666667, %v1772_v12  ;;  %v3044_v12 = vld [vmem:[#allocation10 + $0x30] sm:$0xff]  }
 0xbfc   :  { %v1776_v39 = vadd.f32 0.6666667, %v1775_v34  ;;  %v1808_v43 = vsel %vm1807_vm1, %v1773_v41, 0.0  ;;  %v1784_v44 = vsel %vm1783_vm9, %v1773_v41, 0.0  ;;  %v1796_v51 = vsel %vm1795_vm12, %v1773_v41, 0.0  ;;  %v3040_v34 = vld [vmem:[#allocation10 + $0xb8] sm:$0xff]  }
 0xbfd   :  { %v3096_v17 = vpop.eup %3095 }
 0xbfe   :  { %v1760_v38 = vadd.f32 1.0, %v3096_v17  ;;  %v1778_v42 = vsub.f32 %v1777_v30, %v1776_v39  ;;  %v1809_v47 = vsel %vm1806_vm15, %v1776_v39, %v1808_v43  ;;  %v1785_v48 = vsel %vm1782_vm6, %v1776_v39, %v1784_v44  ;;  %v3042_v17 = vld [vmem:[#allocation10 + $0x70] sm:$0xff]   ;;  %v3046_v30 = vld [vmem:[#allocation10 + $0xa8] sm:$0xff]   ;;  %v3050_v43 = vld [vmem:[#allocation10 + $0x20] sm:$0xff]  }
 0xbff   :  { %v1797_v21 = vsel %vm1794_vm8, %v1776_v39, %v1796_v51  ;;  %v3045_v39 = vld [vmem:[#allocation10 + $0x68] sm:$0xff]   ;;  %v3051_v44 = vld [vmem:[#allocation10 + $0x58] sm:$0xff]   ;;  %v3054_v51 = vld [vmem:[#allocation10 + $0x50] sm:$0xff]  }
 0xc00   :  { %3097 = vrcp.f32 %v1760_v38  ;;  %v1779_v23 = vsub.f32 %v1778_v42, %v1773_v41  ;;  %v3043_v38 = vld [vmem:[#allocation10 + $0xb0] sm:$0xff]   ;;  %v3047_v41 = vld [vmem:[#allocation10 + $0x28] sm:$0xff]   ;;  %v3048_v42 = vld [vmem:[#allocation10 + $0x60] sm:$0xff]  }
 0xc02   :  { %v1810_v53 = vsel %vm1805_vm7, %v1779_v23, %v1809_v47  ;;  %v1786_v56 = vsel %vm1781_vm11, %v1779_v23, %v1785_v48  ;;  %v1798_v6 = vsel %vm1793_vm14, %v1779_v23, %v1797_v21  ;;  %v3049_v23 = vld [vmem:[#allocation10 + $0xa0] sm:$0xff]   ;;  %v3052_v47 = vld [vmem:[#allocation10 + $0x98] sm:$0xff]   ;;  %v3058_v21 = vld [vmem:[#allocation10 + $0x88] sm:$0xff]  }
 0xc03   :  { %v1811_v61 = vsel %vm1804_vm13, %v1770_v35, %v1810_v53  ;;  %v1787_v62 = vsel %vm1780_vm3, %v1770_v35, %v1786_v56  ;;  %v1799_v22 = vsel %vm1792_vm4, %v1770_v35, %v1798_v6  ;;  %v3041_v35 = vld [vmem:[#allocation10 + $0x38] sm:$0xff]   ;;  %v3055_v53 = vld [vmem:[#allocation10 + $0x90] sm:$0xff]   ;;  %v3062_v6 = vld [vmem:[#allocation10] sm:$0xff]   ;;  %vm2425_vm13 = vcmp.lt.s32.totalorder %v3414_v46, 4 }
 0xc04   :  { %v1813_v13 = vmul.f32 %v3508_v8, %v1811_v61  ;;  %v1789_v14 = vmul.f32 %v3487_v58, %v1787_v62  ;;  %v3053_v48 = vld [vmem:[#allocation10 + $0x18] sm:$0xff]   ;;  %v3056_v56 = vld [vmem:[#allocation10 + $0x10] sm:$0xff]   ;;  %v3059_v61 = vld [vmem:[#allocation10 + $0x8] sm:$0xff]   ;;  %vm2427_vm3 = vcmask 1041408  }
 0xc05   :  { %v3060_v62 = vld [vmem:[#allocation10 + $0x40] sm:$0xff]  }
 0xc0d   :  { %v3098_v18 = vpop.eup %3097 }
 0xc0e   :  { %v1762_v63 = vmul.f32 %v3098_v18, %v1756_v36  ;;  %v3057_v18 = vld [vmem:[#allocation10 + $0x48] sm:$0xff]  }
 0xc10   :  { %v1788_v7 = vmul.f32 %v3484_v57, %v1762_v63  ;;  %v1800_v31 = vmul.f32 0.0, %v1762_v63  ;;  %v3061_v63 = vld [vmem:[#allocation10 + $0x80] sm:$0xff]  }
 0xc12   :  { %v1802_v19 = vadd.f32 %v1800_v31, %v1799_v22  ;;  %v1814_v15 = vadd.f32 %v1813_v13, %v1800_v31  ;;  %v1790_v33 = vadd.f32 %v1789_v14, %v1788_v7 }
 0xc14   :  { %v1803_v16 = vpack.c.bf16 %v1802_v19, %v1802_v19  ;;  %v1815_v45 = vpack.c.bf16 %v1814_v15, %v1814_v15  ;;  %v1791_v28 = vpack.c.bf16 %v1790_v33, %v1790_v33 }
 0xc16   :  { %2040 = vmatprep.mubr.bf16.mxu0 %v1803_v16  ;;  %2898 = vmatmul.mubr.bf16.vlgmr.msra.gmra.mxu1 %v1815_v45 }
 0xc17   :  { %2041 = vmatmul.mubr.bf16.vlgmr.msra.gmra.mxu0 %v1791_v28  ;;  %2917 = vmatprep.mubr.msk.bf16.mxu1 %vm3244_vm0, %v3243_v0 }
 0xc18   :  { %2902 = vmatpush3.bf16.msra.mxu1 %v3040_v34  ;;  %2753 = vmatpush3.bf16.msra.mxu0 %v3041_v35 }
 0xc19   :  { %2903 = vmatprep.subr.bf16.mxu1 %v3243_v0  ;;  %2754 = vmatprep.subr.bf16.mxu0 %v3042_v17 }
 0xc1c   :  { %2904 = vmatpush3.bf16.msra.mxu1 %v3043_v38  ;;  %2755 = vmatpush3.bf16.msra.mxu0 %v3044_v12 }
 0xc1d   :  { %2905 = vmatprep.subr.bf16.mxu1 %v3243_v0  ;;  %2756 = vmatprep.subr.bf16.mxu0 %v3045_v39 }
 0xc20   :  { %2906 = vmatpush3.bf16.msra.mxu1 %v3046_v30  ;;  %2757 = vmatpush3.bf16.msra.mxu0 %v3047_v41 }
 0xc21   :  { %2907 = vmatprep.subr.bf16.mxu1 %v3243_v0  ;;  %2758 = vmatprep.subr.bf16.mxu0 %v3048_v42 }
 0xc24   :  { %2908 = vmatpush3.bf16.msra.mxu1 %v3049_v23  ;;  %2759 = vmatpush3.bf16.msra.mxu0 %v3050_v43 }
 0xc25   :  { %2909 = vmatprep.subr.bf16.mxu1 %v3243_v0  ;;  %2760 = vmatprep.subr.bf16.mxu0 %v3051_v44 }
 0xc28   :  { %2910 = vmatpush3.bf16.msra.mxu1 %v3052_v47  ;;  %2761 = vmatpush3.bf16.msra.mxu0 %v3053_v48 }
 0xc29   :  { %2911 = vmatprep.subr.bf16.mxu1 %v3243_v0  ;;  %2762 = vmatprep.subr.bf16.mxu0 %v3054_v51 }
 0xc2c   :  { %2912 = vmatpush3.bf16.msra.mxu1 %v3055_v53  ;;  %2763 = vmatpush3.bf16.msra.mxu0 %v3056_v56 }
 0xc2d   :  { %2913 = vmatprep.subr.bf16.mxu1 %v3243_v0  ;;  %2764 = vmatprep.subr.bf16.mxu0 %v3057_v18 }
 0xc30   :  { %2914 = vmatpush3.bf16.msra.mxu1 %v3058_v21  ;;  %2765 = vmatpush3.bf16.msra.mxu0 %v3059_v61 }
 0xc31   :  { %2915 = vmatprep.subr.bf16.mxu1 %v3243_v0  ;;  %2766 = vmatprep.subr.bf16.mxu0 %v3060_v62 }
 0xc34   :  { %2916 = vmatpush3.bf16.msra.mxu1 %v3061_v63  ;;  %2767 = vmatpush3.bf16.msra.mxu0 %v3062_v6 }
 0xcd6   :  { %v2082_v54 = vpop.f32.mrf.mxu1 }
 0xcd7   :  { %v2737_v36 = vpop.f32.mrf.mxu0 }
 0xcd8   :  { %v2899_v32 = vpop.f32.mrf.mxu1 }
 0xcd9   :  { %v2738_v20 = vpop.f32.mrf.mxu0 }
 0xcda   :  { %v2739_v55 = vadd.f32 %v2738_v20, %v2737_v36  ;;  %v2085_v40 = vpop.f32.mrf.mxu1 }
 0xcdb   :  { %v2740_v24 = vpop.f32.mrf.mxu0 }
 0xcdc   :  { %v2083_v25 = vadd.f32 %v2739_v55, %v2082_v54  ;;  %v2900_v60 = vpop.f32.mrf.mxu1 }
 0xcdd   :  { %v2741_v26 = vpop.f32.mrf.mxu0 }
 0xcde   :  { %2088 = vrot.lane.b32.xlu0 %v2083_v25, %s3247_s0 }
 0xd50   :  { %v2089_v5 = vpop.permute.xlu0 %2088 }
 0xd51   :  { %v2090_v27 = vadd.f32 %v2089_v5, %v2083_v25 }
 0xd53   :  { %2091 = vrot.lane.b32.xlu1 %v2090_v27, %s3238_s30 }
 0xdc5   :  { %v2092_v7 = vpop.permute.xlu1 %2091 }
 0xdc6   :  { %v2093_v31 = vadd.f32 %v2092_v7, %v2090_v27 }
 0xdc8   :  { %v2094_v13 = vsub.f32 0.0, %v2093_v31  ;;  %v2588_v14 = vadd.f32 2.2, %v2093_v31 }
 0xdca   :  { %v2095_v22 = vmul.f32 1.442695, %v2094_v13  ;;  %v2101_v19 = vmul.f32 2.5, %v2588_v14 }
 0xdcc   :  { %3099 = vpow2.f32 %v2095_v22  ;;  %v2102_v15 = vfloor.f32 %v2101_v19 }
 0xdce   :  { %v2103_v33 = vsub.f32 %v2101_v19, %v2102_v15  ;;  %vm2144_vm0 = vcmp.eq.f32.partialorder %v2102_v15, %v3503_v4  ;;  %vm2120_vm10 = vcmp.eq.f32.partialorder %v2102_v15, %v3494_v1  ;;  %vm2132_vm5 = vcmp.eq.f32.partialorder %v2102_v15, %v3517_v11 }
 0xdcf   :  { %vm2143_vm2 = vcmp.eq.f32.partialorder %v2102_v15, %v3500_v3  ;;  %vm2119_vm1 = vcmp.eq.f32.partialorder %v2102_v15, %v3490_v59  ;;  %vm2142_vm9 = vcmp.eq.f32.partialorder %v2102_v15, %v3497_v2  ;;  %vm2118_vm12 = vcmp.eq.f32.partialorder %v2102_v15, %v3477_v52 }
 0xdd0   :  { %v2104_v16 = vmul.f32 %v2103_v33, %v2103_v33  ;;  %v2106_v28 = vsub.f32 1.0, %v2103_v33  ;;  %vm2131_vm15 = vcmp.eq.f32.partialorder %v2102_v15, %v3514_v10  ;;  %vm2141_vm6 = vcmp.eq.f32.partialorder %v2102_v15, %v3474_v50 }
 0xdd1   :  { %vm2117_vm7 = vcmp.eq.f32.partialorder %v2102_v15, %v3468_v37  ;;  %vm2130_vm11 = vcmp.eq.f32.partialorder %v2102_v15, %v3511_v9  ;;  %vm2129_vm8 = vcmp.eq.f32.partialorder %v2102_v15, %v3472_v49 }
 0xdd2   :  { %v2105_v45 = vmul.f32 %v2104_v16, %v2103_v33  ;;  %v2108_v36 = vmul.f32 %v2106_v28, %v2106_v28 }
 0xdd4   :  { %v2111_v54 = vmul.f32 0.5, %v2105_v45  ;;  %v2107_v0 = vmul.f32 0.16666667, %v2105_v45  ;;  %v2109_v40 = vmul.f32 %v2108_v36, %v2106_v28 }
 0xdd6   :  { %v2112_v32 = vsub.f32 %v2111_v54, %v2104_v16  ;;  %v2114_v25 = vsub.f32 1.0, %v2107_v0  ;;  %v2110_v60 = vmul.f32 0.16666667, %v2109_v40 }
 0xdd8   :  { %v2113_v24 = vadd.f32 0.6666667, %v2112_v32  ;;  %v2145_v27 = vsel %vm2144_vm0, %v2110_v60, 0.0  ;;  %v2121_v29 = vsel %vm2120_vm10, %v2110_v60, 0.0  ;;  %v2133_v17 = vsel %vm2132_vm5, %v2110_v60, 0.0 }
 0xdd9   :  { %v3100_v20 = vpop.eup %3099 }
 0xdda   :  { %v2097_v55 = vadd.f32 1.0, %v3100_v20  ;;  %v2115_v26 = vsub.f32 %v2114_v25, %v2113_v24  ;;  %v2146_v34 = vsel %vm2143_vm2, %v2113_v24, %v2145_v27  ;;  %v2122_v35 = vsel %vm2119_vm1, %v2113_v24, %v2121_v29 }
 0xddb   :  { %v2134_v3 = vsel %vm2131_vm15, %v2113_v24, %v2133_v17 }
 0xddc   :  { %3101 = vrcp.f32 %v2097_v55  ;;  %v2116_v5 = vsub.f32 %v2115_v26, %v2110_v60 }
 0xdde   :  { %v2147_v38 = vsel %vm2142_vm9, %v2116_v5, %v2146_v34  ;;  %v2123_v4 = vsel %vm2118_vm12, %v2116_v5, %v2122_v35  ;;  %v2135_v12 = vsel %vm2130_vm11, %v2116_v5, %v2134_v3 }
 0xddf   :  { %v2148_v59 = vsel %vm2141_vm6, %v2107_v0, %v2147_v38  ;;  %v2124_v11 = vsel %vm2117_vm7, %v2107_v0, %v2123_v4  ;;  %v2136_v50 = vsel %vm2129_vm8, %v2107_v0, %v2135_v12 }
 0xde0   :  { %v2150_v30 = vmul.f32 %v3508_v8, %v2148_v59  ;;  %v2126_v10 = vmul.f32 %v3487_v58, %v2124_v11 }
 0xde9   :  { %v3102_v1 = vpop.eup %3101 }
 0xdea   :  { %v2099_v2 = vmul.f32 %v3102_v1, %v2093_v31 }
 0xdec   :  { %v2125_v52 = vmul.f32 %v3484_v57, %v2099_v2  ;;  %v2137_v39 = vmul.f32 0.0, %v2099_v2 }
 0xdee   :  { %v2139_v41 = vadd.f32 %v2137_v39, %v2136_v50  ;;  %v2151_v37 = vadd.f32 %v2150_v30, %v2137_v39  ;;  %v2127_v42 = vadd.f32 %v2126_v10, %v2125_v52 }
 0xdf0   :  { %v2140_v23 = vpack.c.bf16 %v2139_v41, %v2139_v41  ;;  %v2152_v9 = vpack.c.bf16 %v2151_v37, %v2151_v37  ;;  %v2128_v43 = vpack.c.bf16 %v2127_v42, %v2127_v42 }
 0xdf2   :  { %2377 = vmatprep.mubr.bf16.mxu0 %v2140_v23  ;;  %2918 = vmatmul.mubr.bf16.vlgmr.msra.gmra.mxu1 %v2152_v9 }
 0xdf3   :  { %2378 = vmatmul.mubr.bf16.vlgmr.msra.gmra.mxu0 %v2128_v43 }
 0xeb2   :  { %v2419_v44 = vpop.f32.mrf.mxu1 }
 0xeb3   :  { %v2768_v47 = vpop.f32.mrf.mxu0 }
 0xeb4   :  { %v2919_v49 = vpop.f32.mrf.mxu1 }
 0xeb5   :  { %v2769_v48 = vpop.f32.mrf.mxu0 }
 0xeb6   :  { %v2770_v57 = vadd.f32 %v2769_v48, %v2768_v47  ;;  %v2422_v51 = vpop.f32.mrf.mxu1 }
 0xeb7   :  { %v2771_v53 = vpop.f32.mrf.mxu0 }
 0xeb8   :  { %v2420_v58 = vadd.f32 %v2770_v57, %v2419_v44  ;;  %v2920_v8 = vpop.f32.mrf.mxu1 }
 0xeb9   :  { %v2772_v56 = vpop.f32.mrf.mxu0 }
 0xeba   :  { %v2426_v18 = vsel %vm2425_vm13, %v2420_v58, -1e+30 }
 0xebb   :  { %v2428_v21 = vsel %vm2427_vm3, %v2426_v18, -inf }
 0xebc   :  { %2429 = vmax.xlane.f32.xlu0 %v2428_v21 }
 0xf45   :  { %v2430_v61 = vpop.xlane.xlu0 %2429 }
 0xf46   :  { %v2431_v62 = vsub.f32 %v2426_v18, %v2430_v61 }
 0xf48   :  { %v2432_v63 = vmul.f32 1.442695, %v2431_v62 }
 0xf4a   :  { %3103 = vpow2.f32 %v2432_v63 }
 0xf57   :  { %v3104_v6 = vpop.eup %3103 }
 0xf58   :  { %v2434_v7 = vsel %vm2427_vm3, %v3104_v6, 0.0 }
 0xf59   :  { %2435 = vadd.xlane.f32.xlu1 %v2434_v7 }
 0xfe2   :  { %v2436_v31 = vpop.xlane.xlu1 %2435 }
 0xfe3   :  { %3105 = vlog2.f32 %v2436_v31 }
 0xff0   :  { %v3106_v13 = vpop.eup %3105 }
 0xff1   :  { %v2438_v46 = vmul.f32 0.6931472, %v3106_v13 }
 0xff3   :  { %v2439_v14 = vsub.f32 %v2431_v62, %v2438_v46 }
 0xff5   :  { %2440 = vst [vmem:[#allocation11] sm:$0x3] %v2439_v14 }
 0xff6   :  { %3219 = shalt.err (!%p3216_p1)
}
 0xff7   :  { %2450 = dma.vmem_to_hbm [thread:$0]  %s2448_s9, 32, %s3946_s13, [#allocation4]  }
 0xff8   :  { %3234 = dma.done.wait [#allocation4], 32  }
 0xff9   :  { %3235 = vsyncadd [#allocation4], 4294967264 }
 0xffa   :  { %2454 = vsyncpa [#allocation3], 1 }
 0xffb   :  { %2455 = vsyncpa [#allocation6], 1 }
 0xffc   :  { %2456 = vsyncpa [#allocation9], 1 }
 0xffd   :  { %2457 = vsyncpa [#allocation4], 1 }

</bundles_post_ra>
